<compile_context>
chip_gen: v7x
topology: tpu7x:2x2x1
jax: 0.10.0
libtpu: 0.0.40
codegen_flags: <defaults>
</compile_context>

<pallas_src>
import functools

import numpy as np
import jax
import jax.numpy as jnp
from jax.experimental import pallas as pl
from jax.experimental.pallas import tpu as pltpu

NEG_SLOPE = 0.2
BN_EPS = 1e-5
KSZ = 4       # conv kernel size
STR = 2       # conv stride


# ------------------------- host-side constant builders -------------------------

def _row_select(N, H, Ho, pad):
    """(4, N*Ho, N*H) 0/1: page ki selects slab row h = 2*ho + ki - pad (zero row if OOB)."""
    sel = np.zeros((KSZ, N, Ho, N, H), np.float32)
    for ki in range(KSZ):
        for n in range(N):
            for ho in range(Ho):
                h = STR * ho + ki - pad
                if 0 <= h < H:
                    sel[ki, n, ho, n, h] = 1.0
    return sel.reshape(KSZ, N * Ho, N * H)


def _width_selector(W, Wo, pad):
    """(4, W, Wo) 0/1: T[kj, w, wo] = 1 iff w == 2*wo + kj - pad (width padding folded in)."""
    T = np.zeros((KSZ, W, Wo), np.float32)
    for kj in range(KSZ):
        for wo in range(Wo):
            w = STR * wo + kj - pad
            if 0 <= w < W:
                T[kj, w, wo] = 1.0
    return T


def _channel_reduce(Wo, C):
    """(Wo*C, C) 0/1: sums the Wo channel groups of one slab row (transpose broadcasts back)."""
    R = np.zeros((Wo, C, C), np.float32)
    for c in range(C):
        R[:, c, c] = 1.0
    return R.reshape(Wo * C, C)


def _band_weights(w, W, Wo, pad):
    """(Cout, Cin, 4, 4) -> (4, W*Cin, Wo*Cout) bf16 width-banded (Toeplitz) weight slabs."""
    Cout, Cin = int(w.shape[0]), int(w.shape[1])
    T = jnp.asarray(_width_selector(W, Wo, pad))                     # (kj, W, Wo)
    B = jnp.einsum('jxw,oikj->kxiwo', T, w.astype(jnp.float32))      # (ki, W, Cin, Wo, Cout)
    return B.reshape(KSZ, W * Cin, Wo * Cout).astype(jnp.bfloat16)


# --------------------------------- fused kernel ---------------------------------

def _disc_kernel(x0_ref,
                 s0_ref, b0_ref, bias0_ref,
                 s1_ref, b1_ref, g1_ref, bt1_ref, rs1_ref, rb1_ref,
                 s2_ref, b2_ref, g2_ref, bt2_ref, rs2_ref, rb2_ref,
                 s3_ref, b3_ref, g3_ref, bt3_ref, rs3_ref, rb3_ref,
                 w4_ref, p4_ref, bias4_ref,
                 o_ref, *, counts):
    cnt1, cnt2, cnt3 = counts

    def lrelu(v):
        return jnp.where(v > 0, v, NEG_SLOPE * v)

    def conv(x_bf16, s_ref, b_ref):
        # 4x4 stride-2 conv in slab form: per kernel row, a 0/1 row-selection matmul
        # (handles stride / shift / zero-pad rows) followed by a banded-weight matmul.
        acc = None
        for ki in range(KSZ):
            a = jnp.dot(s_ref[ki], x_bf16,
                        preferred_element_type=jnp.float32).astype(jnp.bfloat16)
            t = jnp.dot(a, b_ref[ki], preferred_element_type=jnp.float32)
            acc = t if acc is None else acc + t
        return acc                                                   # (N*Ho, Wo*Cout) f32

    def bn_lrelu(cv, g_ref, bt_ref, rs_ref, rb_ref, cnt):
        # One-pass training-mode batch stats; channel-group reduce / broadcast via
        # tiny 0/1 matmuls (keeps everything 2D and lane-dense, no reshapes).
        inv = 1.0 / cnt
        rsum = jnp.sum(cv, axis=0, keepdims=True)                    # (1, Wo*C)
        rsq = jnp.sum(cv * cv, axis=0, keepdims=True)
        mean = jnp.dot(rsum, rs_ref[...], preferred_element_type=jnp.float32) * inv
        ex2 = jnp.dot(rsq, rs_ref[...], preferred_element_type=jnp.float32) * inv
        rstd = jax.lax.rsqrt(ex2 - mean * mean + BN_EPS)             # (1, C)
        mean_t = jnp.dot(mean, rb_ref[...], preferred_element_type=jnp.float32)
        rstd_t = jnp.dot(rstd, rb_ref[...], preferred_element_type=jnp.float32)
        y = (cv - mean_t) * (rstd_t * g_ref[...]) + bt_ref[...]
        return lrelu(y)

    x0 = x0_ref[...]                                                 # (N*H, W*Cin) bf16
    y0 = lrelu(conv(x0, s0_ref, b0_ref) + bias0_ref[...])            # (N*32, 32*fd)  f32
    y1 = bn_lrelu(conv(y0.astype(jnp.bfloat16), s1_ref, b1_ref),
                  g1_ref, bt1_ref, rs1_ref, rb1_ref, cnt1)           # (N*16, 16*2fd)
    y2 = bn_lrelu(conv(y1.astype(jnp.bfloat16), s2_ref, b2_ref),
                  g2_ref, bt2_ref, rs2_ref, rb2_ref, cnt2)           # (N*8,  8*4fd)
    y3 = bn_lrelu(conv(y2.astype(jnp.bfloat16), s3_ref, b3_ref),
                  g3_ref, bt3_ref, rs3_ref, rb3_ref, cnt3)           # (N*4,  4*8fd)

    # Final Conv2d(8*fd, 1, 4, 2, 0): valid 4x4 conv over the whole 4x4 map -> one
    # scalar per image: elementwise multiply + per-image 0/1 matmul + lane reduce.
    z = y3 * w4_ref[...]                                             # (N*4, 4*8fd) f32
    per_img = jnp.dot(p4_ref[...], z, preferred_element_type=jnp.float32)   # (N, 4*8fd)
    o_ref[...] = jnp.sum(per_img, axis=1, keepdims=True) + bias4_ref[...]   # (N, 1)


# ------------------------------ Discriminator API -------------------------------

def discriminator_forward(params, x_nchw):
    """WGAN Discriminator forward (training-mode BatchNorm), fused into one Pallas kernel."""
    N, C, H, W = map(int, x_nchw.shape)
    # Single NCHW -> channels-last slab (N*H, W*C); the only activation-side XLA glue.
    x_slab = jnp.transpose(x_nchw, (0, 2, 3, 1)).reshape(N * H, W * C).astype(jnp.bfloat16)

    args = [x_slab]
    counts = []
    Hc, Wc, Cc = H, W, C
    for li in range(4):
        w = params[f"w{li}"]
        Cout, Cin = int(w.shape[0]), int(w.shape[1])
        assert Cin == Cc
        pad = 1
        Ho = (Hc + 2 * pad - KSZ) // STR + 1
        Wo = (Wc + 2 * pad - KSZ) // STR + 1
        args.append(jnp.asarray(_row_select(N, Hc, Ho, pad), jnp.bfloat16))
        args.append(_band_weights(w, Wc, Wo, pad))
        if li == 0:
            args.append(jnp.tile(params["b0"], Wo).reshape(1, Wo * Cout).astype(jnp.float32))
        else:
            args.append(jnp.tile(params[f"g{li}"], Wo).reshape(1, Wo * Cout).astype(jnp.float32))
            args.append(jnp.tile(params[f"bt{li}"], Wo).reshape(1, Wo * Cout).astype(jnp.float32))
            R = _channel_reduce(Wo, Cout)
            args.append(jnp.asarray(R, jnp.float32))
            args.append(jnp.asarray(R.T.copy(), jnp.float32))
            counts.append(N * Ho * Wo)
        Hc, Wc, Cc = Ho, Wo, Cout

    # Final valid 4x4 conv -> (N, 1, 1, 1); the architecture implies 64x64 inputs.
    assert Hc == KSZ and Wc == KSZ, (Hc, Wc)
    w4 = params["w4"]
    w4_slab = jnp.transpose(w4[0], (1, 2, 0)).reshape(KSZ, KSZ * Cc)      # (h, w*c)
    args.append(jnp.tile(w4_slab, (N, 1)).astype(jnp.float32))            # (N*4, 4*Cc)
    pick = np.zeros((N, N * KSZ), np.float32)
    for n in range(N):
        pick[n, n * KSZ:(n + 1) * KSZ] = 1.0
    args.append(jnp.asarray(pick))
    args.append(params["b4"].reshape(1, 1).astype(jnp.float32))

    out = pl.pallas_call(
        functools.partial(_disc_kernel, counts=tuple(counts)),
        out_shape=jax.ShapeDtypeStruct((N, 1), jnp.float32),
        compiler_params=pltpu.CompilerParams(vmem_limit_bytes=32 * 1024 * 1024),
    )(*args)
    return out.reshape(N, 1, 1, 1)


def init_discriminator_params(key, img_channels, features_d):
    fd = features_d
    ks = jax.random.split(key, 8)

    def conv_w(k, cout, cin):
        return jax.random.normal(k, (cout, cin, 4, 4), jnp.float32) * 0.02

    return {
        "w0": conv_w(ks[0], fd, img_channels),
        "b0": jax.random.normal(ks[1], (fd,), jnp.float32) * 0.02,
        "w1": conv_w(ks[2], fd * 2, fd),
        "g1": jnp.ones((fd * 2,), jnp.float32), "bt1": jnp.zeros((fd * 2,), jnp.float32),
        "w2": conv_w(ks[3], fd * 4, fd * 2),
        "g2": jnp.ones((fd * 4,), jnp.float32), "bt2": jnp.zeros((fd * 4,), jnp.float32),
        "w3": conv_w(ks[4], fd * 8, fd * 4),
        "g3": jnp.ones((fd * 8,), jnp.float32), "bt3": jnp.zeros((fd * 8,), jnp.float32),
        "w4": conv_w(ks[5], 1, fd * 8),
        "b4": jax.random.normal(ks[6], (1,), jnp.float32) * 0.02,
    }


# ------------------------------- pure-JAX reference ------------------------------

def _ref_forward(params, x):
    def conv(x, w, stride, pad):
        return jax.lax.conv_general_dilated(
            x, w, (stride, stride), [(pad, pad), (pad, pad)],
            dimension_numbers=("NCHW", "OIHW", "NCHW"))

    def lrelu(v):
        return jnp.where(v > 0, v, NEG_SLOPE * v)

    def bn(v, g, b):
        mean = v.mean(axis=(0, 2, 3), keepdims=True)
        var = ((v - mean) ** 2).mean(axis=(0, 2, 3), keepdims=True)
        return (v - mean) * jax.lax.rsqrt(var + BN_EPS) * g.reshape(1, -1, 1, 1) \
            + b.reshape(1, -1, 1, 1)

    x = lrelu(conv(x, params["w0"], 2, 1) + params["b0"].reshape(1, -1, 1, 1))
    x = lrelu(bn(conv(x, params["w1"], 2, 1), params["g1"], params["bt1"]))
    x = lrelu(bn(conv(x, params["w2"], 2, 1), params["g2"], params["bt2"]))
    x = lrelu(bn(conv(x, params["w3"], 2, 1), params["g3"], params["bt3"]))
    return conv(x, params["w4"], 2, 0) + params["b4"].reshape(1, -1, 1, 1)


if __name__ == "__main__":
    # The architecture (5 stride-2 4x4 convs, last one valid) implies 64x64 inputs -> (N,1,1,1).
    batch, img_channels, features_d, spatial = 2, 3, 8, 64

    key = jax.random.PRNGKey(0)
    k_x, k_p = jax.random.split(key)
    x = jax.random.normal(k_x, (batch, img_channels, spatial, spatial), jnp.float32)
    params = init_discriminator_params(k_p, img_channels, features_d)

    fwd = jax.jit(discriminator_forward)
    out = jax.block_until_ready(fwd(params, x))

    assert out.shape == (batch, 1, 1, 1), out.shape
    assert bool(jnp.all(jnp.isfinite(out)))

    # Tolerance scaled to bf16-matmul error (f32 accumulation); tighter than before.
    ref = jax.block_until_ready(jax.jit(_ref_forward)(params, x))
    err = float(jnp.max(jnp.abs(out - ref)))
    scale = float(jnp.max(jnp.abs(ref)))
    assert err <= 0.05 * (scale + 1.0), (err, scale)

    print("KERNEL_OK")
</pallas_src>

<mosaic_0001>
module attributes {stable_mosaic.version = 11 : i64} {
  func.func @_disc_kernel(%arg0: memref<128x192xbf16, #tpu.memory_space<vmem>>, %arg1: memref<4x64x128xbf16, #tpu.memory_space<vmem>>, %arg2: memref<4x192x256xbf16, #tpu.memory_space<vmem>>, %arg3: memref<1x256xf32, #tpu.memory_space<vmem>>, %arg4: memref<4x32x64xbf16, #tpu.memory_space<vmem>>, %arg5: memref<4x256x256xbf16, #tpu.memory_space<vmem>>, %arg6: memref<1x256xf32, #tpu.memory_space<vmem>>, %arg7: memref<1x256xf32, #tpu.memory_space<vmem>>, %arg8: memref<256x16xf32, #tpu.memory_space<vmem>>, %arg9: memref<16x256xf32, #tpu.memory_space<vmem>>, %arg10: memref<4x16x32xbf16, #tpu.memory_space<vmem>>, %arg11: memref<4x256x256xbf16, #tpu.memory_space<vmem>>, %arg12: memref<1x256xf32, #tpu.memory_space<vmem>>, %arg13: memref<1x256xf32, #tpu.memory_space<vmem>>, %arg14: memref<256x32xf32, #tpu.memory_space<vmem>>, %arg15: memref<32x256xf32, #tpu.memory_space<vmem>>, %arg16: memref<4x8x16xbf16, #tpu.memory_space<vmem>>, %arg17: memref<4x256x256xbf16, #tpu.memory_space<vmem>>, %arg18: memref<1x256xf32, #tpu.memory_space<vmem>>, %arg19: memref<1x256xf32, #tpu.memory_space<vmem>>, %arg20: memref<256x64xf32, #tpu.memory_space<vmem>>, %arg21: memref<64x256xf32, #tpu.memory_space<vmem>>, %arg22: memref<8x256xf32, #tpu.memory_space<vmem>>, %arg23: memref<2x8xf32, #tpu.memory_space<vmem>>, %arg24: memref<1x1xf32, #tpu.memory_space<vmem>>, %arg25: memref<2x1xf32, #tpu.memory_space<vmem>>) attributes {dimension_semantics = [], scalar_prefetch = 0 : i64, scratch_operands = 0 : i64, tpu.core_type = #tpu.core_type<tc>} {
    %c0 = arith.constant 0 : index
    %c0_0 = arith.constant 0 : index
    %0 = vector.load %arg0[%c0, %c0_0] : memref<128x192xbf16, #tpu.memory_space<vmem>>, vector<128x192xbf16>
    %c0_1 = arith.constant 0 : index
    %c0_2 = arith.constant 0 : index
    %c0_3 = arith.constant 0 : index
    %1 = vector.load %arg1[%c0_1, %c0_2, %c0_3] : memref<4x64x128xbf16, #tpu.memory_space<vmem>>, vector<1x64x128xbf16>
    %2 = vector.shape_cast %1 : vector<1x64x128xbf16> to vector<64x128xbf16>
    %cst = arith.constant dense<0.000000e+00> : vector<64x192xf32>
    %3 = tpu.matmul %2, %0, %cst {dimension_numbers = #tpu.dot_dimension_numbers<[1], [0], [0], [1], [0, 0, 1, 1], [], []>} : vector<64x128xbf16>, vector<128x192xbf16>, vector<64x192xf32> -> vector<64x192xf32>
    %4 = arith.truncf %3 : vector<64x192xf32> to vector<64x192xbf16>
    %c0_4 = arith.constant 0 : index
    %c0_5 = arith.constant 0 : index
    %c0_6 = arith.constant 0 : index
    %5 = vector.load %arg2[%c0_4, %c0_5, %c0_6] : memref<4x192x256xbf16, #tpu.memory_space<vmem>>, vector<1x192x256xbf16>
    %6 = vector.shape_cast %5 : vector<1x192x256xbf16> to vector<192x256xbf16>
    %cst_7 = arith.constant dense<0.000000e+00> : vector<64x256xf32>
    %7 = tpu.matmul %4, %6, %cst_7 {dimension_numbers = #tpu.dot_dimension_numbers<[1], [0], [0], [1], [0, 0, 1, 1], [], []>} : vector<64x192xbf16>, vector<192x256xbf16>, vector<64x256xf32> -> vector<64x256xf32>
    %c1 = arith.constant 1 : index
    %c0_8 = arith.constant 0 : index
    %c0_9 = arith.constant 0 : index
    %8 = vector.load %arg1[%c1, %c0_8, %c0_9] : memref<4x64x128xbf16, #tpu.memory_space<vmem>>, vector<1x64x128xbf16>
    %9 = vector.shape_cast %8 : vector<1x64x128xbf16> to vector<64x128xbf16>
    %cst_10 = arith.constant dense<0.000000e+00> : vector<64x192xf32>
    %10 = tpu.matmul %9, %0, %cst_10 {dimension_numbers = #tpu.dot_dimension_numbers<[1], [0], [0], [1], [0, 0, 1, 1], [], []>} : vector<64x128xbf16>, vector<128x192xbf16>, vector<64x192xf32> -> vector<64x192xf32>
    %11 = arith.truncf %10 : vector<64x192xf32> to vector<64x192xbf16>
    %c1_11 = arith.constant 1 : index
    %c0_12 = arith.constant 0 : index
    %c0_13 = arith.constant 0 : index
    %12 = vector.load %arg2[%c1_11, %c0_12, %c0_13] : memref<4x192x256xbf16, #tpu.memory_space<vmem>>, vector<1x192x256xbf16>
    %13 = vector.shape_cast %12 : vector<1x192x256xbf16> to vector<192x256xbf16>
    %cst_14 = arith.constant dense<0.000000e+00> : vector<64x256xf32>
    %14 = tpu.matmul %11, %13, %cst_14 {dimension_numbers = #tpu.dot_dimension_numbers<[1], [0], [0], [1], [0, 0, 1, 1], [], []>} : vector<64x192xbf16>, vector<192x256xbf16>, vector<64x256xf32> -> vector<64x256xf32>
    %15 = arith.addf %7, %14 : vector<64x256xf32>
    %c2 = arith.constant 2 : index
    %c0_15 = arith.constant 0 : index
    %c0_16 = arith.constant 0 : index
    %16 = vector.load %arg1[%c2, %c0_15, %c0_16] : memref<4x64x128xbf16, #tpu.memory_space<vmem>>, vector<1x64x128xbf16>
    %17 = vector.shape_cast %16 : vector<1x64x128xbf16> to vector<64x128xbf16>
    %cst_17 = arith.constant dense<0.000000e+00> : vector<64x192xf32>
    %18 = tpu.matmul %17, %0, %cst_17 {dimension_numbers = #tpu.dot_dimension_numbers<[1], [0], [0], [1], [0, 0, 1, 1], [], []>} : vector<64x128xbf16>, vector<128x192xbf16>, vector<64x192xf32> -> vector<64x192xf32>
    %19 = arith.truncf %18 : vector<64x192xf32> to vector<64x192xbf16>
    %c2_18 = arith.constant 2 : index
    %c0_19 = arith.constant 0 : index
    %c0_20 = arith.constant 0 : index
    %20 = vector.load %arg2[%c2_18, %c0_19, %c0_20] : memref<4x192x256xbf16, #tpu.memory_space<vmem>>, vector<1x192x256xbf16>
    %21 = vector.shape_cast %20 : vector<1x192x256xbf16> to vector<192x256xbf16>
    %cst_21 = arith.constant dense<0.000000e+00> : vector<64x256xf32>
    %22 = tpu.matmul %19, %21, %cst_21 {dimension_numbers = #tpu.dot_dimension_numbers<[1], [0], [0], [1], [0, 0, 1, 1], [], []>} : vector<64x192xbf16>, vector<192x256xbf16>, vector<64x256xf32> -> vector<64x256xf32>
    %23 = arith.addf %15, %22 : vector<64x256xf32>
    %c3 = arith.constant 3 : index
    %c0_22 = arith.constant 0 : index
    %c0_23 = arith.constant 0 : index
    %24 = vector.load %arg1[%c3, %c0_22, %c0_23] : memref<4x64x128xbf16, #tpu.memory_space<vmem>>, vector<1x64x128xbf16>
    %25 = vector.shape_cast %24 : vector<1x64x128xbf16> to vector<64x128xbf16>
    %cst_24 = arith.constant dense<0.000000e+00> : vector<64x192xf32>
    %26 = tpu.matmul %25, %0, %cst_24 {dimension_numbers = #tpu.dot_dimension_numbers<[1], [0], [0], [1], [0, 0, 1, 1], [], []>} : vector<64x128xbf16>, vector<128x192xbf16>, vector<64x192xf32> -> vector<64x192xf32>
    %27 = arith.truncf %26 : vector<64x192xf32> to vector<64x192xbf16>
    %c3_25 = arith.constant 3 : index
    %c0_26 = arith.constant 0 : index
    %c0_27 = arith.constant 0 : index
    %28 = vector.load %arg2[%c3_25, %c0_26, %c0_27] : memref<4x192x256xbf16, #tpu.memory_space<vmem>>, vector<1x192x256xbf16>
    %29 = vector.shape_cast %28 : vector<1x192x256xbf16> to vector<192x256xbf16>
    %cst_28 = arith.constant dense<0.000000e+00> : vector<64x256xf32>
    %30 = tpu.matmul %27, %29, %cst_28 {dimension_numbers = #tpu.dot_dimension_numbers<[1], [0], [0], [1], [0, 0, 1, 1], [], []>} : vector<64x192xbf16>, vector<192x256xbf16>, vector<64x256xf32> -> vector<64x256xf32>
    %31 = arith.addf %23, %30 : vector<64x256xf32>
    %c0_29 = arith.constant 0 : index
    %c0_30 = arith.constant 0 : index
    %32 = vector.load %arg3[%c0_29, %c0_30] : memref<1x256xf32, #tpu.memory_space<vmem>>, vector<1x256xf32>
    %33 = vector.broadcast %32 : vector<1x256xf32> to vector<64x256xf32>
    %34 = arith.addf %31, %33 : vector<64x256xf32>
    %cst_31 = arith.constant 0.000000e+00 : f32
    %35 = vector.broadcast %cst_31 : f32 to vector<64x256xf32>
    %36 = arith.cmpf ogt, %34, %35 : vector<64x256xf32>
    %cst_32 = arith.constant 2.000000e-01 : f32
    %37 = vector.broadcast %cst_32 : f32 to vector<64x256xf32>
    %38 = arith.mulf %37, %34 : vector<64x256xf32>
    %39 = arith.select %36, %34, %38 : vector<64x256xi1>, vector<64x256xf32>
    %40 = arith.truncf %39 : vector<64x256xf32> to vector<64x256xbf16>
    %c0_33 = arith.constant 0 : index
    %c0_34 = arith.constant 0 : index
    %c0_35 = arith.constant 0 : index
    %41 = vector.load %arg4[%c0_33, %c0_34, %c0_35] : memref<4x32x64xbf16, #tpu.memory_space<vmem>>, vector<1x32x64xbf16>
    %42 = vector.shape_cast %41 : vector<1x32x64xbf16> to vector<32x64xbf16>
    %cst_36 = arith.constant dense<0.000000e+00> : vector<32x256xf32>
    %43 = tpu.matmul %42, %40, %cst_36 {dimension_numbers = #tpu.dot_dimension_numbers<[1], [0], [0], [1], [0, 0, 1, 1], [], []>} : vector<32x64xbf16>, vector<64x256xbf16>, vector<32x256xf32> -> vector<32x256xf32>
    %44 = arith.truncf %43 : vector<32x256xf32> to vector<32x256xbf16>
    %c0_37 = arith.constant 0 : index
    %c0_38 = arith.constant 0 : index
    %c0_39 = arith.constant 0 : index
    %45 = vector.load %arg5[%c0_37, %c0_38, %c0_39] : memref<4x256x256xbf16, #tpu.memory_space<vmem>>, vector<1x256x256xbf16>
    %46 = vector.shape_cast %45 : vector<1x256x256xbf16> to vector<256x256xbf16>
    %cst_40 = arith.constant dense<0.000000e+00> : vector<32x256xf32>
    %47 = tpu.matmul %44, %46, %cst_40 {dimension_numbers = #tpu.dot_dimension_numbers<[1], [0], [0], [1], [0, 0, 1, 1], [], []>} : vector<32x256xbf16>, vector<256x256xbf16>, vector<32x256xf32> -> vector<32x256xf32>
    %c1_41 = arith.constant 1 : index
    %c0_42 = arith.constant 0 : index
    %c0_43 = arith.constant 0 : index
    %48 = vector.load %arg4[%c1_41, %c0_42, %c0_43] : memref<4x32x64xbf16, #tpu.memory_space<vmem>>, vector<1x32x64xbf16>
    %49 = vector.shape_cast %48 : vector<1x32x64xbf16> to vector<32x64xbf16>
    %cst_44 = arith.constant dense<0.000000e+00> : vector<32x256xf32>
    %50 = tpu.matmul %49, %40, %cst_44 {dimension_numbers = #tpu.dot_dimension_numbers<[1], [0], [0], [1], [0, 0, 1, 1], [], []>} : vector<32x64xbf16>, vector<64x256xbf16>, vector<32x256xf32> -> vector<32x256xf32>
    %51 = arith.truncf %50 : vector<32x256xf32> to vector<32x256xbf16>
    %c1_45 = arith.constant 1 : index
    %c0_46 = arith.constant 0 : index
    %c0_47 = arith.constant 0 : index
    %52 = vector.load %arg5[%c1_45, %c0_46, %c0_47] : memref<4x256x256xbf16, #tpu.memory_space<vmem>>, vector<1x256x256xbf16>
    %53 = vector.shape_cast %52 : vector<1x256x256xbf16> to vector<256x256xbf16>
    %cst_48 = arith.constant dense<0.000000e+00> : vector<32x256xf32>
    %54 = tpu.matmul %51, %53, %cst_48 {dimension_numbers = #tpu.dot_dimension_numbers<[1], [0], [0], [1], [0, 0, 1, 1], [], []>} : vector<32x256xbf16>, vector<256x256xbf16>, vector<32x256xf32> -> vector<32x256xf32>
    %55 = arith.addf %47, %54 : vector<32x256xf32>
    %c2_49 = arith.constant 2 : index
    %c0_50 = arith.constant 0 : index
    %c0_51 = arith.constant 0 : index
    %56 = vector.load %arg4[%c2_49, %c0_50, %c0_51] : memref<4x32x64xbf16, #tpu.memory_space<vmem>>, vector<1x32x64xbf16>
    %57 = vector.shape_cast %56 : vector<1x32x64xbf16> to vector<32x64xbf16>
    %cst_52 = arith.constant dense<0.000000e+00> : vector<32x256xf32>
    %58 = tpu.matmul %57, %40, %cst_52 {dimension_numbers = #tpu.dot_dimension_numbers<[1], [0], [0], [1], [0, 0, 1, 1], [], []>} : vector<32x64xbf16>, vector<64x256xbf16>, vector<32x256xf32> -> vector<32x256xf32>
    %59 = arith.truncf %58 : vector<32x256xf32> to vector<32x256xbf16>
    %c2_53 = arith.constant 2 : index
    %c0_54 = arith.constant 0 : index
    %c0_55 = arith.constant 0 : index
    %60 = vector.load %arg5[%c2_53, %c0_54, %c0_55] : memref<4x256x256xbf16, #tpu.memory_space<vmem>>, vector<1x256x256xbf16>
    %61 = vector.shape_cast %60 : vector<1x256x256xbf16> to vector<256x256xbf16>
    %cst_56 = arith.constant dense<0.000000e+00> : vector<32x256xf32>
    %62 = tpu.matmul %59, %61, %cst_56 {dimension_numbers = #tpu.dot_dimension_numbers<[1], [0], [0], [1], [0, 0, 1, 1], [], []>} : vector<32x256xbf16>, vector<256x256xbf16>, vector<32x256xf32> -> vector<32x256xf32>
    %63 = arith.addf %55, %62 : vector<32x256xf32>
    %c3_57 = arith.constant 3 : index
    %c0_58 = arith.constant 0 : index
    %c0_59 = arith.constant 0 : index
    %64 = vector.load %arg4[%c3_57, %c0_58, %c0_59] : memref<4x32x64xbf16, #tpu.memory_space<vmem>>, vector<1x32x64xbf16>
    %65 = vector.shape_cast %64 : vector<1x32x64xbf16> to vector<32x64xbf16>
    %cst_60 = arith.constant dense<0.000000e+00> : vector<32x256xf32>
    %66 = tpu.matmul %65, %40, %cst_60 {dimension_numbers = #tpu.dot_dimension_numbers<[1], [0], [0], [1], [0, 0, 1, 1], [], []>} : vector<32x64xbf16>, vector<64x256xbf16>, vector<32x256xf32> -> vector<32x256xf32>
    %67 = arith.truncf %66 : vector<32x256xf32> to vector<32x256xbf16>
    %c3_61 = arith.constant 3 : index
    %c0_62 = arith.constant 0 : index
    %c0_63 = arith.constant 0 : index
    %68 = vector.load %arg5[%c3_61, %c0_62, %c0_63] : memref<4x256x256xbf16, #tpu.memory_space<vmem>>, vector<1x256x256xbf16>
    %69 = vector.shape_cast %68 : vector<1x256x256xbf16> to vector<256x256xbf16>
    %cst_64 = arith.constant dense<0.000000e+00> : vector<32x256xf32>
    %70 = tpu.matmul %67, %69, %cst_64 {dimension_numbers = #tpu.dot_dimension_numbers<[1], [0], [0], [1], [0, 0, 1, 1], [], []>} : vector<32x256xbf16>, vector<256x256xbf16>, vector<32x256xf32> -> vector<32x256xf32>
    %71 = arith.addf %63, %70 : vector<32x256xf32>
    %cst_65 = arith.constant dense<0.000000e+00> : vector<256xf32>
    %72 = vector.multi_reduction <add>, %71, %cst_65 [0] : vector<32x256xf32> to vector<256xf32>
    %73 = vector.shape_cast %72 : vector<256xf32> to vector<1x256xf32>
    %74 = arith.mulf %71, %71 : vector<32x256xf32>
    %cst_66 = arith.constant dense<0.000000e+00> : vector<256xf32>
    %75 = vector.multi_reduction <add>, %74, %cst_66 [0] : vector<32x256xf32> to vector<256xf32>
    %76 = vector.shape_cast %75 : vector<256xf32> to vector<1x256xf32>
    %c0_67 = arith.constant 0 : index
    %c0_68 = arith.constant 0 : index
    %77 = vector.load %arg8[%c0_67, %c0_68] : memref<256x16xf32, #tpu.memory_space<vmem>>, vector<256x16xf32>
    %cst_69 = arith.constant dense<0.000000e+00> : vector<1x16xf32>
    %78 = tpu.matmul %73, %77, %cst_69 {dimension_numbers = #tpu.dot_dimension_numbers<[1], [0], [0], [1], [0, 0, 1, 1], [], []>} : vector<1x256xf32>, vector<256x16xf32>, vector<1x16xf32> -> vector<1x16xf32>
    %cst_70 = arith.constant 0.001953125 : f32
    %79 = vector.broadcast %cst_70 : f32 to vector<1x16xf32>
    %80 = arith.mulf %78, %79 : vector<1x16xf32>
    %c0_71 = arith.constant 0 : index
    %c0_72 = arith.constant 0 : index
    %81 = vector.load %arg8[%c0_71, %c0_72] : memref<256x16xf32, #tpu.memory_space<vmem>>, vector<256x16xf32>
    %cst_73 = arith.constant dense<0.000000e+00> : vector<1x16xf32>
    %82 = tpu.matmul %76, %81, %cst_73 {dimension_numbers = #tpu.dot_dimension_numbers<[1], [0], [0], [1], [0, 0, 1, 1], [], []>} : vector<1x256xf32>, vector<256x16xf32>, vector<1x16xf32> -> vector<1x16xf32>
    %cst_74 = arith.constant 0.001953125 : f32
    %83 = vector.broadcast %cst_74 : f32 to vector<1x16xf32>
    %84 = arith.mulf %82, %83 : vector<1x16xf32>
    %85 = arith.mulf %80, %80 : vector<1x16xf32>
    %86 = arith.subf %84, %85 : vector<1x16xf32>
    %cst_75 = arith.constant 9.99999974E-6 : f32
    %87 = vector.broadcast %cst_75 : f32 to vector<1x16xf32>
    %88 = arith.addf %86, %87 : vector<1x16xf32>
    %89 = math.rsqrt %88 : vector<1x16xf32>
    %c0_76 = arith.constant 0 : index
    %c0_77 = arith.constant 0 : index
    %90 = vector.load %arg9[%c0_76, %c0_77] : memref<16x256xf32, #tpu.memory_space<vmem>>, vector<16x256xf32>
    %cst_78 = arith.constant dense<0.000000e+00> : vector<1x256xf32>
    %91 = tpu.matmul %80, %90, %cst_78 {dimension_numbers = #tpu.dot_dimension_numbers<[1], [0], [0], [1], [0, 0, 1, 1], [], []>} : vector<1x16xf32>, vector<16x256xf32>, vector<1x256xf32> -> vector<1x256xf32>
    %c0_79 = arith.constant 0 : index
    %c0_80 = arith.constant 0 : index
    %92 = vector.load %arg9[%c0_79, %c0_80] : memref<16x256xf32, #tpu.memory_space<vmem>>, vector<16x256xf32>
    %cst_81 = arith.constant dense<0.000000e+00> : vector<1x256xf32>
    %93 = tpu.matmul %89, %92, %cst_81 {dimension_numbers = #tpu.dot_dimension_numbers<[1], [0], [0], [1], [0, 0, 1, 1], [], []>} : vector<1x16xf32>, vector<16x256xf32>, vector<1x256xf32> -> vector<1x256xf32>
    %94 = vector.broadcast %91 : vector<1x256xf32> to vector<32x256xf32>
    %95 = arith.subf %71, %94 : vector<32x256xf32>
    %c0_82 = arith.constant 0 : index
    %c0_83 = arith.constant 0 : index
    %96 = vector.load %arg6[%c0_82, %c0_83] : memref<1x256xf32, #tpu.memory_space<vmem>>, vector<1x256xf32>
    %97 = arith.mulf %93, %96 : vector<1x256xf32>
    %98 = vector.broadcast %97 : vector<1x256xf32> to vector<32x256xf32>
    %99 = arith.mulf %95, %98 : vector<32x256xf32>
    %c0_84 = arith.constant 0 : index
    %c0_85 = arith.constant 0 : index
    %100 = vector.load %arg7[%c0_84, %c0_85] : memref<1x256xf32, #tpu.memory_space<vmem>>, vector<1x256xf32>
    %101 = vector.broadcast %100 : vector<1x256xf32> to vector<32x256xf32>
    %102 = arith.addf %99, %101 : vector<32x256xf32>
    %cst_86 = arith.constant 0.000000e+00 : f32
    %103 = vector.broadcast %cst_86 : f32 to vector<32x256xf32>
    %104 = arith.cmpf ogt, %102, %103 : vector<32x256xf32>
    %cst_87 = arith.constant 2.000000e-01 : f32
    %105 = vector.broadcast %cst_87 : f32 to vector<32x256xf32>
    %106 = arith.mulf %105, %102 : vector<32x256xf32>
    %107 = arith.select %104, %102, %106 : vector<32x256xi1>, vector<32x256xf32>
    %108 = arith.truncf %107 : vector<32x256xf32> to vector<32x256xbf16>
    %c0_88 = arith.constant 0 : index
    %c0_89 = arith.constant 0 : index
    %c0_90 = arith.constant 0 : index
    %109 = vector.load %arg10[%c0_88, %c0_89, %c0_90] : memref<4x16x32xbf16, #tpu.memory_space<vmem>>, vector<1x16x32xbf16>
    %110 = vector.shape_cast %109 : vector<1x16x32xbf16> to vector<16x32xbf16>
    %cst_91 = arith.constant dense<0.000000e+00> : vector<16x256xf32>
    %111 = tpu.matmul %110, %108, %cst_91 {dimension_numbers = #tpu.dot_dimension_numbers<[1], [0], [0], [1], [0, 0, 1, 1], [], []>} : vector<16x32xbf16>, vector<32x256xbf16>, vector<16x256xf32> -> vector<16x256xf32>
    %112 = arith.truncf %111 : vector<16x256xf32> to vector<16x256xbf16>
    %c0_92 = arith.constant 0 : index
    %c0_93 = arith.constant 0 : index
    %c0_94 = arith.constant 0 : index
    %113 = vector.load %arg11[%c0_92, %c0_93, %c0_94] : memref<4x256x256xbf16, #tpu.memory_space<vmem>>, vector<1x256x256xbf16>
    %114 = vector.shape_cast %113 : vector<1x256x256xbf16> to vector<256x256xbf16>
    %cst_95 = arith.constant dense<0.000000e+00> : vector<16x256xf32>
    %115 = tpu.matmul %112, %114, %cst_95 {dimension_numbers = #tpu.dot_dimension_numbers<[1], [0], [0], [1], [0, 0, 1, 1], [], []>} : vector<16x256xbf16>, vector<256x256xbf16>, vector<16x256xf32> -> vector<16x256xf32>
    %c1_96 = arith.constant 1 : index
    %c0_97 = arith.constant 0 : index
    %c0_98 = arith.constant 0 : index
    %116 = vector.load %arg10[%c1_96, %c0_97, %c0_98] : memref<4x16x32xbf16, #tpu.memory_space<vmem>>, vector<1x16x32xbf16>
    %117 = vector.shape_cast %116 : vector<1x16x32xbf16> to vector<16x32xbf16>
    %cst_99 = arith.constant dense<0.000000e+00> : vector<16x256xf32>
    %118 = tpu.matmul %117, %108, %cst_99 {dimension_numbers = #tpu.dot_dimension_numbers<[1], [0], [0], [1], [0, 0, 1, 1], [], []>} : vector<16x32xbf16>, vector<32x256xbf16>, vector<16x256xf32> -> vector<16x256xf32>
    %119 = arith.truncf %118 : vector<16x256xf32> to vector<16x256xbf16>
    %c1_100 = arith.constant 1 : index
    %c0_101 = arith.constant 0 : index
    %c0_102 = arith.constant 0 : index
    %120 = vector.load %arg11[%c1_100, %c0_101, %c0_102] : memref<4x256x256xbf16, #tpu.memory_space<vmem>>, vector<1x256x256xbf16>
    %121 = vector.shape_cast %120 : vector<1x256x256xbf16> to vector<256x256xbf16>
    %cst_103 = arith.constant dense<0.000000e+00> : vector<16x256xf32>
    %122 = tpu.matmul %119, %121, %cst_103 {dimension_numbers = #tpu.dot_dimension_numbers<[1], [0], [0], [1], [0, 0, 1, 1], [], []>} : vector<16x256xbf16>, vector<256x256xbf16>, vector<16x256xf32> -> vector<16x256xf32>
    %123 = arith.addf %115, %122 : vector<16x256xf32>
    %c2_104 = arith.constant 2 : index
    %c0_105 = arith.constant 0 : index
    %c0_106 = arith.constant 0 : index
    %124 = vector.load %arg10[%c2_104, %c0_105, %c0_106] : memref<4x16x32xbf16, #tpu.memory_space<vmem>>, vector<1x16x32xbf16>
    %125 = vector.shape_cast %124 : vector<1x16x32xbf16> to vector<16x32xbf16>
    %cst_107 = arith.constant dense<0.000000e+00> : vector<16x256xf32>
    %126 = tpu.matmul %125, %108, %cst_107 {dimension_numbers = #tpu.dot_dimension_numbers<[1], [0], [0], [1], [0, 0, 1, 1], [], []>} : vector<16x32xbf16>, vector<32x256xbf16>, vector<16x256xf32> -> vector<16x256xf32>
    %127 = arith.truncf %126 : vector<16x256xf32> to vector<16x256xbf16>
    %c2_108 = arith.constant 2 : index
    %c0_109 = arith.constant 0 : index
    %c0_110 = arith.constant 0 : index
    %128 = vector.load %arg11[%c2_108, %c0_109, %c0_110] : memref<4x256x256xbf16, #tpu.memory_space<vmem>>, vector<1x256x256xbf16>
    %129 = vector.shape_cast %128 : vector<1x256x256xbf16> to vector<256x256xbf16>
    %cst_111 = arith.constant dense<0.000000e+00> : vector<16x256xf32>
    %130 = tpu.matmul %127, %129, %cst_111 {dimension_numbers = #tpu.dot_dimension_numbers<[1], [0], [0], [1], [0, 0, 1, 1], [], []>} : vector<16x256xbf16>, vector<256x256xbf16>, vector<16x256xf32> -> vector<16x256xf32>
    %131 = arith.addf %123, %130 : vector<16x256xf32>
    %c3_112 = arith.constant 3 : index
    %c0_113 = arith.constant 0 : index
    %c0_114 = arith.constant 0 : index
    %132 = vector.load %arg10[%c3_112, %c0_113, %c0_114] : memref<4x16x32xbf16, #tpu.memory_space<vmem>>, vector<1x16x32xbf16>
    %133 = vector.shape_cast %132 : vector<1x16x32xbf16> to vector<16x32xbf16>
    %cst_115 = arith.constant dense<0.000000e+00> : vector<16x256xf32>
    %134 = tpu.matmul %133, %108, %cst_115 {dimension_numbers = #tpu.dot_dimension_numbers<[1], [0], [0], [1], [0, 0, 1, 1], [], []>} : vector<16x32xbf16>, vector<32x256xbf16>, vector<16x256xf32> -> vector<16x256xf32>
    %135 = arith.truncf %134 : vector<16x256xf32> to vector<16x256xbf16>
    %c3_116 = arith.constant 3 : index
    %c0_117 = arith.constant 0 : index
    %c0_118 = arith.constant 0 : index
    %136 = vector.load %arg11[%c3_116, %c0_117, %c0_118] : memref<4x256x256xbf16, #tpu.memory_space<vmem>>, vector<1x256x256xbf16>
    %137 = vector.shape_cast %136 : vector<1x256x256xbf16> to vector<256x256xbf16>
    %cst_119 = arith.constant dense<0.000000e+00> : vector<16x256xf32>
    %138 = tpu.matmul %135, %137, %cst_119 {dimension_numbers = #tpu.dot_dimension_numbers<[1], [0], [0], [1], [0, 0, 1, 1], [], []>} : vector<16x256xbf16>, vector<256x256xbf16>, vector<16x256xf32> -> vector<16x256xf32>
    %139 = arith.addf %131, %138 : vector<16x256xf32>
    %cst_120 = arith.constant dense<0.000000e+00> : vector<256xf32>
    %140 = vector.multi_reduction <add>, %139, %cst_120 [0] : vector<16x256xf32> to vector<256xf32>
    %141 = vector.shape_cast %140 : vector<256xf32> to vector<1x256xf32>
    %142 = arith.mulf %139, %139 : vector<16x256xf32>
    %cst_121 = arith.constant dense<0.000000e+00> : vector<256xf32>
    %143 = vector.multi_reduction <add>, %142, %cst_121 [0] : vector<16x256xf32> to vector<256xf32>
    %144 = vector.shape_cast %143 : vector<256xf32> to vector<1x256xf32>
    %c0_122 = arith.constant 0 : index
    %c0_123 = arith.constant 0 : index
    %145 = vector.load %arg14[%c0_122, %c0_123] : memref<256x32xf32, #tpu.memory_space<vmem>>, vector<256x32xf32>
    %cst_124 = arith.constant dense<0.000000e+00> : vector<1x32xf32>
    %146 = tpu.matmul %141, %145, %cst_124 {dimension_numbers = #tpu.dot_dimension_numbers<[1], [0], [0], [1], [0, 0, 1, 1], [], []>} : vector<1x256xf32>, vector<256x32xf32>, vector<1x32xf32> -> vector<1x32xf32>
    %cst_125 = arith.constant 7.812500e-03 : f32
    %147 = vector.broadcast %cst_125 : f32 to vector<1x32xf32>
    %148 = arith.mulf %146, %147 : vector<1x32xf32>
    %c0_126 = arith.constant 0 : index
    %c0_127 = arith.constant 0 : index
    %149 = vector.load %arg14[%c0_126, %c0_127] : memref<256x32xf32, #tpu.memory_space<vmem>>, vector<256x32xf32>
    %cst_128 = arith.constant dense<0.000000e+00> : vector<1x32xf32>
    %150 = tpu.matmul %144, %149, %cst_128 {dimension_numbers = #tpu.dot_dimension_numbers<[1], [0], [0], [1], [0, 0, 1, 1], [], []>} : vector<1x256xf32>, vector<256x32xf32>, vector<1x32xf32> -> vector<1x32xf32>
    %cst_129 = arith.constant 7.812500e-03 : f32
    %151 = vector.broadcast %cst_129 : f32 to vector<1x32xf32>
    %152 = arith.mulf %150, %151 : vector<1x32xf32>
    %153 = arith.mulf %148, %148 : vector<1x32xf32>
    %154 = arith.subf %152, %153 : vector<1x32xf32>
    %cst_130 = arith.constant 9.99999974E-6 : f32
    %155 = vector.broadcast %cst_130 : f32 to vector<1x32xf32>
    %156 = arith.addf %154, %155 : vector<1x32xf32>
    %157 = math.rsqrt %156 : vector<1x32xf32>
    %c0_131 = arith.constant 0 : index
    %c0_132 = arith.constant 0 : index
    %158 = vector.load %arg15[%c0_131, %c0_132] : memref<32x256xf32, #tpu.memory_space<vmem>>, vector<32x256xf32>
    %cst_133 = arith.constant dense<0.000000e+00> : vector<1x256xf32>
    %159 = tpu.matmul %148, %158, %cst_133 {dimension_numbers = #tpu.dot_dimension_numbers<[1], [0], [0], [1], [0, 0, 1, 1], [], []>} : vector<1x32xf32>, vector<32x256xf32>, vector<1x256xf32> -> vector<1x256xf32>
    %c0_134 = arith.constant 0 : index
    %c0_135 = arith.constant 0 : index
    %160 = vector.load %arg15[%c0_134, %c0_135] : memref<32x256xf32, #tpu.memory_space<vmem>>, vector<32x256xf32>
    %cst_136 = arith.constant dense<0.000000e+00> : vector<1x256xf32>
    %161 = tpu.matmul %157, %160, %cst_136 {dimension_numbers = #tpu.dot_dimension_numbers<[1], [0], [0], [1], [0, 0, 1, 1], [], []>} : vector<1x32xf32>, vector<32x256xf32>, vector<1x256xf32> -> vector<1x256xf32>
    %162 = vector.broadcast %159 : vector<1x256xf32> to vector<16x256xf32>
    %163 = arith.subf %139, %162 : vector<16x256xf32>
    %c0_137 = arith.constant 0 : index
    %c0_138 = arith.constant 0 : index
    %164 = vector.load %arg12[%c0_137, %c0_138] : memref<1x256xf32, #tpu.memory_space<vmem>>, vector<1x256xf32>
    %165 = arith.mulf %161, %164 : vector<1x256xf32>
    %166 = vector.broadcast %165 : vector<1x256xf32> to vector<16x256xf32>
    %167 = arith.mulf %163, %166 : vector<16x256xf32>
    %c0_139 = arith.constant 0 : index
    %c0_140 = arith.constant 0 : index
    %168 = vector.load %arg13[%c0_139, %c0_140] : memref<1x256xf32, #tpu.memory_space<vmem>>, vector<1x256xf32>
    %169 = vector.broadcast %168 : vector<1x256xf32> to vector<16x256xf32>
    %170 = arith.addf %167, %169 : vector<16x256xf32>
    %cst_141 = arith.constant 0.000000e+00 : f32
    %171 = vector.broadcast %cst_141 : f32 to vector<16x256xf32>
    %172 = arith.cmpf ogt, %170, %171 : vector<16x256xf32>
    %cst_142 = arith.constant 2.000000e-01 : f32
    %173 = vector.broadcast %cst_142 : f32 to vector<16x256xf32>
    %174 = arith.mulf %173, %170 : vector<16x256xf32>
    %175 = arith.select %172, %170, %174 : vector<16x256xi1>, vector<16x256xf32>
    %176 = arith.truncf %175 : vector<16x256xf32> to vector<16x256xbf16>
    %c0_143 = arith.constant 0 : index
    %c0_144 = arith.constant 0 : index
    %c0_145 = arith.constant 0 : index
    %177 = vector.load %arg16[%c0_143, %c0_144, %c0_145] : memref<4x8x16xbf16, #tpu.memory_space<vmem>>, vector<1x8x16xbf16>
    %178 = vector.shape_cast %177 : vector<1x8x16xbf16> to vector<8x16xbf16>
    %cst_146 = arith.constant dense<0.000000e+00> : vector<8x256xf32>
    %179 = tpu.matmul %178, %176, %cst_146 {dimension_numbers = #tpu.dot_dimension_numbers<[1], [0], [0], [1], [0, 0, 1, 1], [], []>} : vector<8x16xbf16>, vector<16x256xbf16>, vector<8x256xf32> -> vector<8x256xf32>
    %180 = arith.truncf %179 : vector<8x256xf32> to vector<8x256xbf16>
    %c0_147 = arith.constant 0 : index
    %c0_148 = arith.constant 0 : index
    %c0_149 = arith.constant 0 : index
    %181 = vector.load %arg17[%c0_147, %c0_148, %c0_149] : memref<4x256x256xbf16, #tpu.memory_space<vmem>>, vector<1x256x256xbf16>
    %182 = vector.shape_cast %181 : vector<1x256x256xbf16> to vector<256x256xbf16>
    %cst_150 = arith.constant dense<0.000000e+00> : vector<8x256xf32>
    %183 = tpu.matmul %180, %182, %cst_150 {dimension_numbers = #tpu.dot_dimension_numbers<[1], [0], [0], [1], [0, 0, 1, 1], [], []>} : vector<8x256xbf16>, vector<256x256xbf16>, vector<8x256xf32> -> vector<8x256xf32>
    %c1_151 = arith.constant 1 : index
    %c0_152 = arith.constant 0 : index
    %c0_153 = arith.constant 0 : index
    %184 = vector.load %arg16[%c1_151, %c0_152, %c0_153] : memref<4x8x16xbf16, #tpu.memory_space<vmem>>, vector<1x8x16xbf16>
    %185 = vector.shape_cast %184 : vector<1x8x16xbf16> to vector<8x16xbf16>
    %cst_154 = arith.constant dense<0.000000e+00> : vector<8x256xf32>
    %186 = tpu.matmul %185, %176, %cst_154 {dimension_numbers = #tpu.dot_dimension_numbers<[1], [0], [0], [1], [0, 0, 1, 1], [], []>} : vector<8x16xbf16>, vector<16x256xbf16>, vector<8x256xf32> -> vector<8x256xf32>
    %187 = arith.truncf %186 : vector<8x256xf32> to vector<8x256xbf16>
    %c1_155 = arith.constant 1 : index
    %c0_156 = arith.constant 0 : index
    %c0_157 = arith.constant 0 : index
    %188 = vector.load %arg17[%c1_155, %c0_156, %c0_157] : memref<4x256x256xbf16, #tpu.memory_space<vmem>>, vector<1x256x256xbf16>
    %189 = vector.shape_cast %188 : vector<1x256x256xbf16> to vector<256x256xbf16>
    %cst_158 = arith.constant dense<0.000000e+00> : vector<8x256xf32>
    %190 = tpu.matmul %187, %189, %cst_158 {dimension_numbers = #tpu.dot_dimension_numbers<[1], [0], [0], [1], [0, 0, 1, 1], [], []>} : vector<8x256xbf16>, vector<256x256xbf16>, vector<8x256xf32> -> vector<8x256xf32>
    %191 = arith.addf %183, %190 : vector<8x256xf32>
    %c2_159 = arith.constant 2 : index
    %c0_160 = arith.constant 0 : index
    %c0_161 = arith.constant 0 : index
    %192 = vector.load %arg16[%c2_159, %c0_160, %c0_161] : memref<4x8x16xbf16, #tpu.memory_space<vmem>>, vector<1x8x16xbf16>
    %193 = vector.shape_cast %192 : vector<1x8x16xbf16> to vector<8x16xbf16>
    %cst_162 = arith.constant dense<0.000000e+00> : vector<8x256xf32>
    %194 = tpu.matmul %193, %176, %cst_162 {dimension_numbers = #tpu.dot_dimension_numbers<[1], [0], [0], [1], [0, 0, 1, 1], [], []>} : vector<8x16xbf16>, vector<16x256xbf16>, vector<8x256xf32> -> vector<8x256xf32>
    %195 = arith.truncf %194 : vector<8x256xf32> to vector<8x256xbf16>
    %c2_163 = arith.constant 2 : index
    %c0_164 = arith.constant 0 : index
    %c0_165 = arith.constant 0 : index
    %196 = vector.load %arg17[%c2_163, %c0_164, %c0_165] : memref<4x256x256xbf16, #tpu.memory_space<vmem>>, vector<1x256x256xbf16>
    %197 = vector.shape_cast %196 : vector<1x256x256xbf16> to vector<256x256xbf16>
    %cst_166 = arith.constant dense<0.000000e+00> : vector<8x256xf32>
    %198 = tpu.matmul %195, %197, %cst_166 {dimension_numbers = #tpu.dot_dimension_numbers<[1], [0], [0], [1], [0, 0, 1, 1], [], []>} : vector<8x256xbf16>, vector<256x256xbf16>, vector<8x256xf32> -> vector<8x256xf32>
    %199 = arith.addf %191, %198 : vector<8x256xf32>
    %c3_167 = arith.constant 3 : index
    %c0_168 = arith.constant 0 : index
    %c0_169 = arith.constant 0 : index
    %200 = vector.load %arg16[%c3_167, %c0_168, %c0_169] : memref<4x8x16xbf16, #tpu.memory_space<vmem>>, vector<1x8x16xbf16>
    %201 = vector.shape_cast %200 : vector<1x8x16xbf16> to vector<8x16xbf16>
    %cst_170 = arith.constant dense<0.000000e+00> : vector<8x256xf32>
    %202 = tpu.matmul %201, %176, %cst_170 {dimension_numbers = #tpu.dot_dimension_numbers<[1], [0], [0], [1], [0, 0, 1, 1], [], []>} : vector<8x16xbf16>, vector<16x256xbf16>, vector<8x256xf32> -> vector<8x256xf32>
    %203 = arith.truncf %202 : vector<8x256xf32> to vector<8x256xbf16>
    %c3_171 = arith.constant 3 : index
    %c0_172 = arith.constant 0 : index
    %c0_173 = arith.constant 0 : index
    %204 = vector.load %arg17[%c3_171, %c0_172, %c0_173] : memref<4x256x256xbf16, #tpu.memory_space<vmem>>, vector<1x256x256xbf16>
    %205 = vector.shape_cast %204 : vector<1x256x256xbf16> to vector<256x256xbf16>
    %cst_174 = arith.constant dense<0.000000e+00> : vector<8x256xf32>
    %206 = tpu.matmul %203, %205, %cst_174 {dimension_numbers = #tpu.dot_dimension_numbers<[1], [0], [0], [1], [0, 0, 1, 1], [], []>} : vector<8x256xbf16>, vector<256x256xbf16>, vector<8x256xf32> -> vector<8x256xf32>
    %207 = arith.addf %199, %206 : vector<8x256xf32>
    %cst_175 = arith.constant dense<0.000000e+00> : vector<256xf32>
    %208 = vector.multi_reduction <add>, %207, %cst_175 [0] : vector<8x256xf32> to vector<256xf32>
    %209 = vector.shape_cast %208 : vector<256xf32> to vector<1x256xf32>
    %210 = arith.mulf %207, %207 : vector<8x256xf32>
    %cst_176 = arith.constant dense<0.000000e+00> : vector<256xf32>
    %211 = vector.multi_reduction <add>, %210, %cst_176 [0] : vector<8x256xf32> to vector<256xf32>
    %212 = vector.shape_cast %211 : vector<256xf32> to vector<1x256xf32>
    %c0_177 = arith.constant 0 : index
    %c0_178 = arith.constant 0 : index
    %213 = vector.load %arg20[%c0_177, %c0_178] : memref<256x64xf32, #tpu.memory_space<vmem>>, vector<256x64xf32>
    %cst_179 = arith.constant dense<0.000000e+00> : vector<1x64xf32>
    %214 = tpu.matmul %209, %213, %cst_179 {dimension_numbers = #tpu.dot_dimension_numbers<[1], [0], [0], [1], [0, 0, 1, 1], [], []>} : vector<1x256xf32>, vector<256x64xf32>, vector<1x64xf32> -> vector<1x64xf32>
    %cst_180 = arith.constant 3.125000e-02 : f32
    %215 = vector.broadcast %cst_180 : f32 to vector<1x64xf32>
    %216 = arith.mulf %214, %215 : vector<1x64xf32>
    %c0_181 = arith.constant 0 : index
    %c0_182 = arith.constant 0 : index
    %217 = vector.load %arg20[%c0_181, %c0_182] : memref<256x64xf32, #tpu.memory_space<vmem>>, vector<256x64xf32>
    %cst_183 = arith.constant dense<0.000000e+00> : vector<1x64xf32>
    %218 = tpu.matmul %212, %217, %cst_183 {dimension_numbers = #tpu.dot_dimension_numbers<[1], [0], [0], [1], [0, 0, 1, 1], [], []>} : vector<1x256xf32>, vector<256x64xf32>, vector<1x64xf32> -> vector<1x64xf32>
    %cst_184 = arith.constant 3.125000e-02 : f32
    %219 = vector.broadcast %cst_184 : f32 to vector<1x64xf32>
    %220 = arith.mulf %218, %219 : vector<1x64xf32>
    %221 = arith.mulf %216, %216 : vector<1x64xf32>
    %222 = arith.subf %220, %221 : vector<1x64xf32>
    %cst_185 = arith.constant 9.99999974E-6 : f32
    %223 = vector.broadcast %cst_185 : f32 to vector<1x64xf32>
    %224 = arith.addf %222, %223 : vector<1x64xf32>
    %225 = math.rsqrt %224 : vector<1x64xf32>
    %c0_186 = arith.constant 0 : index
    %c0_187 = arith.constant 0 : index
    %226 = vector.load %arg21[%c0_186, %c0_187] : memref<64x256xf32, #tpu.memory_space<vmem>>, vector<64x256xf32>
    %cst_188 = arith.constant dense<0.000000e+00> : vector<1x256xf32>
    %227 = tpu.matmul %216, %226, %cst_188 {dimension_numbers = #tpu.dot_dimension_numbers<[1], [0], [0], [1], [0, 0, 1, 1], [], []>} : vector<1x64xf32>, vector<64x256xf32>, vector<1x256xf32> -> vector<1x256xf32>
    %c0_189 = arith.constant 0 : index
    %c0_190 = arith.constant 0 : index
    %228 = vector.load %arg21[%c0_189, %c0_190] : memref<64x256xf32, #tpu.memory_space<vmem>>, vector<64x256xf32>
    %cst_191 = arith.constant dense<0.000000e+00> : vector<1x256xf32>
    %229 = tpu.matmul %225, %228, %cst_191 {dimension_numbers = #tpu.dot_dimension_numbers<[1], [0], [0], [1], [0, 0, 1, 1], [], []>} : vector<1x64xf32>, vector<64x256xf32>, vector<1x256xf32> -> vector<1x256xf32>
    %230 = vector.broadcast %227 : vector<1x256xf32> to vector<8x256xf32>
    %231 = arith.subf %207, %230 : vector<8x256xf32>
    %c0_192 = arith.constant 0 : index
    %c0_193 = arith.constant 0 : index
    %232 = vector.load %arg18[%c0_192, %c0_193] : memref<1x256xf32, #tpu.memory_space<vmem>>, vector<1x256xf32>
    %233 = arith.mulf %229, %232 : vector<1x256xf32>
    %234 = vector.broadcast %233 : vector<1x256xf32> to vector<8x256xf32>
    %235 = arith.mulf %231, %234 : vector<8x256xf32>
    %c0_194 = arith.constant 0 : index
    %c0_195 = arith.constant 0 : index
    %236 = vector.load %arg19[%c0_194, %c0_195] : memref<1x256xf32, #tpu.memory_space<vmem>>, vector<1x256xf32>
    %237 = vector.broadcast %236 : vector<1x256xf32> to vector<8x256xf32>
    %238 = arith.addf %235, %237 : vector<8x256xf32>
    %cst_196 = arith.constant 0.000000e+00 : f32
    %239 = vector.broadcast %cst_196 : f32 to vector<8x256xf32>
    %240 = arith.cmpf ogt, %238, %239 : vector<8x256xf32>
    %cst_197 = arith.constant 2.000000e-01 : f32
    %241 = vector.broadcast %cst_197 : f32 to vector<8x256xf32>
    %242 = arith.mulf %241, %238 : vector<8x256xf32>
    %243 = arith.select %240, %238, %242 : vector<8x256xi1>, vector<8x256xf32>
    %c0_198 = arith.constant 0 : index
    %c0_199 = arith.constant 0 : index
    %244 = vector.load %arg22[%c0_198, %c0_199] : memref<8x256xf32, #tpu.memory_space<vmem>>, vector<8x256xf32>
    %245 = arith.mulf %243, %244 : vector<8x256xf32>
    %c0_200 = arith.constant 0 : index
    %c0_201 = arith.constant 0 : index
    %246 = vector.load %arg23[%c0_200, %c0_201] : memref<2x8xf32, #tpu.memory_space<vmem>>, vector<2x8xf32>
    %cst_202 = arith.constant dense<0.000000e+00> : vector<2x256xf32>
    %247 = tpu.matmul %246, %245, %cst_202 {dimension_numbers = #tpu.dot_dimension_numbers<[1], [0], [0], [1], [0, 0, 1, 1], [], []>} : vector<2x8xf32>, vector<8x256xf32>, vector<2x256xf32> -> vector<2x256xf32>
    %cst_203 = arith.constant dense<0.000000e+00> : vector<2xf32>
    %248 = vector.multi_reduction <add>, %247, %cst_203 [1] : vector<2x256xf32> to vector<2xf32>
    %249 = vector.shape_cast %248 : vector<2xf32> to vector<2x1xf32>
    %c0_204 = arith.constant 0 : index
    %c0_205 = arith.constant 0 : index
    %250 = vector.load %arg24[%c0_204, %c0_205] : memref<1x1xf32, #tpu.memory_space<vmem>>, vector<1x1xf32>
    %251 = vector.broadcast %250 : vector<1x1xf32> to vector<2x1xf32>
    %252 = arith.addf %249, %251 : vector<2x1xf32>
    %c0_206 = arith.constant 0 : index
    %c0_207 = arith.constant 0 : index
    %253 = vector.load %arg25[%c0_206, %c0_207] : memref<2x1xf32, #tpu.memory_space<vmem>>, vector<2x1xf32>
    tpu.vector_store %arg25[%c0_206, %c0_207], %252 {strides = array<i32>} : memref<2x1xf32, #tpu.memory_space<vmem>>, vector<2x1xf32>,
    return
  }
}

</mosaic_0001>

<bundles_post_ra>
// kernel: tile.77
= control target key start
LH: loop header
LB: loop body
LE: loop exit
PB: predicated region body
PF: predicated region fallthrough
CT: control target
= control target key end

     0   :  { %s76_s0 = inlined_call_operand.vmem [shape: f32[2,4,256], index: 0, kind: input, shape index: {}]   ;;  %s77_s1 = inlined_call_operand.vmem [shape: f32[8,256], index: 1, kind: output, shape index: {}]  }
   0x1   :  { %v36_v0 = vld [vmem:[%s76_s0 + $0xc] sm:$0xf]  ;;  %v37_v1 = vld [vmem:[%s76_s0 + $0x8] sm:$0xf]  ;;  %v38_v2 = vld [vmem:[%s76_s0 + $0x4] sm:$0xf] }
   0x2   :  { %8 = vst [vmem:[#allocation0 + $0x18] sm:$0xf] %v36_v0  ;;  %13 = vst [vmem:[#allocation0 + $0x10] sm:$0xf] %v37_v1  ;;  %v18_v3 = vld [vmem:[%s76_s0] sm:$0xf] }
   0x3   :  { %17 = vst [vmem:[#allocation0 + $0x8] sm:$0xf] %v38_v2  ;;  %19 = vst [vmem:[#allocation0] sm:$0xf] %v18_v3 }
   0x9   :  { %v27_v5 = vld [vmem:[#allocation0 + $0x10] sm:$0xf]   ;;  %v31_v6 = vld [vmem:[#allocation0 + $0x18] sm:$0xf]  }
   0xa   :  { %v23_v4 = vld [vmem:[#allocation0 + $0x8] sm:$0xf]   ;;  %v20_v7 = vld [vmem:[#allocation0] sm:$0xf]   ;;  %40 = vst [vmem:[%s77_s1 + $0x4] sm:$0xf] %v27_v5  }
   0xb   :  { %39 = vst [vmem:[%s77_s1 + $0x8] sm:$0xf] %v23_v4   ;;  %41 = vst [vmem:[%s77_s1 + $0xc] sm:$0xf] %v31_v6  }
   0xc   :  { %21 = vst [vmem:[%s77_s1] sm:$0xf] %v20_v7  }

// kernel: tile.42
= control target key start
LH: loop header
LB: loop body
LE: loop exit
PB: predicated region body
PF: predicated region fallthrough
CT: control target
= control target key end

     0   :  { %s40_s0 = inlined_call_operand.vmem [shape: f32[8], index: 0, kind: input, shape index: {}]   ;;  %s41_s1 = inlined_call_operand.vmem [shape: f32[32,8], index: 1, kind: output, shape index: {}]  }
   0x1   :  { %v4_v0 = vld [vmem:[%s40_s0] ss:$0 sm:$0xff] }
   0x2   :  { %5 = vst [vmem:[%s41_s1] sm:$0xff] %v4_v0  ;;  %12 = vst [vmem:[%s41_s1 + $0x8] sm:$0xff] %v4_v0 }
   0x3   :  { %13 = vst [vmem:[%s41_s1 + $0x10] sm:$0xff] %v4_v0  ;;  %14 = vst [vmem:[%s41_s1 + $0x18] sm:$0xff] %v4_v0 }

// kernel: tile.43
= control target key start
LH: loop header
LB: loop body
LE: loop exit
PB: predicated region body
PF: predicated region fallthrough
CT: control target
= control target key end

     0   :  { %s7_s6 = smov 3  ;;  %s21_s9 = smov 3  ;;  %vm4_vm0 = vcmask 64512   ;;  %vm11_vm1 = vcmask 1048512   ;;  %vm18_vm2 = vcmask 982912   ;;  %vm25_vm3 = vcmask 917312   ;;  %s232_s0 = inlined_call_operand.vmem [shape: f32[32,8], index: 0, kind: input, shape index: {}]   ;;  %s233_s1 = inlined_call_operand.vmem [shape: f32[1,256], index: 1, kind: output, shape index: {}]  }
   0x1   :  { %v122_v0 = vld [vmem:[%s232_s0 + $0xf] ss:$16 sm:%s7_s6]   ;;  %s153_s10 = smov 120   ;;  %v124_v1 = vld [vmem:[%s232_s0 + $0xd] ss:$16 sm:%s21_s9]   ;;  %s14_s13 = smov 3 }
   0x2   :  { %9 = vrot.lane.b32.xlu0 %v122_v0, %s153_s10  ;;  %s154_s14 = smov 104   ;;  %v123_v2 = vld [vmem:[%s232_s0 + $0xe] ss:$16 sm:%s14_s13]   ;;  %s28_s17 = smov 3  ;;  %vm32_vm4 = vcmask 851712   ;;  %vm39_vm5 = vcmask 786112  }
   0x3   :  { %23 = vrot.lane.b32.xlu1 %v124_v1, %s154_s14  ;;  %v125_v3 = vld [vmem:[%s232_s0 + $0xc] ss:$16 sm:%s28_s17]   ;;  %s35_s20 = smov 3  ;;  %s42_s21 = smov 3  ;;  %vm46_vm6 = vcmask 720512   ;;  %vm53_vm7 = vcmask 654912  }
   0x4   :  { %s155_s22 = smov 112   ;;  %s156_s23 = smov 96   ;;  %v126_v4 = vld [vmem:[%s232_s0 + $0xb] ss:$16 sm:%s35_s20]   ;;  %v127_v5 = vld [vmem:[%s232_s0 + $0xa] ss:$16 sm:%s42_s21]  }
   0x5   :  { %s49_s28 = smov 3  ;;  %s56_s29 = smov 3  ;;  %vm60_vm8 = vcmask 589312   ;;  %vm67_vm9 = vcmask 523712   ;;  %vm74_vm10 = vcmask 458112   ;;  %vm81_vm11 = vcmask 392512  }
   0x6   :  { %16 = vrot.lane.b32.xlu0 %v123_v2, %s155_s22  ;;  %s157_s30 = smov 88   ;;  %s158_s2 = smov 80   ;;  %v128_v6 = vld [vmem:[%s232_s0 + $0x9] ss:$16 sm:%s49_s28]   ;;  %vm88_vm12 = vcmask 326912   ;;  %vm95_vm13 = vcmask 261312  }
   0x7   :  { %30 = vrot.lane.b32.xlu1 %v125_v3, %s156_s23  ;;  %v129_v7 = vld [vmem:[%s232_s0 + $0x8] ss:$16 sm:%s56_s29]   ;;  %s63_s7 = smov 3  ;;  %s70_s8 = smov 3  ;;  %vm102_vm14 = vcmask 195712   ;;  %vm109_vm15 = vcmask 130112  }
   0x8   :  { %s159_s9 = smov 72   ;;  %s160_s10 = smov 64   ;;  %v130_v8 = vld [vmem:[%s232_s0 + $0x7] ss:$16 sm:%s63_s7]   ;;  %v131_v9 = vld [vmem:[%s232_s0 + $0x6] ss:$16 sm:%s70_s8]  }
   0x9   :  { %s2_s13 = smov 3  ;;  %s77_s16 = smov 3 }
   0xa   :  { %37 = vrot.lane.b32.xlu0 %v126_v4, %s157_s30  ;;  %v3_v10 = vld [vmem:[%s232_s0] ss:$16 sm:%s2_s13]   ;;  %s84_s19 = smov 3  ;;  %s161_s20 = smov 56  }
   0xb   :  { %44 = vrot.lane.b32.xlu1 %v127_v5, %s158_s2  ;;  %5 = vst.msk [vmem:[#allocation0] ss:$8 sm:$0x3] %vm4_vm0, %v3_v10   ;;  %s162_s21 = smov 48   ;;  %v132_v11 = vld [vmem:[%s232_s0 + $0x5] ss:$16 sm:%s77_s16]  }
   0xc   :  { %v133_v12 = vld [vmem:[%s232_s0 + $0x4] ss:$16 sm:%s84_s19]   ;;  %s91_s26 = smov 3  ;;  %s98_s27 = smov 3 }
   0xd   :  { %s163_s28 = smov 40   ;;  %s164_s29 = smov 32   ;;  %v134_v13 = vld [vmem:[%s232_s0 + $0x3] ss:$16 sm:%s91_s26]   ;;  %v135_v14 = vld [vmem:[%s232_s0 + $0x2] ss:$16 sm:%s98_s27]  }
   0xe   :  { %51 = vrot.lane.b32.xlu0 %v128_v6, %s159_s9  ;;  %s105_s5 = smov 3  ;;  %s165_s6 = smov 24  }
   0xf   :  { %58 = vrot.lane.b32.xlu1 %v129_v7, %s160_s10  ;;  %s166_s7 = smov 16   ;;  %v136_v15 = vld [vmem:[%s232_s0 + $0x1] ss:$16 sm:%s105_s5]   ;;  %s167_s0 = smov 8  }
  0x12   :  { %65 = vrot.lane.b32.xlu0 %v130_v8, %s161_s20 }
  0x13   :  { %72 = vrot.lane.b32.xlu1 %v131_v9, %s162_s21 }
  0x16   :  { %79 = vrot.lane.b32.xlu0 %v132_v11, %s163_s28 }
  0x17   :  { %86 = vrot.lane.b32.xlu1 %v133_v12, %s164_s29 }
  0x1a   :  { %93 = vrot.lane.b32.xlu0 %v134_v13, %s165_s6 }
  0x1b   :  { %100 = vrot.lane.b32.xlu1 %v135_v14, %s166_s7 }
  0x1e   :  { %107 = vrot.lane.b32.xlu0 %v136_v15, %s167_s0 }
  0x74   :  { %v10_v16 = vpop.permute.xlu0 %9  }
  0x75   :  { %12 = vst.msk [vmem:[#allocation0] ss:$8 sm:$0x3] %vm11_vm1, %v10_v16   ;;  %v24_v17 = vpop.permute.xlu1 %23  }
  0x78   :  { %v17_v18 = vpop.permute.xlu0 %16  }
  0x79   :  { %19 = vst.msk [vmem:[#allocation0] ss:$8 sm:$0x3] %vm18_vm2, %v17_v18   ;;  %v31_v19 = vpop.permute.xlu1 %30  }
  0x7a   :  { %26 = vst.msk [vmem:[#allocation0] ss:$8 sm:$0x3] %vm25_vm3, %v24_v17  }
  0x7b   :  { %33 = vst.msk [vmem:[#allocation0] ss:$8 sm:$0x3] %vm32_vm4, %v31_v19  }
  0x7c   :  { %v38_v20 = vpop.permute.xlu0 %37  }
  0x7d   :  { %40 = vst.msk [vmem:[#allocation0] ss:$8 sm:$0x3] %vm39_vm5, %v38_v20   ;;  %v45_v21 = vpop.permute.xlu1 %44  }
  0x7e   :  { %47 = vst.msk [vmem:[#allocation0] ss:$8 sm:$0x3] %vm46_vm6, %v45_v21  }
  0x80   :  { %v52_v22 = vpop.permute.xlu0 %51  }
  0x81   :  { %54 = vst.msk [vmem:[#allocation0] ss:$8 sm:$0x3] %vm53_vm7, %v52_v22   ;;  %v59_v23 = vpop.permute.xlu1 %58  }
  0x82   :  { %61 = vst.msk [vmem:[#allocation0] ss:$8 sm:$0x3] %vm60_vm8, %v59_v23  }
  0x84   :  { %v66_v24 = vpop.permute.xlu0 %65  }
  0x85   :  { %68 = vst.msk [vmem:[#allocation0] ss:$8 sm:$0x3] %vm67_vm9, %v66_v24   ;;  %v73_v25 = vpop.permute.xlu1 %72  }
  0x86   :  { %75 = vst.msk [vmem:[#allocation0] ss:$8 sm:$0x3] %vm74_vm10, %v73_v25  }
  0x88   :  { %v80_v26 = vpop.permute.xlu0 %79  }
  0x89   :  { %82 = vst.msk [vmem:[#allocation0] ss:$8 sm:$0x3] %vm81_vm11, %v80_v26   ;;  %v87_v27 = vpop.permute.xlu1 %86  }
  0x8a   :  { %89 = vst.msk [vmem:[#allocation0] ss:$8 sm:$0x3] %vm88_vm12, %v87_v27  }
  0x8c   :  { %v94_v28 = vpop.permute.xlu0 %93  }
  0x8d   :  { %96 = vst.msk [vmem:[#allocation0] ss:$8 sm:$0x3] %vm95_vm13, %v94_v28   ;;  %v101_v29 = vpop.permute.xlu1 %100  }
  0x8e   :  { %103 = vst.msk [vmem:[#allocation0] ss:$8 sm:$0x3] %vm102_vm14, %v101_v29  }
  0x90   :  { %v108_v30 = vpop.permute.xlu0 %107  }
  0x91   :  { %110 = vst.msk [vmem:[#allocation0] ss:$8 sm:$0x3] %vm109_vm15, %v108_v30  }
  0x98   :  { %v114_v31 = vld [vmem:[#allocation0] sm:$0x1]  ;;  %v118_v32 = vld [vmem:[#allocation0 + $0x8] sm:$0x1] }
  0x99   :  { %116 = vst [vmem:[%s233_s1] sm:$0x1] %v114_v31  ;;  %137 = vst [vmem:[%s233_s1 + $0x1] sm:$0x1] %v118_v32 }

// kernel: tile.47
= control target key start
LH: loop header
LB: loop body
LE: loop exit
PB: predicated region body
PF: predicated region fallthrough
CT: control target
= control target key end

     0   :  { %s28_s0 = inlined_call_operand.vmem [shape: f32[16], index: 0, kind: input, shape index: {}]   ;;  %s29_s1 = inlined_call_operand.vmem [shape: f32[16,16], index: 1, kind: output, shape index: {}]  }
   0x1   :  { %v4_v0 = vld [vmem:[%s28_s0] ss:$0 sm:$0xff] }
   0x2   :  { %5 = vst [vmem:[%s29_s1] sm:$0xff] %v4_v0  ;;  %8 = vst [vmem:[%s29_s1 + $0x8] sm:$0xff] %v4_v0 }

// kernel: tile.48
= control target key start
LH: loop header
LB: loop body
LE: loop exit
PB: predicated region body
PF: predicated region fallthrough
CT: control target
= control target key end

     0   :  { %s7_s6 = smov 3  ;;  %s21_s9 = smov 3  ;;  %vm4_vm0 = vcmask 130048   ;;  %vm11_vm1 = vcmask 1048448   ;;  %vm18_vm2 = vcmask 917248   ;;  %vm25_vm3 = vcmask 786048   ;;  %s128_s0 = inlined_call_operand.vmem [shape: f32[16,16], index: 0, kind: input, shape index: {}]   ;;  %s129_s1 = inlined_call_operand.vmem [shape: f32[1,256], index: 1, kind: output, shape index: {}]  }
   0x1   :  { %v66_v0 = vld [vmem:[%s128_s0 + $0x7] ss:$8 sm:%s7_s6]   ;;  %s81_s10 = smov 112   ;;  %v68_v1 = vld [vmem:[%s128_s0 + $0x5] ss:$8 sm:%s21_s9]   ;;  %s14_s13 = smov 3 }
   0x2   :  { %9 = vrot.lane.b32.xlu0 %v66_v0, %s81_s10  ;;  %s82_s14 = smov 80   ;;  %v67_v2 = vld [vmem:[%s128_s0 + $0x6] ss:$8 sm:%s14_s13]   ;;  %s28_s17 = smov 3  ;;  %vm32_vm4 = vcmask 654848   ;;  %vm39_vm5 = vcmask 523648  }
   0x3   :  { %23 = vrot.lane.b32.xlu1 %v68_v1, %s82_s14  ;;  %v69_v3 = vld [vmem:[%s128_s0 + $0x4] ss:$8 sm:%s28_s17]   ;;  %s35_s20 = smov 3  ;;  %s42_s21 = smov 3  ;;  %vm46_vm6 = vcmask 392448   ;;  %vm53_vm7 = vcmask 261248  }
   0x4   :  { %s83_s22 = smov 96   ;;  %s84_s23 = smov 64   ;;  %v70_v4 = vld [vmem:[%s128_s0 + $0x3] ss:$8 sm:%s35_s20]   ;;  %v71_v5 = vld [vmem:[%s128_s0 + $0x2] ss:$8 sm:%s42_s21]  }
   0x5   :  { %s2_s26 = smov 3  ;;  %s49_s29 = smov 3 }
   0x6   :  { %16 = vrot.lane.b32.xlu0 %v67_v2, %s83_s22  ;;  %v3_v6 = vld [vmem:[%s128_s0] ss:$8 sm:%s2_s26]   ;;  %s85_s3 = smov 48   ;;  %s86_s4 = smov 32  }
   0x7   :  { %30 = vrot.lane.b32.xlu1 %v69_v3, %s84_s23  ;;  %5 = vst.msk [vmem:[#allocation0] ss:$8 sm:$0x3] %vm4_vm0, %v3_v6   ;;  %v72_v7 = vld [vmem:[%s128_s0 + $0x1] ss:$8 sm:%s49_s29]   ;;  %s87_s0 = smov 16  }
   0xa   :  { %37 = vrot.lane.b32.xlu0 %v70_v4, %s85_s3 }
   0xb   :  { %44 = vrot.lane.b32.xlu1 %v71_v5, %s86_s4 }
   0xe   :  { %51 = vrot.lane.b32.xlu0 %v72_v7, %s87_s0 }
  0x74   :  { %v10_v8 = vpop.permute.xlu0 %9  }
  0x75   :  { %12 = vst.msk [vmem:[#allocation0] ss:$8 sm:$0x3] %vm11_vm1, %v10_v8   ;;  %v24_v9 = vpop.permute.xlu1 %23  }
  0x78   :  { %v17_v10 = vpop.permute.xlu0 %16  }
  0x79   :  { %19 = vst.msk [vmem:[#allocation0] ss:$8 sm:$0x3] %vm18_vm2, %v17_v10   ;;  %v31_v11 = vpop.permute.xlu1 %30  }
  0x7a   :  { %26 = vst.msk [vmem:[#allocation0] ss:$8 sm:$0x3] %vm25_vm3, %v24_v9  }
  0x7b   :  { %33 = vst.msk [vmem:[#allocation0] ss:$8 sm:$0x3] %vm32_vm4, %v31_v11  }
  0x7c   :  { %v38_v12 = vpop.permute.xlu0 %37  }
  0x7d   :  { %40 = vst.msk [vmem:[#allocation0] ss:$8 sm:$0x3] %vm39_vm5, %v38_v12   ;;  %v45_v13 = vpop.permute.xlu1 %44  }
  0x7e   :  { %47 = vst.msk [vmem:[#allocation0] ss:$8 sm:$0x3] %vm46_vm6, %v45_v13  }
  0x80   :  { %v52_v14 = vpop.permute.xlu0 %51  }
  0x81   :  { %54 = vst.msk [vmem:[#allocation0] ss:$8 sm:$0x3] %vm53_vm7, %v52_v14  }
  0x88   :  { %v58_v15 = vld [vmem:[#allocation0] sm:$0x1]  ;;  %v62_v16 = vld [vmem:[#allocation0 + $0x8] sm:$0x1] }
  0x89   :  { %60 = vst [vmem:[%s129_s1] sm:$0x1] %v58_v15  ;;  %73 = vst [vmem:[%s129_s1 + $0x1] sm:$0x1] %v62_v16 }

// kernel: tile.57
= control target key start
LH: loop header
LB: loop body
LE: loop exit
PB: predicated region body
PF: predicated region fallthrough
CT: control target
= control target key end

     0   :  { %s22_s0 = inlined_call_operand.vmem [shape: f32[32], index: 0, kind: input, shape index: {}]   ;;  %s23_s1 = inlined_call_operand.vmem [shape: f32[8,32], index: 1, kind: output, shape index: {}]  }
   0x1   :  { %v4_v0 = vld [vmem:[%s22_s0] ss:$0 sm:$0xff] }
   0x2   :  { %5 = vst [vmem:[%s23_s1] sm:$0xff] %v4_v0 }

// kernel: tile.58
= control target key start
LH: loop header
LB: loop body
LE: loop exit
PB: predicated region body
PF: predicated region fallthrough
CT: control target
= control target key end

     0   :  { %s7_s6 = smov 3  ;;  %s14_s9 = smov 3  ;;  %vm4_vm0 = vcmask 261120   ;;  %vm11_vm1 = vcmask 1048320   ;;  %vm18_vm2 = vcmask 785920   ;;  %vm25_vm3 = vcmask 523520   ;;  %s76_s0 = inlined_call_operand.vmem [shape: f32[8,32], index: 0, kind: input, shape index: {}]   ;;  %s77_s1 = inlined_call_operand.vmem [shape: f32[1,256], index: 1, kind: output, shape index: {}]  }
   0x1   :  { %v38_v0 = vld [vmem:[%s76_s0 + $0x3] ss:$4 sm:%s7_s6]   ;;  %s45_s10 = smov 96   ;;  %s21_s11 = smov 3  ;;  %v39_v1 = vld [vmem:[%s76_s0 + $0x2] ss:$4 sm:%s14_s9]  }
   0x2   :  { %9 = vrot.lane.b32.xlu0 %v38_v0, %s45_s10  ;;  %v40_v2 = vld [vmem:[%s76_s0 + $0x1] ss:$4 sm:%s21_s11]   ;;  %s2_s16 = smov 3  ;;  %s46_s17 = smov 32  }
   0x3   :  { %23 = vrot.lane.b32.xlu1 %v40_v2, %s46_s17  ;;  %v3_v3 = vld [vmem:[%s76_s0] ss:$4 sm:%s2_s16]   ;;  %s47_s0 = smov 64  }
   0x4   :  { %5 = vst.msk [vmem:[#allocation0] ss:$8 sm:$0x3] %vm4_vm0, %v3_v3  }
   0x6   :  { %16 = vrot.lane.b32.xlu0 %v39_v1, %s47_s0 }
  0x74   :  { %v10_v4 = vpop.permute.xlu0 %9  }
  0x75   :  { %12 = vst.msk [vmem:[#allocation0] ss:$8 sm:$0x3] %vm11_vm1, %v10_v4   ;;  %v24_v5 = vpop.permute.xlu1 %23  }
  0x78   :  { %v17_v6 = vpop.permute.xlu0 %16  }
  0x79   :  { %19 = vst.msk [vmem:[#allocation0] ss:$8 sm:$0x3] %vm18_vm2, %v17_v6  }
  0x7a   :  { %26 = vst.msk [vmem:[#allocation0] ss:$8 sm:$0x3] %vm25_vm3, %v24_v5  }
  0x81   :  { %v30_v7 = vld [vmem:[#allocation0] sm:$0x1]  ;;  %v34_v8 = vld [vmem:[#allocation0 + $0x8] sm:$0x1] }
  0x82   :  { %32 = vst [vmem:[%s77_s1] sm:$0x1] %v30_v7  ;;  %41 = vst [vmem:[%s77_s1 + $0x1] sm:$0x1] %v34_v8 }

// kernel: tile.67
= control target key start
LH: loop header
LB: loop body
LE: loop exit
PB: predicated region body
PF: predicated region fallthrough
CT: control target
= control target key end

     0   :  { %s22_s0 = inlined_call_operand.vmem [shape: f32[64], index: 0, kind: input, shape index: {}]   ;;  %s23_s1 = inlined_call_operand.vmem [shape: f32[4,64], index: 1, kind: output, shape index: {}]  }
   0x1   :  { %v4_v0 = vld [vmem:[%s22_s0] ss:$0 sm:$0xff] }
   0x2   :  { %5 = vst [vmem:[%s23_s1] sm:$0xf] %v4_v0 }

// kernel: tile.68
= control target key start
LH: loop header
LB: loop body
LE: loop exit
PB: predicated region body
PF: predicated region fallthrough
CT: control target
= control target key end

     0   :  { %s6_s8 = smov 3  ;;  %vm8_vm0 = vcmask 523264   ;;  %s30_s9 = smov 64   ;;  %vm15_vm1 = vcmask 1048064   ;;  %s50_s0 = inlined_call_operand.vmem [shape: f32[4,64], index: 0, kind: input, shape index: {}]   ;;  %s51_s1 = inlined_call_operand.vmem [shape: f32[1,256], index: 1, kind: output, shape index: {}]  }
   0x1   :  { %v4_v0 = vld [vmem:[%s50_s0] sm:$0xf]  ;;  %s11_s0 = smov 3 }
   0x2   :  { %5 = vst [vmem:[#allocation1] sm:$0xf] %v4_v0 }
   0x9   :  { %v12_v1 = vld [vmem:[#allocation1 + $0x1] ss:$2 sm:%s11_s0]   ;;  %v7_v2 = vld [vmem:[#allocation1] ss:$2 sm:%s6_s8]  }
   0xa   :  { %13 = vrot.lane.b32.xlu0 %v12_v1, %s30_s9  ;;  %9 = vst.msk [vmem:[#allocation0] ss:$8 sm:$0x3] %vm8_vm0, %v7_v2  }
  0x7c   :  { %v14_v3 = vpop.permute.xlu0 %13  }
  0x7d   :  { %16 = vst.msk [vmem:[#allocation0] ss:$8 sm:$0x3] %vm15_vm1, %v14_v3  }
  0x84   :  { %v20_v4 = vld [vmem:[#allocation0] sm:$0x1]  ;;  %v24_v5 = vld [vmem:[#allocation0 + $0x8] sm:$0x1] }
  0x85   :  { %22 = vst [vmem:[%s51_s1] sm:$0x1] %v20_v4  ;;  %28 = vst [vmem:[%s51_s1 + $0x1] sm:$0x1] %v24_v5 }

// kernel: discriminator_forward.1
= control target key start
LH: loop header
LB: loop body
LE: loop exit
PB: predicated region body
PF: predicated region fallthrough
CT: control target
= control target key end

     0   :  { %v9013_v1 = vmov 0   ;;  %vm575_vm0 = vcmask 523264   ;;  %s12042_s0 = inlined_call_operand.vmem [shape: bf16[128,192], index: 0, kind: input, shape index: {}]   ;;  %s12043_s1 = inlined_call_operand.vmem [shape: bf16[4,64,128], index: 1, kind: input, shape index: {}]   ;;  %s12044_s2 = inlined_call_operand.vmem [shape: bf16[4,192,256], index: 2, kind: input, shape index: {}]   ;;  %s12045_s4 = inlined_call_operand.vmem [shape: bf16[4,32,64], index: 4, kind: input, shape index: {}]   ;;  %s12046_s5 = inlined_call_operand.vmem [shape: bf16[4,256,256], index: 5, kind: input, shape index: {}]   ;;  %s12047_s3 = inlined_call_operand.vmem [shape: f32[1,256], index: 3, kind: input, shape index: {}]   ;;  %s12048_s8 = inlined_call_operand.vmem [shape: f32[256,16], index: 8, kind: input, shape index: {}]   ;;  %s12049_s9 = inlined_call_operand.vmem [shape: f32[16,256], index: 9, kind: input, shape index: {}]   ;;  %s12050_s10 = inlined_call_operand.vmem [shape: bf16[4,16,32], index: 10, kind: input, shape index: {}]   ;;  %s12051_s11 = inlined_call_operand.vmem [shape: bf16[4,256,256], index: 11, kind: input, shape index: {}]   ;;  %s12052_s6 = inlined_call_operand.vmem [shape: f32[1,256], index: 6, kind: input, shape index: {}]   ;;  %s12053_s7 = inlined_call_operand.vmem [shape: f32[1,256], index: 7, kind: input, shape index: {}]   ;;  %s12054_s14 = inlined_call_operand.vmem [shape: f32[256,32], index: 14, kind: input, shape index: {}]   ;;  %s12055_s15 = inlined_call_operand.vmem [shape: f32[32,256], index: 15, kind: input, shape index: {}]   ;;  %s12056_s17 = inlined_call_operand.vmem [shape: bf16[4,256,256], index: 17, kind: input, shape index: {}]   ;;  %s12057_s12 = inlined_call_operand.vmem [shape: f32[1,256], index: 12, kind: input, shape index: {}]   ;;  %s12058_s13 = inlined_call_operand.vmem [shape: f32[1,256], index: 13, kind: input, shape index: {}]   ;;  %s12059_s16 = inlined_call_operand.vmem [shape: bf16[4,8,16], index: 16, kind: input, shape index: {}]   ;;  %s12060_s20 = inlined_call_operand.vmem [shape: f32[256,64], index: 20, kind: input, shape index: {}]   ;;  %s12061_s21 = inlined_call_operand.vmem [shape: f32[64,256], index: 21, kind: input, shape index: {}]   ;;  %s12062_s18 = inlined_call_operand.vmem [shape: f32[1,256], index: 18, kind: input, shape index: {}]   ;;  %s12063_s19 = inlined_call_operand.vmem [shape: f32[1,256], index: 19, kind: input, shape index: {}]   ;;  %s12064_s22 = inlined_call_operand.vmem [shape: f32[8,256], index: 22, kind: input, shape index: {}]   ;;  %s12065_s23 = inlined_call_operand.vmem [shape: f32[2,8], index: 23, kind: input, shape index: {}]   ;;  %s12066_s24 = inlined_call_operand.<no memory space> [shape: f32[1,1], index: 24, kind: input, shape index: {}]   ;;  %s12067_s25 = inlined_call_operand.vmem [shape: f32[2,1], index: 25, kind: output, shape index: {}]  }
   0x1   :  { %12077 = sst [smem:[#allocation3_spill]] %s12042_s0  ;;  %381 = vmatprep.mubr.bf16.mxu1 %v9013_v1  ;;  %243 = vmatprep.mubr.bf16.mxu0 %v9013_v1 }
   0x2   :  { %12078 = sst [smem:[#allocation4_spill]] %s12043_s1 }
   0x3   :  { %12079 = sst [smem:[#allocation5_spill]] %s12044_s2 }
   0x4   :  { %12080 = sst [smem:[#allocation6_spill]] %s12045_s4  ;;  %s12088_s1 = sld [smem:[#allocation5_spill]] }
   0x5   :  { %12081 = sst [smem:[#allocation7_spill]] %s12046_s5  ;;  %s12089_s5 = sld [smem:[#allocation4_spill]] }
   0x6   :  { %12082 = sst [smem:[#allocation8_spill]] %s12047_s3  ;;  %s12091_s29 = sld [smem:[#allocation7_spill]] }
   0x7   :  { %12083 = sst [smem:[#allocation9_spill]] %s12048_s8  ;;  %s12087_s8 = sld [smem:[#allocation3_spill]] }
   0x8   :  { %12084 = sst [smem:[#allocation10_spill]] %s12049_s9  ;;  %s12092_s9 = sld [smem:[#allocation6_spill]] }
   0x9   :  { %12085 = sst [smem:[#allocation11_spill]] %s12050_s10  ;;  %s12093_s3 = sld [smem:[#allocation9_spill]] }
   0xa   :  { %12086 = sst [smem:[#allocation12_spill]] %s12051_s11  ;;  %v8277_v17 = vld [vmem:[%s12088_s1 + $0xc4] ss:$8 sps:$4 sm:$0xff]   ;;  %v8275_v20 = vld [vmem:[%s12088_s1 + $0xc0] ss:$8 sps:$4 sm:$0xff]   ;;  %s12094_s0 = sld [smem:[#allocation10_spill]] }
   0xb   :  { %v8259_v18 = vld [vmem:[%s12089_s5 + $0x20] sm:$0xff]   ;;  %v8280_v21 = vld [vmem:[%s12088_s1 + $0xd4] ss:$8 sps:$4 sm:$0xff]   ;;  %v8278_v22 = vld [vmem:[%s12088_s1 + $0xd0] ss:$8 sps:$4 sm:$0xff]   ;;  %s12095_s11 = sld [smem:[#allocation11_spill]] }
   0xc   :  { %v8263_v19 = vld [vmem:[%s12089_s5] sm:$0xff]   ;;  %v8260_v23 = vld [vmem:[%s12089_s5 + $0x28] sm:$0xff]   ;;  %v8286_v27 = vld [vmem:[%s12088_s1 + $0xf4] ss:$8 sps:$4 sm:$0xff]   ;;  %s12096_s2 = sld [smem:[#allocation12_spill]] }
   0xd   :  { %v9148_v0 = vld [vmem:[%s12087_s8 + $0x4] ss:$8 sps:$4 sm:$0xff]   ;;  %v9155_v2 = vld [vmem:[%s12087_s8] ss:$8 sps:$4 sm:$0xff]   ;;  %v9161_v3 = vld [vmem:[%s12087_s8 + $0x14] ss:$8 sps:$4 sm:$0xff]  }
   0xe   :  { %349 = vmatprep.subr.bf16.mxu1 %v9148_v0  ;;  %211 = vmatprep.subr.bf16.mxu0 %v9148_v0  ;;  %v9168_v4 = vld [vmem:[%s12087_s8 + $0x10] ss:$8 sps:$4 sm:$0xff]   ;;  %v9175_v5 = vld [vmem:[%s12087_s8 + $0x24] ss:$8 sps:$4 sm:$0xff]   ;;  %v9182_v6 = vld [vmem:[%s12087_s8 + $0x20] ss:$8 sps:$4 sm:$0xff]  }
   0xf   :  { %350 = vmatpush1.bf16.msra.mxu1 %v9155_v2  ;;  %212 = vmatpush1.bf16.msra.mxu0 %v9155_v2  ;;  %v9189_v7 = vld [vmem:[%s12087_s8 + $0x34] ss:$8 sps:$4 sm:$0xff]   ;;  %v9196_v8 = vld [vmem:[%s12087_s8 + $0x30] ss:$8 sps:$4 sm:$0xff]   ;;  %v9203_v9 = vld [vmem:[%s12087_s8 + $0x44] ss:$8 sps:$4 sm:$0xff]  }
  0x10   :  { %351 = vmatprep.subr.bf16.mxu1 %v9161_v3  ;;  %213 = vmatprep.subr.bf16.mxu0 %v9161_v3  ;;  %v9210_v10 = vld [vmem:[%s12087_s8 + $0x40] ss:$8 sps:$4 sm:$0xff]   ;;  %v9217_v11 = vld [vmem:[%s12087_s8 + $0x54] ss:$8 sps:$4 sm:$0xff]   ;;  %v9224_v12 = vld [vmem:[%s12087_s8 + $0x50] ss:$8 sps:$4 sm:$0xff]  }
  0x11   :  { %v9231_v13 = vld [vmem:[%s12087_s8 + $0x64] ss:$8 sps:$4 sm:$0xff]   ;;  %v9238_v14 = vld [vmem:[%s12087_s8 + $0x60] ss:$8 sps:$4 sm:$0xff]   ;;  %v9245_v15 = vld [vmem:[%s12087_s8 + $0x74] ss:$8 sps:$4 sm:$0xff]  }
  0x12   :  { %v9252_v16 = vld [vmem:[%s12087_s8 + $0x70] ss:$8 sps:$4 sm:$0xff]   ;;  %v8264_v24 = vld [vmem:[%s12089_s5 + $0x8] sm:$0xff]   ;;  %v8292_v35 = vld [vmem:[%s12088_s1 + $0x114] ss:$8 sps:$4 sm:$0xff]   ;;  %s12090_s8 = sld [smem:[#allocation8_spill]] }
  0x13   :  { %352 = vmatpush1.bf16.msra.mxu1 %v9168_v4  ;;  %214 = vmatpush1.bf16.msra.mxu0 %v9168_v4  ;;  %v8281_v25 = vld [vmem:[%s12088_s1 + $0xe0] ss:$8 sps:$4 sm:$0xff]   ;;  %v8283_v26 = vld [vmem:[%s12088_s1 + $0xe4] ss:$8 sps:$4 sm:$0xff]   ;;  %v8261_v28 = vld [vmem:[%s12089_s5 + $0x30] sm:$0xff]  }
  0x14   :  { %353 = vmatprep.subr.bf16.mxu1 %v9175_v5  ;;  %215 = vmatprep.subr.bf16.mxu0 %v9175_v5  ;;  %v8265_v29 = vld [vmem:[%s12089_s5 + $0x10] sm:$0xff]   ;;  %v8289_v31 = vld [vmem:[%s12088_s1 + $0x104] ss:$8 sps:$4 sm:$0xff]   ;;  %v8287_v32 = vld [vmem:[%s12088_s1 + $0x100] ss:$8 sps:$4 sm:$0xff]  }
  0x15   :  { %v8284_v30 = vld [vmem:[%s12088_s1 + $0xf0] ss:$8 sps:$4 sm:$0xff]   ;;  %v8295_v37 = vld [vmem:[%s12088_s1 + $0x124] ss:$8 sps:$4 sm:$0xff]   ;;  %v8293_v38 = vld [vmem:[%s12088_s1 + $0x120] ss:$8 sps:$4 sm:$0xff]  }
  0x16   :  { %v8262_v33 = vld [vmem:[%s12089_s5 + $0x38] sm:$0xff]   ;;  %v8267_v39 = vld [vmem:[%s12089_s5 + $0x40] sm:$0xff]   ;;  %v8268_v44 = vld [vmem:[%s12089_s5 + $0x48] sm:$0xff]  }
  0x17   :  { %354 = vmatpush1.bf16.msra.mxu1 %v9182_v6  ;;  %216 = vmatpush1.bf16.msra.mxu0 %v9182_v6  ;;  %v8266_v34 = vld [vmem:[%s12089_s5 + $0x18] sm:$0xff]   ;;  %v8301_v42 = vld [vmem:[%s12088_s1 + $0x144] ss:$8 sps:$4 sm:$0xff]   ;;  %v8299_v43 = vld [vmem:[%s12088_s1 + $0x140] ss:$8 sps:$4 sm:$0xff]  }
  0x18   :  { %355 = vmatprep.subr.bf16.mxu1 %v9189_v7  ;;  %217 = vmatprep.subr.bf16.mxu0 %v9189_v7  ;;  %v8290_v36 = vld [vmem:[%s12088_s1 + $0x110] ss:$8 sps:$4 sm:$0xff]   ;;  %v8298_v40 = vld [vmem:[%s12088_s1 + $0x134] ss:$8 sps:$4 sm:$0xff]   ;;  %v8307_v47 = vld [vmem:[%s12088_s1 + $0x164] ss:$8 sps:$4 sm:$0xff]  }
  0x19   :  { %v8296_v41 = vld [vmem:[%s12088_s1 + $0x130] ss:$8 sps:$4 sm:$0xff]   ;;  %v8304_v45 = vld [vmem:[%s12088_s1 + $0x154] ss:$8 sps:$4 sm:$0xff]   ;;  %v8305_v48 = vld [vmem:[%s12088_s1 + $0x160] ss:$8 sps:$4 sm:$0xff]  }
  0x1a   :  { %v8302_v46 = vld [vmem:[%s12088_s1 + $0x150] ss:$8 sps:$4 sm:$0xff]   ;;  %v8271_v51 = vld [vmem:[%s12089_s5 + $0x60] sm:$0xff]   ;;  %v8272_v52 = vld [vmem:[%s12089_s5 + $0x68] sm:$0xff]  }
  0x1b   :  { %356 = vmatpush1.bf16.msra.mxu1 %v9196_v8  ;;  %218 = vmatpush1.bf16.msra.mxu0 %v9196_v8  ;;  %v8269_v49 = vld [vmem:[%s12089_s5 + $0x50] sm:$0xff]   ;;  %v8270_v50 = vld [vmem:[%s12089_s5 + $0x58] sm:$0xff]   ;;  %v8313_v57 = vld [vmem:[%s12088_s1 + $0x4] ss:$8 sps:$4 sm:$0xff]  }
  0x1c   :  { %357 = vmatprep.subr.bf16.mxu1 %v9203_v9  ;;  %219 = vmatprep.subr.bf16.mxu0 %v9203_v9  ;;  %v8273_v53 = vld [vmem:[%s12089_s5 + $0x70] sm:$0xff]   ;;  %v8274_v55 = vld [vmem:[%s12089_s5 + $0x78] sm:$0xff]  }
  0x1d   :  { %v8310_v54 = vld [vmem:[%s12088_s1 + $0x174] ss:$8 sps:$4 sm:$0xff]   ;;  %v8308_v56 = vld [vmem:[%s12088_s1 + $0x170] ss:$8 sps:$4 sm:$0xff]  }
  0x1f   :  { %358 = vmatpush1.bf16.msra.mxu1 %v9210_v10  ;;  %220 = vmatpush1.bf16.msra.mxu0 %v9210_v10 }
  0x20   :  { %359 = vmatprep.subr.bf16.mxu1 %v9217_v11  ;;  %221 = vmatprep.subr.bf16.mxu0 %v9217_v11 }
  0x23   :  { %360 = vmatpush1.bf16.msra.mxu1 %v9224_v12  ;;  %222 = vmatpush1.bf16.msra.mxu0 %v9224_v12 }
  0x24   :  { %361 = vmatprep.subr.bf16.mxu1 %v9231_v13  ;;  %223 = vmatprep.subr.bf16.mxu0 %v9231_v13 }
  0x27   :  { %362 = vmatpush1.bf16.msra.mxu1 %v9238_v14  ;;  %224 = vmatpush1.bf16.msra.mxu0 %v9238_v14 }
  0x28   :  { %363 = vmatprep.subr.bf16.mxu1 %v9245_v15  ;;  %225 = vmatprep.subr.bf16.mxu0 %v9245_v15 }
  0x2b   :  { %364 = vmatpush1.bf16.msra.mxu1 %v9252_v16  ;;  %226 = vmatpush1.bf16.msra.mxu0 %v9252_v16 }
  0x2c   :  { %899 = vmatprep.subr.bf16.mxu1 %v9148_v0  ;;  %588 = vmatprep.subr.bf16.mxu0 %v8277_v17 }
  0x2e   :  { %382 = vmatmul.mubr.bf16.vlgmr.msra.gmra.mrb[0].mxu1 %v8259_v18  ;;  %244 = vmatmul.mubr.bf16.vlgmr.msra.gmra.mrb[0].mxu0 %v8263_v19 }
  0x2f   :  { %391 = vmatprep.mubr.bf16.mxu1 %v9013_v1  ;;  %900 = vmatpush1.bf16.msra.mxu1 %v9155_v2 }
  0x30   :  { %901 = vmatprep.subr.bf16.mxu1 %v9161_v3  ;;  %253 = vmatprep.mubr.bf16.mxu0 %v9013_v1 }
  0x31   :  { %589 = vmatpush1.bf16.msra.mxu0 %v8275_v20 }
  0x32   :  { %590 = vmatprep.subr.bf16.mxu0 %v8280_v21  ;;  %v8317_v21 = vld [vmem:[%s12088_s1 + $0x20] ss:$8 sps:$4 sm:$0xff]  }
  0x33   :  { %902 = vmatpush1.bf16.msra.mxu1 %v9168_v4 }
  0x34   :  { %903 = vmatprep.subr.bf16.mxu1 %v9175_v5 }
  0x35   :  { %591 = vmatpush1.bf16.msra.mxu0 %v8278_v22 }
  0x36   :  { %392 = vmatmul.mubr.bf16.gmra.mrb[4].mxu1 %v8260_v23  ;;  %254 = vmatmul.mubr.bf16.gmra.mrb[4].mxu0 %v8264_v24  ;;  %v8322_v24 = vld [vmem:[%s12088_s1 + $0x34] ss:$8 sps:$4 sm:$0xff]  }
  0x37   :  { %401 = vmatprep.mubr.bf16.mxu1 %v9013_v1  ;;  %904 = vmatpush1.bf16.msra.mxu1 %v9182_v6 }
  0x38   :  { %905 = vmatprep.subr.bf16.mxu1 %v9189_v7  ;;  %263 = vmatprep.mubr.bf16.mxu0 %v9013_v1 }
  0x39   :  { %592 = vmatprep.subr.bf16.mxu0 %v8283_v26 }
  0x3a   :  { %593 = vmatpush1.bf16.msra.mxu0 %v8281_v25  ;;  %v8320_v25 = vld [vmem:[%s12088_s1 + $0x30] ss:$8 sps:$4 sm:$0xff]  }
  0x3b   :  { %906 = vmatpush1.bf16.msra.mxu1 %v9196_v8  ;;  %594 = vmatprep.subr.bf16.mxu0 %v8286_v27 }
  0x3c   :  { %907 = vmatprep.subr.bf16.mxu1 %v9203_v9 }
  0x3e   :  { %402 = vmatmul.mubr.bf16.gmra.mrb[8].mxu1 %v8261_v28  ;;  %264 = vmatmul.mubr.bf16.gmra.mrb[8].mxu0 %v8265_v29  ;;  %v8325_v28 = vld [vmem:[%s12088_s1 + $0x44] ss:$8 sps:$4 sm:$0xff]  }
  0x3f   :  { %411 = vmatprep.mubr.bf16.mxu1 %v9013_v1  ;;  %908 = vmatpush1.bf16.msra.mxu1 %v9210_v10 }
  0x40   :  { %909 = vmatprep.subr.bf16.mxu1 %v9217_v11  ;;  %273 = vmatprep.mubr.bf16.mxu0 %v9013_v1 }
  0x41   :  { %595 = vmatpush1.bf16.msra.mxu0 %v8284_v30 }
  0x42   :  { %596 = vmatprep.subr.bf16.mxu0 %v8289_v31 }
  0x43   :  { %910 = vmatpush1.bf16.msra.mxu1 %v9224_v12 }
  0x44   :  { %911 = vmatprep.subr.bf16.mxu1 %v9231_v13 }
  0x45   :  { %597 = vmatpush1.bf16.msra.mxu0 %v8287_v32 }
  0x46   :  { %412 = vmatmul.mubr.bf16.gmra.mrb[12].mxu1 %v8262_v33  ;;  %274 = vmatmul.mubr.bf16.gmra.mrb[12].mxu0 %v8266_v34 }
  0x47   :  { %912 = vmatpush1.bf16.msra.mxu1 %v9238_v14  ;;  %931 = vmatprep.mubr.bf16.mxu1 %v9013_v1 }
  0x48   :  { %913 = vmatprep.subr.bf16.mxu1 %v9245_v15  ;;  %598 = vmatprep.subr.bf16.mxu0 %v8292_v35 }
  0x49   :  { %599 = vmatpush1.bf16.msra.mxu0 %v8290_v36 }
  0x4a   :  { %600 = vmatprep.subr.bf16.mxu0 %v8295_v37  ;;  %v8323_v37 = vld [vmem:[%s12088_s1 + $0x40] ss:$8 sps:$4 sm:$0xff]  }
  0x4b   :  { %914 = vmatpush1.bf16.msra.mxu1 %v9252_v16 }
  0x4c   :  { %1259 = vmatprep.subr.bf16.mxu1 %v9148_v0 }
  0x4d   :  { %601 = vmatpush1.bf16.msra.mxu0 %v8293_v38 }
  0x4e   :  { %932 = vmatmul.mubr.bf16.vlgmr.msra.gmra.mrb[16].mxu1 %v8267_v39  ;;  %602 = vmatprep.subr.bf16.mxu0 %v8298_v40  ;;  %v8328_v40 = vld [vmem:[%s12088_s1 + $0x54] ss:$8 sps:$4 sm:$0xff]  }
  0x4f   :  { %1260 = vmatpush1.bf16.msra.mxu1 %v9155_v2  ;;  %941 = vmatprep.mubr.bf16.mxu1 %v9013_v1 }
  0x50   :  { %1261 = vmatprep.subr.bf16.mxu1 %v9161_v3 }
  0x51   :  { %603 = vmatpush1.bf16.msra.mxu0 %v8296_v41  ;;  %v8326_v41 = vld [vmem:[%s12088_s1 + $0x50] ss:$8 sps:$4 sm:$0xff]  }
  0x52   :  { %604 = vmatprep.subr.bf16.mxu0 %v8301_v42 }
  0x53   :  { %1262 = vmatpush1.bf16.msra.mxu1 %v9168_v4 }
  0x54   :  { %1263 = vmatprep.subr.bf16.mxu1 %v9175_v5 }
  0x55   :  { %605 = vmatpush1.bf16.msra.mxu0 %v8299_v43 }
  0x56   :  { %942 = vmatmul.mubr.bf16.gmra.mrb[20].mxu1 %v8268_v44  ;;  %606 = vmatprep.subr.bf16.mxu0 %v8304_v45  ;;  %v8331_v44 = vld [vmem:[%s12088_s1 + $0x64] ss:$8 sps:$4 sm:$0xff]  }
  0x57   :  { %1264 = vmatpush1.bf16.msra.mxu1 %v9182_v6  ;;  %951 = vmatprep.mubr.bf16.mxu1 %v9013_v1  ;;  %v8311_v6 = vld [vmem:[%s12088_s1] ss:$8 sps:$4 sm:$0xff]  }
  0x58   :  { %1265 = vmatprep.subr.bf16.mxu1 %v9189_v7 }
  0x59   :  { %607 = vmatpush1.bf16.msra.mxu0 %v8302_v46 }
  0x5a   :  { %608 = vmatprep.subr.bf16.mxu0 %v8307_v47 }
  0x5b   :  { %1266 = vmatpush1.bf16.msra.mxu1 %v9196_v8  ;;  %v8316_v8 = vld [vmem:[%s12088_s1 + $0x14] ss:$8 sps:$4 sm:$0xff]  }
  0x5c   :  { %1267 = vmatprep.subr.bf16.mxu1 %v9203_v9  ;;  %v8314_v9 = vld [vmem:[%s12088_s1 + $0x10] ss:$8 sps:$4 sm:$0xff]  }
  0x5d   :  { %609 = vmatpush1.bf16.msra.mxu0 %v8305_v48 }
  0x5e   :  { %952 = vmatmul.mubr.bf16.gmra.mrb[24].mxu1 %v8269_v49  ;;  %610 = vmatprep.subr.bf16.mxu0 %v8310_v54 }
  0x5f   :  { %1268 = vmatpush1.bf16.msra.mxu1 %v9210_v10  ;;  %961 = vmatprep.mubr.bf16.mxu1 %v9013_v1 }
  0x60   :  { %1269 = vmatprep.subr.bf16.mxu1 %v9217_v11 }
  0x61   :  { %611 = vmatpush1.bf16.msra.mxu0 %v8308_v56  ;;  %v8334_v56 = vld [vmem:[%s12088_s1 + $0x74] ss:$8 sps:$4 sm:$0xff]  }
  0x62   :  { %793 = vmatprep.subr.bf16.mxu0 %v8313_v57  ;;  %v8332_v57 = vld [vmem:[%s12088_s1 + $0x70] ss:$8 sps:$4 sm:$0xff]  }
  0x63   :  { %1270 = vmatpush1.bf16.msra.mxu1 %v9224_v12  ;;  %v8319_v12 = vld [vmem:[%s12088_s1 + $0x24] ss:$8 sps:$4 sm:$0xff]  }
  0x64   :  { %1271 = vmatprep.subr.bf16.mxu1 %v9231_v13 }
  0x66   :  { %962 = vmatmul.mubr.bf16.gmra.mrb[28].mxu1 %v8270_v50 }
  0x67   :  { %1272 = vmatpush1.bf16.msra.mxu1 %v9238_v14  ;;  %1291 = vmatprep.mubr.bf16.mxu1 %v9013_v1 }
  0x68   :  { %1273 = vmatprep.subr.bf16.mxu1 %v9245_v15 }
  0x6b   :  { %1274 = vmatpush1.bf16.msra.mxu1 %v9252_v16 }
  0x6e   :  { %1292 = vmatmul.mubr.bf16.vlgmr.msra.gmra.mrb[32].mxu1 %v8271_v51 }
  0x6f   :  { %1301 = vmatprep.mubr.bf16.mxu1 %v9013_v1 }
  0x76   :  { %1302 = vmatmul.mubr.bf16.gmra.mrb[36].mxu1 %v8272_v52 }
  0x77   :  { %1311 = vmatprep.mubr.bf16.mxu1 %v9013_v1 }
  0x7e   :  { %1312 = vmatmul.mubr.bf16.gmra.mrb[40].mxu1 %v8273_v53  ;;  %v8329_v53 = vld [vmem:[%s12088_s1 + $0x60] ss:$8 sps:$4 sm:$0xff]  }
  0x7f   :  { %1321 = vmatprep.mubr.bf16.mxu1 %v9013_v1 }
  0x86   :  { %1322 = vmatmul.mubr.bf16.gmra.mrb[44].mxu1 %v8274_v55 }
  0x87   :  { %1832 = vmatprep.mubr.bf16.mxu1 %v9013_v1 }
 0x101   :  { %v383_v58 = vpop.f32.mrb[0].mxu1  ;;  %v9429_v59 = vpop.f32.mrb[0].mxu0 }
 0x102   :  { %v385_v60 = vpop.f32.mrb[1].mxu1  ;;  %v9431_v61 = vpop.f32.mrb[1].mxu0 }
 0x103   :  { %v387_v62 = vpop.f32.mrb[2].mxu1  ;;  %v9433_v63 = vpop.f32.mrb[2].mxu0 }
 0x104   :  { %v422_v0 = vpack.c.bf16 %v387_v62, %v383_v58  ;;  %v389_v2 = vpop.f32.mrb[3].mxu1  ;;  %v284_v3 = vpack.c.bf16 %v9433_v63, %v9429_v59  ;;  %v9437_v4 = vpop.f32.mrb[3].mxu0 }
 0x105   :  { %v423_v5 = vpack.c.bf16 %v389_v2, %v385_v60  ;;  %v285_v7 = vpack.c.bf16 %v9437_v4, %v9431_v61  ;;  %v8337_v60 = vld [vmem:[%s12088_s1 + $0x84] ss:$8 sps:$4 sm:$0xff]   ;;  %v8335_v61 = vld [vmem:[%s12088_s1 + $0x80] ss:$8 sps:$4 sm:$0xff]  }
 0x107   :  { %6790 = vmatprep.mubr.msk.bf16.mxu0 %vm575_vm0, %v423_v5 }
 0x108   :  { %621 = vmatmul.mubr.bf16.vlgmr.msra.gmra.mrb[16].mxu0 %v422_v0 }
 0x109   :  { %794 = vmatpush1.bf16.msra.mxu0 %v8311_v6  ;;  %v393_v10 = vpop.f32.mrb[4].mxu1  ;;  %v9451_v11 = vpop.f32.mrb[4].mxu0  ;;  %v8340_v6 = vld [vmem:[%s12088_s1 + $0x94] ss:$8 sps:$4 sm:$0xff]  }
 0x10a   :  { %795 = vmatprep.subr.bf16.mxu0 %v8316_v8  ;;  %v395_v13 = vpop.f32.mrb[5].mxu1  ;;  %v9456_v14 = vpop.f32.mrb[5].mxu0 }
 0x10b   :  { %v397_v15 = vpop.f32.mrb[6].mxu1  ;;  %v9458_v16 = vpop.f32.mrb[6].mxu0 }
 0x10c   :  { %v424_v17 = vpack.c.bf16 %v397_v15, %v393_v10  ;;  %v399_v18 = vpop.f32.mrb[7].mxu1  ;;  %v286_v19 = vpack.c.bf16 %v9458_v16, %v9451_v11  ;;  %v9462_v20 = vpop.f32.mrb[7].mxu0 }
 0x10d   :  { %796 = vmatpush1.bf16.msra.mxu0 %v8314_v9  ;;  %v425_v22 = vpack.c.bf16 %v399_v18, %v395_v13  ;;  %v287_v23 = vpack.c.bf16 %v9462_v20, %v9456_v14  ;;  %v8343_v9 = vld [vmem:[%s12088_s1 + $0xa4] ss:$8 sps:$4 sm:$0xff]   ;;  %v8353_v14 = vld [vmem:[%s12088_s1 + $0x1a0] ss:$8 sps:$4 sm:$0xff]  }
 0x10e   :  { %797 = vmatprep.subr.bf16.mxu0 %v8319_v12 }
 0x10f   :  { %6791 = vmatprep.mubr.msk.bf16.mxu0 %vm575_vm0, %v425_v22  ;;  %v8344_v22 = vld [vmem:[%s12088_s1 + $0xb0] ss:$8 sps:$4 sm:$0xff]  }
 0x110   :  { %631 = vmatmul.mubr.bf16.gmra.mrb[20].mxu0 %v424_v17  ;;  %v8341_v17 = vld [vmem:[%s12088_s1 + $0xa0] ss:$8 sps:$4 sm:$0xff]  }
 0x111   :  { %798 = vmatpush1.bf16.msra.mxu0 %v8317_v21  ;;  %v403_v26 = vpop.f32.mrb[8].mxu1  ;;  %v9476_v27 = vpop.f32.mrb[8].mxu0  ;;  %v8346_v21 = vld [vmem:[%s12088_s1 + $0xb4] ss:$8 sps:$4 sm:$0xff]  }
 0x112   :  { %799 = vmatprep.subr.bf16.mxu0 %v8322_v24  ;;  %v405_v29 = vpop.f32.mrb[9].mxu1  ;;  %v9481_v30 = vpop.f32.mrb[9].mxu0 }
 0x113   :  { %v407_v31 = vpop.f32.mrb[10].mxu1  ;;  %v9483_v32 = vpop.f32.mrb[10].mxu0 }
 0x114   :  { %v426_v33 = vpack.c.bf16 %v407_v31, %v403_v26  ;;  %v409_v34 = vpop.f32.mrb[11].mxu1  ;;  %v288_v35 = vpack.c.bf16 %v9483_v32, %v9476_v27  ;;  %v9487_v36 = vpop.f32.mrb[11].mxu0 }
 0x115   :  { %800 = vmatpush1.bf16.msra.mxu0 %v8320_v25  ;;  %v427_v38 = vpack.c.bf16 %v409_v34, %v405_v29  ;;  %v289_v39 = vpack.c.bf16 %v9487_v36, %v9481_v30  ;;  %v8349_v25 = vld [vmem:[%s12088_s1 + $0x184] ss:$8 sps:$4 sm:$0xff]   ;;  %v8359_v30 = vld [vmem:[%s12088_s1 + $0x1c0] ss:$8 sps:$4 sm:$0xff]  }
 0x116   :  { %801 = vmatprep.subr.bf16.mxu0 %v8325_v28 }
 0x117   :  { %6792 = vmatprep.mubr.msk.bf16.mxu0 %vm575_vm0, %v427_v38  ;;  %v8350_v38 = vld [vmem:[%s12088_s1 + $0x190] ss:$8 sps:$4 sm:$0xff]  }
 0x118   :  { %641 = vmatmul.mubr.bf16.gmra.mrb[24].mxu0 %v426_v33  ;;  %v8347_v33 = vld [vmem:[%s12088_s1 + $0x180] ss:$8 sps:$4 sm:$0xff]  }
 0x119   :  { %802 = vmatpush1.bf16.msra.mxu0 %v8323_v37  ;;  %v413_v42 = vpop.f32.mrb[12].mxu1  ;;  %v9501_v43 = vpop.f32.mrb[12].mxu0  ;;  %v8352_v37 = vld [vmem:[%s12088_s1 + $0x194] ss:$8 sps:$4 sm:$0xff]  }
 0x11a   :  { %803 = vmatprep.subr.bf16.mxu0 %v8328_v40  ;;  %v415_v45 = vpop.f32.mrb[13].mxu1  ;;  %v9506_v46 = vpop.f32.mrb[13].mxu0 }
 0x11b   :  { %v417_v47 = vpop.f32.mrb[14].mxu1  ;;  %v9508_v48 = vpop.f32.mrb[14].mxu0 }
 0x11c   :  { %v428_v49 = vpack.c.bf16 %v417_v47, %v413_v42  ;;  %v419_v50 = vpop.f32.mrb[15].mxu1  ;;  %v290_v51 = vpack.c.bf16 %v9508_v48, %v9501_v43  ;;  %v9512_v52 = vpop.f32.mrb[15].mxu0  ;;  %v8361_v47 = vld [vmem:[%s12088_s1 + $0x1c4] ss:$8 sps:$4 sm:$0xff]  }
 0x11d   :  { %804 = vmatpush1.bf16.msra.mxu0 %v8326_v41  ;;  %v429_v54 = vpack.c.bf16 %v419_v50, %v415_v45  ;;  %v291_v55 = vpack.c.bf16 %v9512_v52, %v9506_v46  ;;  %v8355_v41 = vld [vmem:[%s12088_s1 + $0x1a4] ss:$8 sps:$4 sm:$0xff]   ;;  %v8362_v50 = vld [vmem:[%s12088_s1 + $0x1d0] ss:$8 sps:$4 sm:$0xff]   ;;  %v8365_v46 = vld [vmem:[%s12088_s1 + $0x1e0] ss:$8 sps:$4 sm:$0xff]  }
 0x11e   :  { %805 = vmatprep.subr.bf16.mxu0 %v8331_v44  ;;  %v8356_v44 = vld [vmem:[%s12088_s1 + $0x1b0] ss:$8 sps:$4 sm:$0xff]  }
 0x11f   :  { %6793 = vmatprep.mubr.msk.bf16.mxu0 %vm575_vm0, %v429_v54  ;;  %v8367_v54 = vld [vmem:[%s12088_s1 + $0x1e4] ss:$8 sps:$4 sm:$0xff]  }
 0x120   :  { %651 = vmatmul.mubr.bf16.gmra.mrb[28].mxu0 %v428_v49 }
 0x121   :  { %806 = vmatpush1.bf16.msra.mxu0 %v8329_v53  ;;  %6818 = vmatprep.mubr.msk.bf16.mxu0 %vm575_vm0, %v285_v7  ;;  %v9530_v58 = vpop.f32.mrb[16].mxu1  ;;  %v8338_v7 = vld [vmem:[%s12088_s1 + $0x90] ss:$8 sps:$4 sm:$0xff]  }
 0x122   :  { %807 = vmatprep.subr.bf16.mxu0 %v8334_v56  ;;  %v9535_v62 = vpop.f32.mrb[17].mxu1 }
 0x123   :  { %v9537_v0 = vpop.f32.mrb[18].mxu1 }
 0x124   :  { %v972_v2 = vpack.c.bf16 %v9537_v0, %v9530_v58  ;;  %v9541_v5 = vpop.f32.mrb[19].mxu1  ;;  %v8389_v58 = vld [vmem:[%s12088_s1 + $0x260] ss:$8 sps:$4 sm:$0xff]   ;;  %v8394_v0 = vld [vmem:[%s12088_s1 + $0x274] ss:$8 sps:$4 sm:$0xff]  }
 0x125   :  { %808 = vmatpush1.bf16.msra.mxu0 %v8332_v57  ;;  %v973_v4 = vpack.c.bf16 %v9541_v5, %v9535_v62  ;;  %v8368_v57 = vld [vmem:[%s12088_s1 + $0x1f0] ss:$8 sps:$4 sm:$0xff]   ;;  %v8371_v62 = vld [vmem:[%s12088_s1 + $0x200] ss:$8 sps:$4 sm:$0xff]  }
 0x126   :  { %809 = vmatprep.subr.bf16.mxu0 %v8337_v60 }
 0x129   :  { %810 = vmatpush1.bf16.msra.mxu0 %v8335_v61  ;;  %v9554_v8 = vpop.f32.mrb[20].mxu1  ;;  %v8373_v61 = vld [vmem:[%s12088_s1 + $0x204] ss:$8 sps:$4 sm:$0xff]  }
 0x12a   :  { %811 = vmatprep.subr.bf16.mxu0 %v8340_v6  ;;  %v9559_v10 = vpop.f32.mrb[21].mxu1 }
 0x12b   :  { %v9561_v12 = vpop.f32.mrb[22].mxu1 }
 0x12c   :  { %v974_v13 = vpack.c.bf16 %v9561_v12, %v9554_v8  ;;  %v9565_v15 = vpop.f32.mrb[23].mxu1  ;;  %v8395_v8 = vld [vmem:[%s12088_s1 + $0x280] ss:$8 sps:$4 sm:$0xff]   ;;  %v8400_v12 = vld [vmem:[%s12088_s1 + $0x294] ss:$8 sps:$4 sm:$0xff]  }
 0x12d   :  { %812 = vmatpush1.bf16.msra.mxu0 %v8338_v7  ;;  %v975_v18 = vpack.c.bf16 %v9565_v15, %v9559_v10  ;;  %v8374_v7 = vld [vmem:[%s12088_s1 + $0x210] ss:$8 sps:$4 sm:$0xff]   ;;  %v8397_v10 = vld [vmem:[%s12088_s1 + $0x284] ss:$8 sps:$4 sm:$0xff]  }
 0x12e   :  { %813 = vmatprep.subr.bf16.mxu0 %v8343_v9  ;;  %v8403_v15 = vld [vmem:[%s12088_s1 + $0x2a4] ss:$8 sps:$4 sm:$0xff]  }
 0x131   :  { %814 = vmatpush1.bf16.msra.mxu0 %v8341_v17  ;;  %v9578_v24 = vpop.f32.mrb[24].mxu1  ;;  %v8379_v17 = vld [vmem:[%s12088_s1 + $0x224] ss:$8 sps:$4 sm:$0xff]  }
 0x132   :  { %815 = vmatprep.subr.bf16.mxu0 %v8346_v21  ;;  %v9583_v26 = vpop.f32.mrb[25].mxu1 }
 0x133   :  { %v9585_v28 = vpop.f32.mrb[26].mxu1 }
 0x134   :  { %v976_v29 = vpack.c.bf16 %v9585_v28, %v9578_v24  ;;  %v9589_v31 = vpop.f32.mrb[27].mxu1  ;;  %v8406_v24 = vld [vmem:[%s12088_s1 + $0x2b4] ss:$8 sps:$4 sm:$0xff]   ;;  %v8409_v28 = vld [vmem:[%s12088_s1 + $0x2c4] ss:$8 sps:$4 sm:$0xff]  }
 0x135   :  { %816 = vmatpush1.bf16.msra.mxu0 %v8344_v22  ;;  %v977_v34 = vpack.c.bf16 %v9589_v31, %v9583_v26  ;;  %v8404_v26 = vld [vmem:[%s12088_s1 + $0x2b0] ss:$8 sps:$4 sm:$0xff]   ;;  %v8412_v31 = vld [vmem:[%s12088_s1 + $0x2d4] ss:$8 sps:$4 sm:$0xff]  }
 0x136   :  { %1137 = vmatprep.subr.bf16.mxu0 %v8349_v25 }
 0x138   :  { %826 = vmatmul.mubr.bf16.vlgmr.msra.gmra.mrb[16].mxu0 %v284_v3 }
 0x139   :  { %1138 = vmatpush1.bf16.msra.mxu0 %v8347_v33  ;;  %6819 = vmatprep.mubr.msk.bf16.mxu0 %vm575_vm0, %v287_v23  ;;  %v9609_v40 = vpop.f32.mrb[28].mxu1  ;;  %v8358_v23 = vld [vmem:[%s12088_s1 + $0x1b4] ss:$8 sps:$4 sm:$0xff]  }
 0x13a   :  { %1139 = vmatprep.subr.bf16.mxu0 %v8352_v37  ;;  %v9614_v42 = vpop.f32.mrb[29].mxu1  ;;  %v8377_v37 = vld [vmem:[%s12088_s1 + $0x220] ss:$8 sps:$4 sm:$0xff]  }
 0x13b   :  { %v9616_v59 = vpop.f32.mrb[30].mxu1 }
 0x13c   :  { %v978_v63 = vpack.c.bf16 %v9616_v59, %v9609_v40  ;;  %v9620_v3 = vpop.f32.mrb[31].mxu1  ;;  %v8415_v40 = vld [vmem:[%s12088_s1 + $0x2e4] ss:$8 sps:$4 sm:$0xff]   ;;  %v8418_v59 = vld [vmem:[%s12088_s1 + $0x2f4] ss:$8 sps:$4 sm:$0xff]  }
 0x13d   :  { %1140 = vmatpush1.bf16.msra.mxu0 %v8350_v38  ;;  %v979_v20 = vpack.c.bf16 %v9620_v3, %v9614_v42  ;;  %v8413_v42 = vld [vmem:[%s12088_s1 + $0x2e0] ss:$8 sps:$4 sm:$0xff]   ;;  %v1588_v3 = vlaneseq }
 0x13e   :  { %1141 = vmatprep.subr.bf16.mxu0 %v8355_v41  ;;  %v8382_v41 = vld [vmem:[%s12088_s1 + $0x234] ss:$8 sps:$4 sm:$0xff]  }
 0x140   :  { %836 = vmatmul.mubr.bf16.gmra.mrb[20].mxu0 %v286_v19 }
 0x141   :  { %1142 = vmatpush1.bf16.msra.mxu0 %v8353_v14  ;;  %6820 = vmatprep.mubr.msk.bf16.mxu0 %vm575_vm0, %v289_v39  ;;  %v9640_v45 = vpop.f32.mrb[32].mxu1  ;;  %v8364_v39 = vld [vmem:[%s12088_s1 + $0x1d4] ss:$8 sps:$4 sm:$0xff]   ;;  %v8380_v14 = vld [vmem:[%s12088_s1 + $0x230] ss:$8 sps:$4 sm:$0xff]  }
 0x142   :  { %1143 = vmatprep.subr.bf16.mxu0 %v8358_v23  ;;  %v9645_v49 = vpop.f32.mrb[33].mxu1  ;;  %v8385_v23 = vld [vmem:[%s12088_s1 + $0x244] ss:$8 sps:$4 sm:$0xff]  }
 0x143   :  { %v9647_v11 = vpop.f32.mrb[34].mxu1 }
 0x144   :  { %v1332_v16 = vpack.c.bf16 %v9647_v11, %v9640_v45  ;;  %v9651_v19 = vpop.f32.mrb[35].mxu1 }
 0x145   :  { %1144 = vmatpush1.bf16.msra.mxu0 %v8356_v44  ;;  %v1333_v36 = vpack.c.bf16 %v9651_v19, %v9645_v49  ;;  %v8383_v44 = vld [vmem:[%s12088_s1 + $0x240] ss:$8 sps:$4 sm:$0xff]  }
 0x146   :  { %1145 = vmatprep.subr.bf16.mxu0 %v8361_v47  ;;  %v8388_v47 = vld [vmem:[%s12088_s1 + $0x254] ss:$8 sps:$4 sm:$0xff]   ;;  %v1586_v49 = vld [vmem:[%s12090_s8] sm:$0x3] }
 0x148   :  { %846 = vmatmul.mubr.bf16.gmra.mrb[24].mxu0 %v288_v35 }
 0x149   :  { %1146 = vmatpush1.bf16.msra.mxu0 %v8359_v30  ;;  %6821 = vmatprep.mubr.msk.bf16.mxu0 %vm575_vm0, %v291_v55  ;;  %v9671_v53 = vpop.f32.mrb[36].mxu1  ;;  %v8370_v55 = vld [vmem:[%s12088_s1 + $0x1f4] ss:$8 sps:$4 sm:$0xff]   ;;  %v8386_v30 = vld [vmem:[%s12088_s1 + $0x250] ss:$8 sps:$4 sm:$0xff]  }
 0x14a   :  { %1147 = vmatprep.subr.bf16.mxu0 %v8364_v39  ;;  %v9676_v56 = vpop.f32.mrb[37].mxu1  ;;  %v8391_v39 = vld [vmem:[%s12088_s1 + $0x264] ss:$8 sps:$4 sm:$0xff]  }
 0x14b   :  { %v9678_v27 = vpop.f32.mrb[38].mxu1 }
 0x14c   :  { %v1334_v32 = vpack.c.bf16 %v9678_v27, %v9671_v53  ;;  %v9682_v35 = vpop.f32.mrb[39].mxu1 }
 0x14d   :  { %1148 = vmatpush1.bf16.msra.mxu0 %v8362_v50  ;;  %v1335_v52 = vpack.c.bf16 %v9682_v35, %v9676_v56 }
 0x14e   :  { %1149 = vmatprep.subr.bf16.mxu0 %v8367_v54 }
 0x150   :  { %856 = vmatmul.mubr.bf16.gmra.mrb[28].mxu0 %v290_v51 }
 0x151   :  { %1150 = vmatpush1.bf16.msra.mxu0 %v8365_v46  ;;  %6882 = vmatprep.mubr.msk.bf16.mxu0 %vm575_vm0, %v973_v4  ;;  %v9702_v60 = vpop.f32.mrb[40].mxu1  ;;  %v8376_v4 = vld [vmem:[%s12088_s1 + $0x214] ss:$8 sps:$4 sm:$0xff]  }
 0x152   :  { %1151 = vmatprep.subr.bf16.mxu0 %v8370_v55  ;;  %v9707_v6 = vpop.f32.mrb[41].mxu1 }
 0x153   :  { %v9709_v43 = vpop.f32.mrb[42].mxu1 }
 0x154   :  { %v1336_v48 = vpack.c.bf16 %v9709_v43, %v9702_v60  ;;  %v9713_v51 = vpop.f32.mrb[43].mxu1 }
 0x155   :  { %1152 = vmatpush1.bf16.msra.mxu0 %v8368_v57  ;;  %v1337_v5 = vpack.c.bf16 %v9713_v51, %v9707_v6 }
 0x156   :  { %1153 = vmatprep.subr.bf16.mxu0 %v8373_v61 }
 0x159   :  { %1154 = vmatpush1.bf16.msra.mxu0 %v8371_v62  ;;  %v9726_v9 = vpop.f32.mrb[44].mxu1 }
 0x15a   :  { %1155 = vmatprep.subr.bf16.mxu0 %v8376_v4  ;;  %v9731_v21 = vpop.f32.mrb[45].mxu1 }
 0x15b   :  { %v9733_v22 = vpop.f32.mrb[46].mxu1 }
 0x15c   :  { %v1338_v25 = vpack.c.bf16 %v9733_v22, %v9726_v9  ;;  %v9737_v33 = vpop.f32.mrb[47].mxu1 }
 0x15d   :  { %1156 = vmatpush1.bf16.msra.mxu0 %v8374_v7  ;;  %v1339_v38 = vpack.c.bf16 %v9737_v33, %v9731_v21 }
 0x15e   :  { %1157 = vmatprep.subr.bf16.mxu0 %v8379_v17 }
 0x161   :  { %1158 = vmatpush1.bf16.msra.mxu0 %v8377_v37 }
 0x162   :  { %1159 = vmatprep.subr.bf16.mxu0 %v8382_v41 }
 0x165   :  { %1160 = vmatpush1.bf16.msra.mxu0 %v8380_v14 }
 0x166   :  { %1497 = vmatprep.subr.bf16.mxu0 %v8385_v23 }
 0x168   :  { %1170 = vmatmul.mubr.bf16.vlgmr.msra.gmra.mrb[16].mxu0 %v972_v2  ;;  %v8392_v2 = vld [vmem:[%s12088_s1 + $0x270] ss:$8 sps:$4 sm:$0xff]  }
 0x169   :  { %1498 = vmatpush1.bf16.msra.mxu0 %v8383_v44  ;;  %6883 = vmatprep.mubr.msk.bf16.mxu0 %vm575_vm0, %v975_v18  ;;  %v8401_v18 = vld [vmem:[%s12088_s1 + $0x2a0] ss:$8 sps:$4 sm:$0xff]  }
 0x16a   :  { %1499 = vmatprep.subr.bf16.mxu0 %v8388_v47 }
 0x16d   :  { %1500 = vmatpush1.bf16.msra.mxu0 %v8386_v30 }
 0x16e   :  { %1501 = vmatprep.subr.bf16.mxu0 %v8391_v39 }
 0x170   :  { %1180 = vmatmul.mubr.bf16.gmra.mrb[20].mxu0 %v974_v13  ;;  %v8398_v13 = vld [vmem:[%s12088_s1 + $0x290] ss:$8 sps:$4 sm:$0xff]  }
 0x171   :  { %1502 = vmatpush1.bf16.msra.mxu0 %v8389_v58  ;;  %6884 = vmatprep.mubr.msk.bf16.mxu0 %vm575_vm0, %v977_v34  ;;  %v8410_v34 = vld [vmem:[%s12088_s1 + $0x2d0] ss:$8 sps:$4 sm:$0xff]  }
 0x172   :  { %1503 = vmatprep.subr.bf16.mxu0 %v8394_v0 }
 0x175   :  { %1504 = vmatpush1.bf16.msra.mxu0 %v8392_v2 }
 0x176   :  { %1505 = vmatprep.subr.bf16.mxu0 %v8397_v10 }
 0x178   :  { %1190 = vmatmul.mubr.bf16.gmra.mrb[24].mxu0 %v976_v29  ;;  %v8407_v29 = vld [vmem:[%s12088_s1 + $0x2c0] ss:$8 sps:$4 sm:$0xff]  }
 0x179   :  { %1506 = vmatpush1.bf16.msra.mxu0 %v8395_v8  ;;  %6885 = vmatprep.mubr.msk.bf16.mxu0 %vm575_vm0, %v979_v20  ;;  %v1589_v20 = vshrl.u32 %v1588_v3, 7 }
 0x17a   :  { %1507 = vmatprep.subr.bf16.mxu0 %v8400_v12 }
 0x17b   :  { %v9875_v45 = vsub.s32 0, %v1589_v20  ;;  %v9880_v11 = vsub.s32 1, %v1589_v20 }
 0x17d   :  { %1508 = vmatpush1.bf16.msra.mxu0 %v8398_v13  ;;  %v9886_v19 = vrot.slane %v1586_v49, %v9880_v11 }
 0x17e   :  { %1509 = vmatprep.subr.bf16.mxu0 %v8403_v15 }
 0x180   :  { %1200 = vmatmul.mubr.bf16.gmra.mrb[28].mxu0 %v978_v63  ;;  %v8416_v63 = vld [vmem:[%s12088_s1 + $0x2f0] ss:$8 sps:$4 sm:$0xff]  }
 0x181   :  { %1510 = vmatpush1.bf16.msra.mxu0 %v8401_v18  ;;  %6946 = vmatprep.mubr.msk.bf16.mxu0 %vm575_vm0, %v1333_v36 }
 0x182   :  { %1511 = vmatprep.subr.bf16.mxu0 %v8406_v24 }
 0x185   :  { %1512 = vmatpush1.bf16.msra.mxu0 %v8404_v26 }
 0x186   :  { %1513 = vmatprep.subr.bf16.mxu0 %v8409_v28 }
 0x189   :  { %1514 = vmatpush1.bf16.msra.mxu0 %v8407_v29 }
 0x18a   :  { %1515 = vmatprep.subr.bf16.mxu0 %v8412_v31 }
 0x18d   :  { %1516 = vmatpush1.bf16.msra.mxu0 %v8410_v34 }
 0x18e   :  { %1517 = vmatprep.subr.bf16.mxu0 %v8415_v40 }
 0x191   :  { %1518 = vmatpush1.bf16.msra.mxu0 %v8413_v42 }
 0x192   :  { %1519 = vmatprep.subr.bf16.mxu0 %v8418_v59 }
 0x195   :  { %1520 = vmatpush1.bf16.msra.mxu0 %v8416_v63 }
 0x198   :  { %1530 = vmatmul.mubr.bf16.vlgmr.msra.gmra.mrb[16].mxu0 %v1332_v16  ;;  %v9883_v16 = vrot.slane %v1586_v49, %v9875_v45 }
 0x199   :  { %6947 = vmatprep.mubr.msk.bf16.mxu0 %vm575_vm0, %v1335_v52 }
 0x1a0   :  { %1540 = vmatmul.mubr.bf16.gmra.mrb[20].mxu0 %v1334_v32 }
 0x1a1   :  { %6948 = vmatprep.mubr.msk.bf16.mxu0 %vm575_vm0, %v1337_v5 }
 0x1a8   :  { %1550 = vmatmul.mubr.bf16.gmra.mrb[24].mxu0 %v1336_v48 }
 0x1a9   :  { %6949 = vmatprep.mubr.msk.bf16.mxu0 %vm575_vm0, %v1339_v38 }
 0x1b0   :  { %1560 = vmatmul.mubr.bf16.gmra.mrb[28].mxu0 %v1338_v25 }
 0x1b1   :  { %1722 = vmatprep.mubr.bf16.mxu0 %v9013_v1 }
 0x26b   :  { %v1531_v36 = vpop.f32.mrb[16].mxu0 }
 0x26c   :  { %v1598_v50 = vadd.f32 %v9883_v16, %v1531_v36  ;;  %v1533_v53 = vpop.f32.mrb[17].mxu0 }
 0x26d   :  { %v1599_v54 = vadd.f32 %v9886_v19, %v1533_v53  ;;  %v1535_v56 = vpop.f32.mrb[18].mxu0 }
 0x26e   :  { %v1630_v27 = vmul.f32 0.2, %v1598_v50  ;;  %v1600_v32 = vadd.f32 %v9883_v16, %v1535_v56  ;;  %v1537_v35 = vpop.f32.mrb[19].mxu0  ;;  %vm1614_vm1 = vcmp.gt.f32.partialorder %v1598_v50, 0.0 }
 0x26f   :  { %v1631_v46 = vmul.f32 0.2, %v1599_v54  ;;  %v1601_v52 = vadd.f32 %v9886_v19, %v1537_v35  ;;  %vm1615_vm2 = vcmp.gt.f32.partialorder %v1599_v54, 0.0 }
 0x270   :  { %vm1616_vm3 = vcmp.gt.f32.partialorder %v1600_v32, 0.0  ;;  %v1632_v55 = vmul.f32 0.2, %v1600_v32  ;;  %v1646_v60 = vsel %vm1614_vm1, %v1598_v50, %v1630_v27 }
 0x271   :  { %vm1617_vm4 = vcmp.gt.f32.partialorder %v1601_v52, 0.0  ;;  %v1633_v57 = vmul.f32 0.2, %v1601_v52  ;;  %v1647_v6 = vsel %vm1615_vm2, %v1599_v54, %v1631_v46  ;;  %vm3206_vm2 = vcmask 130048  }
 0x272   :  { %v1648_v61 = vsel %vm1616_vm3, %v1600_v32, %v1632_v55 }
 0x273   :  { %v9892_v43 = vpack.c.bf16 %v1648_v61, %v1646_v60  ;;  %v1649_v48 = vsel %vm1617_vm4, %v1601_v52, %v1633_v57  ;;  %v1541_v51 = vpop.f32.mrb[20].mxu0  ;;  %v8419_v60 = vld [vmem:[%s12092_s9 + $0x10] sm:$0xff]   ;;  %v8420_v61 = vld [vmem:[%s12092_s9] sm:$0xff]  }
 0x274   :  { %v9894_v62 = vpack.c.bf16 %v1649_v48, %v1647_v6  ;;  %v1602_v5 = vadd.f32 %v9883_v16, %v1541_v51  ;;  %v1543_v4 = vpop.f32.mrb[21].mxu0  ;;  %v8424_v6 = vld [vmem:[%s12091_s29 + $0x100] ss:$8 sps:$4 sm:$0xff]   ;;  %v8429_v48 = vld [vmem:[%s12091_s29 + $0x114] ss:$8 sps:$4 sm:$0xff]  }
 0x275   :  { %v1603_v7 = vadd.f32 %v9886_v19, %v1543_v4  ;;  %v1545_v9 = vpop.f32.mrb[22].mxu0  ;;  %v8427_v51 = vld [vmem:[%s12091_s29 + $0x110] ss:$8 sps:$4 sm:$0xff]  }
 0x276   :  { %v1634_v17 = vmul.f32 0.2, %v1602_v5  ;;  %v1604_v21 = vadd.f32 %v9883_v16, %v1545_v9  ;;  %v1547_v22 = vpop.f32.mrb[23].mxu0  ;;  %1690 = vmatprep.subr.bf16.mxu0 %v9894_v62  ;;  %1800 = vmatprep.subr.bf16.mxu1 %v9894_v62  ;;  %vm1618_vm5 = vcmp.gt.f32.partialorder %v1602_v5, 0.0  ;;  %v8423_v4 = vld [vmem:[%s12092_s9 + $0x18] sm:$0xff]  }
 0x277   :  { %v1635_v25 = vmul.f32 0.2, %v1603_v7  ;;  %v1605_v33 = vadd.f32 %v9886_v19, %v1547_v22  ;;  %1691 = vmatpush1.bf16.msra.mxu0 %v9892_v43  ;;  %1801 = vmatpush1.bf16.msra.mxu1 %v9892_v43  ;;  %vm1619_vm6 = vcmp.gt.f32.partialorder %v1603_v7, 0.0  ;;  %v8430_v9 = vld [vmem:[%s12091_s29 + $0x120] ss:$8 sps:$4 sm:$0xff]  }
 0x278   :  { %vm1620_vm7 = vcmp.gt.f32.partialorder %v1604_v21, 0.0  ;;  %v1636_v37 = vmul.f32 0.2, %v1604_v21  ;;  %v1650_v41 = vsel %vm1618_vm5, %v1602_v5, %v1634_v17  ;;  %v8421_v5 = vld [vmem:[%s12092_s9 + $0x8] sm:$0xff]   ;;  %v8435_v17 = vld [vmem:[%s12091_s29 + $0x134] ss:$8 sps:$4 sm:$0xff]  }
 0x279   :  { %vm1621_vm8 = vcmp.gt.f32.partialorder %v1605_v33, 0.0  ;;  %v1637_v38 = vmul.f32 0.2, %v1605_v33  ;;  %v1651_v23 = vsel %vm1619_vm6, %v1603_v7, %v1635_v25  ;;  %v8432_v7 = vld [vmem:[%s12091_s29 + $0x124] ss:$8 sps:$4 sm:$0xff]  }
 0x27a   :  { %v1652_v14 = vsel %vm1620_vm7, %v1604_v21, %v1636_v37  ;;  %v8433_v21 = vld [vmem:[%s12091_s29 + $0x130] ss:$8 sps:$4 sm:$0xff]   ;;  %v8422_v22 = vld [vmem:[%s12092_s9 + $0x20] sm:$0xff]   ;;  %v8441_v37 = vld [vmem:[%s12091_s29 + $0x154] ss:$8 sps:$4 sm:$0xff]  }
 0x27b   :  { %v9904_v44 = vpack.c.bf16 %v1652_v14, %v1650_v41  ;;  %v1653_v47 = vsel %vm1621_vm8, %v1605_v33, %v1637_v38  ;;  %v1551_v30 = vpop.f32.mrb[24].mxu0  ;;  %v8438_v25 = vld [vmem:[%s12091_s29 + $0x144] ss:$8 sps:$4 sm:$0xff]   ;;  %v8436_v33 = vld [vmem:[%s12091_s29 + $0x140] ss:$8 sps:$4 sm:$0xff]  }
 0x27c   :  { %v9906_v39 = vpack.c.bf16 %v1653_v47, %v1651_v23  ;;  %v1606_v58 = vadd.f32 %v9883_v16, %v1551_v30  ;;  %v1553_v0 = vpop.f32.mrb[25].mxu0  ;;  %v8444_v38 = vld [vmem:[%s12091_s29 + $0x164] ss:$8 sps:$4 sm:$0xff]   ;;  %v8447_v14 = vld [vmem:[%s12091_s29 + $0x174] ss:$8 sps:$4 sm:$0xff]  }
 0x27d   :  { %v1607_v2 = vadd.f32 %v9886_v19, %v1553_v0  ;;  %v1555_v10 = vpop.f32.mrb[26].mxu0  ;;  %v8448_v41 = vld [vmem:[%s12092_s9 + $0x28] sm:$0xff]   ;;  %v8445_v23 = vld [vmem:[%s12091_s29 + $0x170] ss:$8 sps:$4 sm:$0xff]  }
 0x27e   :  { %v1638_v8 = vmul.f32 0.2, %v1606_v58  ;;  %v1608_v12 = vadd.f32 %v9883_v16, %v1555_v10  ;;  %v1557_v13 = vpop.f32.mrb[27].mxu0  ;;  %1692 = vmatprep.subr.bf16.mxu0 %v9906_v39  ;;  %1802 = vmatprep.subr.bf16.mxu1 %v9906_v39  ;;  %vm1622_vm9 = vcmp.gt.f32.partialorder %v1606_v58, 0.0  ;;  %v8455_v47 = vld [vmem:[%s12092_s9 + $0x30] sm:$0xff]  }
 0x27f   :  { %v1639_v15 = vmul.f32 0.2, %v1607_v2  ;;  %v1609_v18 = vadd.f32 %v9886_v19, %v1557_v13  ;;  %1693 = vmatpush1.bf16.msra.mxu0 %v9904_v44  ;;  %1803 = vmatpush1.bf16.msra.mxu1 %v9904_v44  ;;  %vm1623_vm10 = vcmp.gt.f32.partialorder %v1607_v2, 0.0  ;;  %v8449_v30 = vld [vmem:[%s12091_s29 + $0x180] ss:$8 sps:$4 sm:$0xff]  }
 0x280   :  { %vm1624_vm11 = vcmp.gt.f32.partialorder %v1608_v12, 0.0  ;;  %v1640_v24 = vmul.f32 0.2, %v1608_v12  ;;  %v1654_v28 = vsel %vm1622_vm9, %v1606_v58, %v1638_v8  ;;  %v8452_v58 = vld [vmem:[%s12091_s29 + $0x190] ss:$8 sps:$4 sm:$0xff]  }
 0x281   :  { %vm1625_vm12 = vcmp.gt.f32.partialorder %v1609_v18, 0.0  ;;  %v1641_v26 = vmul.f32 0.2, %v1609_v18  ;;  %v1655_v31 = vsel %vm1623_vm10, %v1607_v2, %v1639_v15  ;;  %v8458_v0 = vld [vmem:[%s12091_s29 + $0x1a4] ss:$8 sps:$4 sm:$0xff]   ;;  %v8462_v2 = vld [vmem:[%s12092_s9 + $0x38] sm:$0xff]  }
 0x282   :  { %v1656_v29 = vsel %vm1624_vm11, %v1608_v12, %v1640_v24  ;;  %v8456_v10 = vld [vmem:[%s12091_s29 + $0x1a0] ss:$8 sps:$4 sm:$0xff]   ;;  %v8461_v8 = vld [vmem:[%s12091_s29 + $0x1b4] ss:$8 sps:$4 sm:$0xff]   ;;  %v8459_v12 = vld [vmem:[%s12091_s29 + $0x1b0] ss:$8 sps:$4 sm:$0xff]  }
 0x283   :  { %v9916_v34 = vpack.c.bf16 %v1656_v29, %v1654_v28  ;;  %v1657_v40 = vsel %vm1625_vm12, %v1609_v18, %v1641_v26  ;;  %v1561_v42 = vpop.f32.mrb[28].mxu0  ;;  %v8465_v13 = vld [vmem:[%s12091_s29 + $0x1c4] ss:$8 sps:$4 sm:$0xff]   ;;  %v8463_v15 = vld [vmem:[%s12091_s29 + $0x1c0] ss:$8 sps:$4 sm:$0xff]   ;;  %vm3456_vm11 = vcmask 261120  }
 0x284   :  { %v9918_v59 = vpack.c.bf16 %v1657_v40, %v1655_v31  ;;  %v1610_v63 = vadd.f32 %v9883_v16, %v1561_v42  ;;  %v1563_v3 = vpop.f32.mrb[29].mxu0  ;;  %v8468_v18 = vld [vmem:[%s12091_s29 + $0x1d4] ss:$8 sps:$4 sm:$0xff]   ;;  %v8466_v24 = vld [vmem:[%s12091_s29 + $0x1d0] ss:$8 sps:$4 sm:$0xff]  }
 0x285   :  { %v1611_v20 = vadd.f32 %v9886_v19, %v1563_v3  ;;  %v1565_v49 = vpop.f32.mrb[30].mxu0  ;;  %v8471_v26 = vld [vmem:[%s12091_s29 + $0x1e4] ss:$8 sps:$4 sm:$0xff]   ;;  %v8469_v28 = vld [vmem:[%s12091_s29 + $0x1e0] ss:$8 sps:$4 sm:$0xff]  }
 0x286   :  { %v1642_v36 = vmul.f32 0.2, %v1610_v63  ;;  %v1612_v50 = vadd.f32 %v9883_v16, %v1565_v49  ;;  %v1567_v53 = vpop.f32.mrb[31].mxu0  ;;  %1694 = vmatprep.subr.bf16.mxu0 %v9918_v59  ;;  %1804 = vmatprep.subr.bf16.mxu1 %v9918_v59  ;;  %vm1626_vm13 = vcmp.gt.f32.partialorder %v1610_v63, 0.0  ;;  %v8474_v29 = vld [vmem:[%s12091_s29 + $0x1f4] ss:$8 sps:$4 sm:$0xff]  }
 0x287   :  { %v1643_v54 = vmul.f32 0.2, %v1611_v20  ;;  %v1613_v56 = vadd.f32 %v9886_v19, %v1567_v53  ;;  %1695 = vmatpush1.bf16.msra.mxu0 %v9916_v34  ;;  %1805 = vmatpush1.bf16.msra.mxu1 %v9916_v34  ;;  %vm1627_vm14 = vcmp.gt.f32.partialorder %v1611_v20, 0.0  ;;  %v8426_v19 = vld [vmem:[%s12091_s29 + $0x104] ss:$8 sps:$4 sm:$0xff]  }
 0x288   :  { %vm1628_vm15 = vcmp.gt.f32.partialorder %v1612_v50, 0.0  ;;  %v1644_v27 = vmul.f32 0.2, %v1612_v50  ;;  %v1658_v35 = vsel %vm1626_vm13, %v1610_v63, %v1642_v36  ;;  %v8472_v31 = vld [vmem:[%s12091_s29 + $0x1f0] ss:$8 sps:$4 sm:$0xff]  }
 0x289   :  { %vm1629_vm1 = vcmp.gt.f32.partialorder %v1613_v56, 0.0  ;;  %v1645_v32 = vmul.f32 0.2, %v1613_v56  ;;  %v1659_v46 = vsel %vm1627_vm14, %v1611_v20, %v1643_v54 }
 0x28a   :  { %v1660_v16 = vsel %vm1628_vm15, %v1612_v50, %v1644_v27 }
 0x28b   :  { %v9928_v52 = vpack.c.bf16 %v1660_v16, %v1658_v35  ;;  %v1661_v55 = vsel %vm1629_vm1, %v1613_v56, %v1645_v32  ;;  %v8475_v56 = vld [vmem:[%s12091_s29] ss:$8 sps:$4 sm:$0xff]   ;;  %v8480_v32 = vld [vmem:[%s12091_s29 + $0x14] ss:$8 sps:$4 sm:$0xff]   ;;  %v8478_v35 = vld [vmem:[%s12091_s29 + $0x10] ss:$8 sps:$4 sm:$0xff]  }
 0x28c   :  { %v9930_v57 = vpack.c.bf16 %v1661_v55, %v1659_v46 }
 0x28e   :  { %1696 = vmatprep.subr.bf16.mxu0 %v9930_v57  ;;  %1806 = vmatprep.subr.bf16.mxu1 %v9930_v57 }
 0x28f   :  { %1697 = vmatpush1.bf16.msra.mxu0 %v9928_v52  ;;  %1807 = vmatpush1.bf16.msra.mxu1 %v9928_v52 }
 0x290   :  { %2337 = vmatprep.subr.bf16.mxu0 %v9894_v62  ;;  %2050 = vmatprep.subr.bf16.mxu1 %v8426_v19 }
 0x292   :  { %6960 = vmatmul.mubr.msk.bf16.vlgmr.msra.gmra.mrb[48].mxu1 %vm575_vm0, %v8419_v60  ;;  %6952 = vmatmul.mubr.msk.bf16.vlgmr.msra.gmra.mrb[32].mxu0 %vm575_vm0, %v8420_v61 }
 0x293   :  { %2338 = vmatpush1.bf16.msra.mxu0 %v9892_v43  ;;  %1732 = vmatprep.mubr.bf16.mxu0 %v9013_v1 }
 0x294   :  { %2339 = vmatprep.subr.bf16.mxu0 %v9906_v39  ;;  %1842 = vmatprep.mubr.bf16.mxu1 %v9013_v1 }
 0x295   :  { %2051 = vmatpush1.bf16.msra.mxu1 %v8424_v6 }
 0x296   :  { %2052 = vmatprep.subr.bf16.mxu1 %v8429_v48 }
 0x297   :  { %2340 = vmatpush1.bf16.msra.mxu0 %v9904_v44 }
 0x298   :  { %2341 = vmatprep.subr.bf16.mxu0 %v9918_v59 }
 0x299   :  { %2053 = vmatpush1.bf16.msra.mxu1 %v8427_v51 }
 0x29a   :  { %6953 = vmatmul.mubr.msk.bf16.gmra.mrb[36].mxu0 %vm575_vm0, %v8421_v5  ;;  %6961 = vmatmul.mubr.msk.bf16.gmra.mrb[52].mxu1 %vm575_vm0, %v8423_v4  ;;  %v8481_v5 = vld [vmem:[%s12091_s29 + $0x20] ss:$8 sps:$4 sm:$0xff]  }
 0x29b   :  { %2342 = vmatpush1.bf16.msra.mxu0 %v9916_v34  ;;  %2369 = vmatprep.mubr.bf16.mxu0 %v9013_v1 }
 0x29c   :  { %2343 = vmatprep.subr.bf16.mxu0 %v9930_v57  ;;  %2054 = vmatprep.subr.bf16.mxu1 %v8432_v7 }
 0x29d   :  { %2055 = vmatpush1.bf16.msra.mxu1 %v8430_v9  ;;  %v8486_v9 = vld [vmem:[%s12091_s29 + $0x34] ss:$8 sps:$4 sm:$0xff]  }
 0x29e   :  { %2056 = vmatprep.subr.bf16.mxu1 %v8435_v17  ;;  %v8484_v17 = vld [vmem:[%s12091_s29 + $0x30] ss:$8 sps:$4 sm:$0xff]  }
 0x29f   :  { %2344 = vmatpush1.bf16.msra.mxu0 %v9928_v52 }
 0x2a0   :  { %2669 = vmatprep.subr.bf16.mxu0 %v9894_v62  ;;  %v8439_v62 = vld [vmem:[%s12091_s29 + $0x150] ss:$8 sps:$4 sm:$0xff]  }
 0x2a1   :  { %2057 = vmatpush1.bf16.msra.mxu1 %v8433_v21 }
 0x2a2   :  { %7064 = vmatmul.mubr.msk.bf16.vlgmr.msra.gmra.mrb[40].mxu0 %vm575_vm0, %v8422_v22  ;;  %2058 = vmatprep.subr.bf16.mxu1 %v8438_v25  ;;  %v8489_v22 = vld [vmem:[%s12091_s29 + $0x44] ss:$8 sps:$4 sm:$0xff]  }
 0x2a3   :  { %2670 = vmatpush1.bf16.msra.mxu0 %v9892_v43  ;;  %2379 = vmatprep.mubr.bf16.mxu0 %v9013_v1  ;;  %v8442_v43 = vld [vmem:[%s12091_s29 + $0x160] ss:$8 sps:$4 sm:$0xff]  }
 0x2a4   :  { %2671 = vmatprep.subr.bf16.mxu0 %v9906_v39  ;;  %v8454_v39 = vld [vmem:[%s12091_s29 + $0x194] ss:$8 sps:$4 sm:$0xff]  }
 0x2a5   :  { %2059 = vmatpush1.bf16.msra.mxu1 %v8436_v33 }
 0x2a6   :  { %2060 = vmatprep.subr.bf16.mxu1 %v8441_v37 }
 0x2a7   :  { %2672 = vmatpush1.bf16.msra.mxu0 %v9904_v44  ;;  %v8451_v44 = vld [vmem:[%s12091_s29 + $0x184] ss:$8 sps:$4 sm:$0xff]  }
 0x2a8   :  { %2673 = vmatprep.subr.bf16.mxu0 %v9918_v59 }
 0x2a9   :  { %2061 = vmatpush1.bf16.msra.mxu1 %v8439_v62 }
 0x2aa   :  { %2062 = vmatprep.subr.bf16.mxu1 %v8444_v38  ;;  %7065 = vmatmul.mubr.msk.bf16.gmra.mrb[44].mxu0 %vm575_vm0, %v8448_v41  ;;  %v8487_v38 = vld [vmem:[%s12091_s29 + $0x40] ss:$8 sps:$4 sm:$0xff]  }
 0x2ab   :  { %2674 = vmatpush1.bf16.msra.mxu0 %v9916_v34  ;;  %2701 = vmatprep.mubr.bf16.mxu0 %v9013_v1  ;;  %v8477_v34 = vld [vmem:[%s12091_s29 + $0x4] ss:$8 sps:$4 sm:$0xff]  }
 0x2ac   :  { %2675 = vmatprep.subr.bf16.mxu0 %v9930_v57 }
 0x2ad   :  { %2063 = vmatpush1.bf16.msra.mxu1 %v8442_v43  ;;  %v8492_v43 = vld [vmem:[%s12091_s29 + $0x54] ss:$8 sps:$4 sm:$0xff]  }
 0x2ae   :  { %2064 = vmatprep.subr.bf16.mxu1 %v8447_v14  ;;  %v8490_v14 = vld [vmem:[%s12091_s29 + $0x50] ss:$8 sps:$4 sm:$0xff]  }
 0x2af   :  { %2676 = vmatpush1.bf16.msra.mxu0 %v9928_v52  ;;  %v8483_v52 = vld [vmem:[%s12091_s29 + $0x24] ss:$8 sps:$4 sm:$0xff]  }
 0x2b1   :  { %2065 = vmatpush1.bf16.msra.mxu1 %v8445_v23  ;;  %v8495_v23 = vld [vmem:[%s12091_s29 + $0x64] ss:$8 sps:$4 sm:$0xff]  }
 0x2b2   :  { %2066 = vmatprep.subr.bf16.mxu1 %v8451_v44  ;;  %7136 = vmatmul.mubr.msk.bf16.vlgmr.msra.gmra.mrb[48].mxu0 %vm575_vm0, %v8455_v47  ;;  %v8493_v44 = vld [vmem:[%s12091_s29 + $0x60] ss:$8 sps:$4 sm:$0xff]   ;;  %v8498_v47 = vld [vmem:[%s12091_s29 + $0x74] ss:$8 sps:$4 sm:$0xff]  }
 0x2b3   :  { %2711 = vmatprep.mubr.bf16.mxu0 %v9013_v1 }
 0x2b5   :  { %2067 = vmatpush1.bf16.msra.mxu1 %v8449_v30  ;;  %v8496_v30 = vld [vmem:[%s12091_s29 + $0x70] ss:$8 sps:$4 sm:$0xff]  }
 0x2b6   :  { %2068 = vmatprep.subr.bf16.mxu1 %v8454_v39  ;;  %v8501_v39 = vld [vmem:[%s12091_s29 + $0x84] ss:$8 sps:$4 sm:$0xff]  }
 0x2b9   :  { %2069 = vmatpush1.bf16.msra.mxu1 %v8452_v58  ;;  %v8499_v58 = vld [vmem:[%s12091_s29 + $0x80] ss:$8 sps:$4 sm:$0xff]  }
 0x2ba   :  { %2070 = vmatprep.subr.bf16.mxu1 %v8458_v0  ;;  %7137 = vmatmul.mubr.msk.bf16.gmra.mrb[52].mxu0 %vm575_vm0, %v8462_v2  ;;  %v8504_v0 = vld [vmem:[%s12091_s29 + $0x94] ss:$8 sps:$4 sm:$0xff]   ;;  %v8502_v2 = vld [vmem:[%s12091_s29 + $0x90] ss:$8 sps:$4 sm:$0xff]  }
 0x2bd   :  { %2071 = vmatpush1.bf16.msra.mxu1 %v8456_v10  ;;  %v8507_v10 = vld [vmem:[%s12091_s29 + $0xa4] ss:$8 sps:$4 sm:$0xff]  }
 0x2be   :  { %2072 = vmatprep.subr.bf16.mxu1 %v8461_v8  ;;  %v8505_v8 = vld [vmem:[%s12091_s29 + $0xa0] ss:$8 sps:$4 sm:$0xff]  }
 0x2c1   :  { %2073 = vmatpush1.bf16.msra.mxu1 %v8459_v12  ;;  %v8510_v12 = vld [vmem:[%s12091_s29 + $0xb4] ss:$8 sps:$4 sm:$0xff]  }
 0x2c2   :  { %2074 = vmatprep.subr.bf16.mxu1 %v8465_v13  ;;  %v8508_v13 = vld [vmem:[%s12091_s29 + $0xb0] ss:$8 sps:$4 sm:$0xff]  }
 0x2c5   :  { %2075 = vmatpush1.bf16.msra.mxu1 %v8463_v15  ;;  %v8513_v15 = vld [vmem:[%s12091_s29 + $0xc4] ss:$8 sps:$4 sm:$0xff]  }
 0x2c6   :  { %2076 = vmatprep.subr.bf16.mxu1 %v8468_v18  ;;  %v8511_v18 = vld [vmem:[%s12091_s29 + $0xc0] ss:$8 sps:$4 sm:$0xff]  }
 0x2c9   :  { %2077 = vmatpush1.bf16.msra.mxu1 %v8466_v24 }
 0x2ca   :  { %2078 = vmatprep.subr.bf16.mxu1 %v8471_v26  ;;  %v8516_v26 = vld [vmem:[%s12091_s29 + $0xd4] ss:$8 sps:$4 sm:$0xff]  }
 0x2cd   :  { %2079 = vmatpush1.bf16.msra.mxu1 %v8469_v28 }
 0x2ce   :  { %2080 = vmatprep.subr.bf16.mxu1 %v8474_v29 }
 0x2d1   :  { %2081 = vmatpush1.bf16.msra.mxu1 %v8472_v31 }
 0x2d2   :  { %2263 = vmatprep.subr.bf16.mxu1 %v8477_v34 }
 0x365   :  { %v1834_v40 = vpop.f32.mrb[48].mxu1  ;;  %v10089_v42 = vpop.f32.mrb[32].mxu0 }
 0x366   :  { %v1836_v59 = vpop.f32.mrb[49].mxu1  ;;  %v1726_v63 = vpop.f32.mrb[33].mxu0 }
 0x367   :  { %v1838_v3 = vpop.f32.mrb[50].mxu1  ;;  %v10091_v20 = vpop.f32.mrb[34].mxu0 }
 0x368   :  { %v1853_v49 = vpack.c.bf16 %v1838_v3, %v1834_v40  ;;  %v1840_v36 = vpop.f32.mrb[51].mxu1  ;;  %v1743_v50 = vpack.c.bf16 %v10091_v20, %v10089_v42  ;;  %v1730_v53 = vpop.f32.mrb[35].mxu0  ;;  %v8514_v40 = vld [vmem:[%s12091_s29 + $0xd0] ss:$8 sps:$4 sm:$0xff]   ;;  %v8517_v3 = vld [vmem:[%s12091_s29 + $0xe0] ss:$8 sps:$4 sm:$0xff]  }
 0x369   :  { %v1854_v54 = vpack.c.bf16 %v1840_v36, %v1836_v59  ;;  %v1744_v27 = vpack.c.bf16 %v1730_v53, %v1726_v63  ;;  %v8519_v63 = vld [vmem:[%s12091_s29 + $0xe4] ss:$8 sps:$4 sm:$0xff]   ;;  %v8522_v36 = vld [vmem:[%s12091_s29 + $0xf4] ss:$8 sps:$4 sm:$0xff]  }
 0x36a   :  { %v8531_v42 = vld [vmem:[%s12091_s29 + $0x224] ss:$8 sps:$4 sm:$0xff]  }
 0x36b   :  { %2082 = vmatprep.mubr.bf16.mxu1 %v1854_v54 }
 0x36c   :  { %2083 = vmatmul.mubr.bf16.vlgmr.msra.gmra.mrb[56].mxu1 %v1853_v49 }
 0x36d   :  { %2264 = vmatpush1.bf16.msra.mxu1 %v8475_v56  ;;  %v1844_v16 = vpop.f32.mrb[52].mxu1  ;;  %v10104_v46 = vpop.f32.mrb[36].mxu0  ;;  %v8520_v56 = vld [vmem:[%s12091_s29 + $0xf0] ss:$8 sps:$4 sm:$0xff]  }
 0x36e   :  { %2265 = vmatprep.subr.bf16.mxu1 %v8480_v32  ;;  %v1846_v55 = vpop.f32.mrb[53].mxu1  ;;  %v10109_v57 = vpop.f32.mrb[37].mxu0 }
 0x36f   :  { %v1848_v19 = vpop.f32.mrb[54].mxu1  ;;  %v10111_v60 = vpop.f32.mrb[38].mxu0 }
 0x370   :  { %v1855_v61 = vpack.c.bf16 %v1848_v19, %v1844_v16  ;;  %v1850_v6 = vpop.f32.mrb[55].mxu1  ;;  %v1745_v48 = vpack.c.bf16 %v10111_v60, %v10104_v46  ;;  %v10115_v51 = vpop.f32.mrb[39].mxu0  ;;  %v8528_v19 = vld [vmem:[%s12091_s29 + $0x214] ss:$8 sps:$4 sm:$0xff]   ;;  %v3025_v60 = vld [vmem:[%s12093_s3 + $0x8] sm:$0xff] }
 0x371   :  { %2266 = vmatpush1.bf16.msra.mxu1 %v8478_v35  ;;  %v1856_v4 = vpack.c.bf16 %v1850_v6, %v1846_v55  ;;  %v1746_v7 = vpack.c.bf16 %v10115_v51, %v10109_v57  ;;  %v8525_v35 = vld [vmem:[%s12091_s29 + $0x204] ss:$8 sps:$4 sm:$0xff]   ;;  %v8534_v57 = vld [vmem:[%s12091_s29 + $0x234] ss:$8 sps:$4 sm:$0xff]   ;;  %v8532_v51 = vld [vmem:[%s12091_s29 + $0x230] ss:$8 sps:$4 sm:$0xff]  }
 0x372   :  { %2267 = vmatprep.subr.bf16.mxu1 %v8483_v52  ;;  %v8523_v52 = vld [vmem:[%s12091_s29 + $0x200] ss:$8 sps:$4 sm:$0xff]  }
 0x373   :  { %2092 = vmatprep.mubr.bf16.mxu1 %v1856_v4 }
 0x374   :  { %2093 = vmatmul.mubr.bf16.gmra.mrb[60].mxu1 %v1855_v61 }
 0x375   :  { %2268 = vmatpush1.bf16.msra.mxu1 %v8481_v5  ;;  %2295 = vmatprep.mubr.bf16.mxu1 %v1744_v27  ;;  %v10128_v21 = vpop.f32.mrb[40].mxu0  ;;  %v8526_v5 = vld [vmem:[%s12091_s29 + $0x210] ss:$8 sps:$4 sm:$0xff]  }
 0x376   :  { %2269 = vmatprep.subr.bf16.mxu1 %v8486_v9  ;;  %v10133_v25 = vpop.f32.mrb[41].mxu0 }
 0x377   :  { %v10135_v33 = vpop.f32.mrb[42].mxu0 }
 0x378   :  { %v2390_v37 = vpack.c.bf16 %v10135_v33, %v10128_v21  ;;  %v10139_v62 = vpop.f32.mrb[43].mxu0  ;;  %v8577_v21 = vld [vmem:[%s12091_s29 + $0x320] ss:$8 sps:$4 sm:$0xff]   ;;  %v8582_v33 = vld [vmem:[%s12091_s29 + $0x334] ss:$8 sps:$4 sm:$0xff]  }
 0x379   :  { %2270 = vmatpush1.bf16.msra.mxu1 %v8484_v17  ;;  %v2391_v41 = vpack.c.bf16 %v10139_v62, %v10133_v25  ;;  %v3040_v17 = vld [vmem:[%s12093_s3 + $0x80] sm:$0xff]  ;;  %v3043_v25 = vld [vmem:[%s12093_s3 + $0x98] sm:$0xff] }
 0x37a   :  { %2271 = vmatprep.subr.bf16.mxu1 %v8489_v22  ;;  %v3041_v22 = vld [vmem:[%s12093_s3 + $0x88] sm:$0xff] }
 0x37b   :  { %v10296_v46 = vpack.c.bf16 %v3041_v22, %v3040_v17  ;;  %v8595_v17 = vld [vmem:[%s12091_s29 + $0x380] ss:$8 sps:$4 sm:$0xff]   ;;  %v8600_v22 = vld [vmem:[%s12091_s29 + $0x394] ss:$8 sps:$4 sm:$0xff]  }
 0x37d   :  { %2272 = vmatpush1.bf16.msra.mxu1 %v8487_v38  ;;  %v10194_v24 = vpop.f32.mrb[44].mxu0  ;;  %v3024_v38 = vld [vmem:[%s12093_s3] sm:$0xff]  ;;  %7890 = vmatprep.subr.bf16.mxu0 %v10296_v46 }
 0x37e   :  { %2273 = vmatprep.subr.bf16.mxu1 %v8492_v43  ;;  %v10199_v28 = vpop.f32.mrb[45].mxu0  ;;  %v10307_v62 = vpack.c.bf16 %v3025_v60, %v3024_v38  ;;  %v3026_v43 = vld [vmem:[%s12093_s3 + $0x10] sm:$0xff]  ;;  %v8603_v60 = vld [vmem:[%s12091_s29 + $0x3a4] ss:$8 sps:$4 sm:$0xff]  }
 0x37f   :  { %v10201_v29 = vpop.f32.mrb[46].mxu0  ;;  %v8598_v38 = vld [vmem:[%s12091_s29 + $0x390] ss:$8 sps:$4 sm:$0xff]  }
 0x380   :  { %v2392_v31 = vpack.c.bf16 %v10201_v29, %v10194_v24  ;;  %v10205_v34 = vpop.f32.mrb[47].mxu0  ;;  %7892 = vmatpush3.bf16.msra.mxu0 %v10307_v62  ;;  %v8583_v24 = vld [vmem:[%s12091_s29 + $0x340] ss:$8 sps:$4 sm:$0xff]   ;;  %v8588_v29 = vld [vmem:[%s12091_s29 + $0x354] ss:$8 sps:$4 sm:$0xff]  }
 0x381   :  { %2274 = vmatpush1.bf16.msra.mxu1 %v8490_v14  ;;  %v2393_v59 = vpack.c.bf16 %v10205_v34, %v10199_v28  ;;  %v3027_v14 = vld [vmem:[%s12093_s3 + $0x18] sm:$0xff]  ;;  %v8585_v28 = vld [vmem:[%s12091_s29 + $0x344] ss:$8 sps:$4 sm:$0xff]  }
 0x382   :  { %2275 = vmatprep.subr.bf16.mxu1 %v8495_v23  ;;  %v8535_v23 = vld [vmem:[%s12091_s29 + $0x240] ss:$8 sps:$4 sm:$0xff]   ;;  %v8591_v34 = vld [vmem:[%s12091_s29 + $0x364] ss:$8 sps:$4 sm:$0xff]  }
 0x385   :  { %2276 = vmatpush1.bf16.msra.mxu1 %v8493_v44  ;;  %v10218_v49 = vpop.f32.mrb[48].mxu0  ;;  %v10322_v44 = vpack.c.bf16 %v3027_v14, %v3026_v43  ;;  %v8604_v43 = vld [vmem:[%s12091_s29 + $0x3b0] ss:$8 sps:$4 sm:$0xff]   ;;  %v8609_v14 = vld [vmem:[%s12091_s29 + $0x3c4] ss:$8 sps:$4 sm:$0xff]  }
 0x386   :  { %2277 = vmatprep.subr.bf16.mxu1 %v8498_v47  ;;  %v10223_v53 = vpop.f32.mrb[49].mxu0  ;;  %v8540_v47 = vld [vmem:[%s12091_s29 + $0x254] ss:$8 sps:$4 sm:$0xff]  }
 0x387   :  { %v10225_v54 = vpop.f32.mrb[50].mxu0 }
 0x388   :  { %v2722_v27 = vpack.c.bf16 %v10225_v54, %v10218_v49  ;;  %v10232_v32 = vpop.f32.mrb[51].mxu0  ;;  %v3028_v54 = vld [vmem:[%s12093_s3 + $0x20] sm:$0xff] }
 0x389   :  { %2278 = vmatpush1.bf16.msra.mxu1 %v8496_v30  ;;  %v2723_v16 = vpack.c.bf16 %v10232_v32, %v10223_v53  ;;  %v8538_v30 = vld [vmem:[%s12091_s29 + $0x250] ss:$8 sps:$4 sm:$0xff]   ;;  %v8594_v53 = vld [vmem:[%s12091_s29 + $0x374] ss:$8 sps:$4 sm:$0xff]  }
 0x38a   :  { %2279 = vmatprep.subr.bf16.mxu1 %v8501_v39  ;;  %v8543_v39 = vld [vmem:[%s12091_s29 + $0x264] ss:$8 sps:$4 sm:$0xff]   ;;  %v8592_v32 = vld [vmem:[%s12091_s29 + $0x370] ss:$8 sps:$4 sm:$0xff]  }
 0x38d   :  { %2280 = vmatpush1.bf16.msra.mxu1 %v8499_v58  ;;  %v10242_v55 = vpop.f32.mrb[52].mxu0  ;;  %v8541_v58 = vld [vmem:[%s12091_s29 + $0x260] ss:$8 sps:$4 sm:$0xff]  }
 0x38e   :  { %2281 = vmatprep.subr.bf16.mxu1 %v8504_v0  ;;  %v10247_v61 = vpop.f32.mrb[53].mxu0  ;;  %v8546_v0 = vld [vmem:[%s12091_s29 + $0x274] ss:$8 sps:$4 sm:$0xff]  }
 0x38f   :  { %v10252_v6 = vpop.f32.mrb[54].mxu0 }
 0x390   :  { %v2724_v4 = vpack.c.bf16 %v10252_v6, %v10242_v55  ;;  %v10262_v9 = vpop.f32.mrb[55].mxu0  ;;  %v3047_v6 = vld [vmem:[%s12093_s3 + $0xb8] sm:$0xff] }
 0x391   :  { %2282 = vmatpush1.bf16.msra.mxu1 %v8502_v2  ;;  %v2725_v20 = vpack.c.bf16 %v10262_v9, %v10247_v61  ;;  %v8544_v2 = vld [vmem:[%s12091_s29 + $0x270] ss:$8 sps:$4 sm:$0xff]  }
 0x392   :  { %2283 = vmatprep.subr.bf16.mxu1 %v8507_v10  ;;  %v8549_v10 = vld [vmem:[%s12091_s29 + $0x284] ss:$8 sps:$4 sm:$0xff]   ;;  %v3046_v61 = vld [vmem:[%s12093_s3 + $0xb0] sm:$0xff] }
 0x393   :  { %v3030_v9 = vld [vmem:[%s12093_s3 + $0x30] sm:$0xff] }
 0x395   :  { %2284 = vmatpush1.bf16.msra.mxu1 %v8505_v8  ;;  %v8547_v8 = vld [vmem:[%s12091_s29 + $0x280] ss:$8 sps:$4 sm:$0xff]  }
 0x396   :  { %2285 = vmatprep.subr.bf16.mxu1 %v8510_v12  ;;  %v8552_v12 = vld [vmem:[%s12091_s29 + $0x294] ss:$8 sps:$4 sm:$0xff]  }
 0x399   :  { %2286 = vmatpush1.bf16.msra.mxu1 %v8508_v13  ;;  %v8550_v13 = vld [vmem:[%s12091_s29 + $0x290] ss:$8 sps:$4 sm:$0xff]  }
 0x39a   :  { %2287 = vmatprep.subr.bf16.mxu1 %v8513_v15  ;;  %v8555_v15 = vld [vmem:[%s12091_s29 + $0x2a4] ss:$8 sps:$4 sm:$0xff]  }
 0x39d   :  { %2288 = vmatpush1.bf16.msra.mxu1 %v8511_v18  ;;  %v8553_v18 = vld [vmem:[%s12091_s29 + $0x2a0] ss:$8 sps:$4 sm:$0xff]  }
 0x39e   :  { %2289 = vmatprep.subr.bf16.mxu1 %v8516_v26  ;;  %v8558_v26 = vld [vmem:[%s12091_s29 + $0x2b4] ss:$8 sps:$4 sm:$0xff]  }
 0x3a1   :  { %2290 = vmatpush1.bf16.msra.mxu1 %v8514_v40  ;;  %v8556_v40 = vld [vmem:[%s12091_s29 + $0x2b0] ss:$8 sps:$4 sm:$0xff]  }
 0x3a2   :  { %2291 = vmatprep.subr.bf16.mxu1 %v8519_v63  ;;  %v8561_v63 = vld [vmem:[%s12091_s29 + $0x2c4] ss:$8 sps:$4 sm:$0xff]  }
 0x3a5   :  { %2292 = vmatpush1.bf16.msra.mxu1 %v8517_v3  ;;  %v8559_v3 = vld [vmem:[%s12091_s29 + $0x2c0] ss:$8 sps:$4 sm:$0xff]  }
 0x3a6   :  { %2293 = vmatprep.subr.bf16.mxu1 %v8522_v36  ;;  %v8564_v36 = vld [vmem:[%s12091_s29 + $0x2d4] ss:$8 sps:$4 sm:$0xff]  }
 0x3a9   :  { %2294 = vmatpush1.bf16.msra.mxu1 %v8520_v56  ;;  %v8562_v56 = vld [vmem:[%s12091_s29 + $0x2d0] ss:$8 sps:$4 sm:$0xff]  }
 0x3aa   :  { %2587 = vmatprep.subr.bf16.mxu1 %v8525_v35  ;;  %v8567_v35 = vld [vmem:[%s12091_s29 + $0x2e4] ss:$8 sps:$4 sm:$0xff]  }
 0x3ac   :  { %2296 = vmatmul.mubr.bf16.vlgmr.msra.gmra.mrb[56].mxu1 %v1743_v50  ;;  %v8529_v50 = vld [vmem:[%s12091_s29 + $0x220] ss:$8 sps:$4 sm:$0xff]  }
 0x3ad   :  { %2588 = vmatpush1.bf16.msra.mxu1 %v8523_v52  ;;  %2305 = vmatprep.mubr.bf16.mxu1 %v1746_v7  ;;  %v8537_v7 = vld [vmem:[%s12091_s29 + $0x244] ss:$8 sps:$4 sm:$0xff]   ;;  %v8565_v52 = vld [vmem:[%s12091_s29 + $0x2e0] ss:$8 sps:$4 sm:$0xff]  }
 0x3ae   :  { %2589 = vmatprep.subr.bf16.mxu1 %v8528_v19  ;;  %v8570_v19 = vld [vmem:[%s12091_s29 + $0x2f4] ss:$8 sps:$4 sm:$0xff]  }
 0x3b1   :  { %2590 = vmatpush1.bf16.msra.mxu1 %v8526_v5  ;;  %v8568_v5 = vld [vmem:[%s12091_s29 + $0x2f0] ss:$8 sps:$4 sm:$0xff]  }
 0x3b2   :  { %2591 = vmatprep.subr.bf16.mxu1 %v8531_v42  ;;  %v8573_v42 = vld [vmem:[%s12091_s29 + $0x304] ss:$8 sps:$4 sm:$0xff]  }
 0x3b4   :  { %2306 = vmatmul.mubr.bf16.gmra.mrb[60].mxu1 %v1745_v48  ;;  %v3042_v48 = vld [vmem:[%s12093_s3 + $0x90] sm:$0xff] }
 0x3b5   :  { %2592 = vmatpush1.bf16.msra.mxu1 %v8529_v50  ;;  %2619 = vmatprep.mubr.bf16.mxu1 %v2391_v41  ;;  %v10309_v41 = vpack.c.bf16 %v3043_v25, %v3042_v48  ;;  %v8571_v50 = vld [vmem:[%s12091_s29 + $0x300] ss:$8 sps:$4 sm:$0xff]   ;;  %v8606_v25 = vld [vmem:[%s12091_s29 + $0x3b4] ss:$8 sps:$4 sm:$0xff]  }
 0x3b6   :  { %2593 = vmatprep.subr.bf16.mxu1 %v8534_v57  ;;  %v8576_v57 = vld [vmem:[%s12091_s29 + $0x314] ss:$8 sps:$4 sm:$0xff]   ;;  %v8601_v48 = vld [vmem:[%s12091_s29 + $0x3a0] ss:$8 sps:$4 sm:$0xff]  }
 0x3b7   :  { %7894 = vmatprep.subr.bf16.mxu0 %v10309_v41 }
 0x3b8   :  { %7896 = vmatpush3.bf16.msra.mxu0 %v10322_v44 }
 0x3b9   :  { %2594 = vmatpush1.bf16.msra.mxu1 %v8532_v51  ;;  %v8574_v51 = vld [vmem:[%s12091_s29 + $0x310] ss:$8 sps:$4 sm:$0xff]  }
 0x3ba   :  { %2595 = vmatprep.subr.bf16.mxu1 %v8537_v7  ;;  %v8579_v7 = vld [vmem:[%s12091_s29 + $0x324] ss:$8 sps:$4 sm:$0xff]  }
 0x3bd   :  { %2596 = vmatpush1.bf16.msra.mxu1 %v8535_v23  ;;  %v8607_v23 = vld [vmem:[%s12091_s29 + $0x3c0] ss:$8 sps:$4 sm:$0xff]  }
 0x3be   :  { %2597 = vmatprep.subr.bf16.mxu1 %v8540_v47  ;;  %v8612_v47 = vld [vmem:[%s12091_s29 + $0x3d4] ss:$8 sps:$4 sm:$0xff]  }
 0x3c1   :  { %2598 = vmatpush1.bf16.msra.mxu1 %v8538_v30  ;;  %v8610_v30 = vld [vmem:[%s12091_s29 + $0x3d0] ss:$8 sps:$4 sm:$0xff]  }
 0x3c2   :  { %2599 = vmatprep.subr.bf16.mxu1 %v8543_v39  ;;  %v8615_v39 = vld [vmem:[%s12091_s29 + $0x3e4] ss:$8 sps:$4 sm:$0xff]  }
 0x3c5   :  { %2600 = vmatpush1.bf16.msra.mxu1 %v8541_v58  ;;  %v8613_v58 = vld [vmem:[%s12091_s29 + $0x3e0] ss:$8 sps:$4 sm:$0xff]  }
 0x3c6   :  { %2601 = vmatprep.subr.bf16.mxu1 %v8546_v0  ;;  %v8618_v0 = vld [vmem:[%s12091_s29 + $0x3f4] ss:$8 sps:$4 sm:$0xff]  }
 0x3c9   :  { %2602 = vmatpush1.bf16.msra.mxu1 %v8544_v2  ;;  %v8616_v2 = vld [vmem:[%s12091_s29 + $0x3f0] ss:$8 sps:$4 sm:$0xff]  }
 0x3ca   :  { %2603 = vmatprep.subr.bf16.mxu1 %v8549_v10  ;;  %v3044_v10 = vld [vmem:[%s12093_s3 + $0xa0] sm:$0xff] }
 0x3cd   :  { %2604 = vmatpush1.bf16.msra.mxu1 %v8547_v8  ;;  %v3045_v8 = vld [vmem:[%s12093_s3 + $0xa8] sm:$0xff] }
 0x3ce   :  { %2605 = vmatprep.subr.bf16.mxu1 %v8552_v12  ;;  %v10516_v49 = vpack.c.bf16 %v3045_v8, %v3044_v10 }
 0x3d0   :  { %7898 = vmatprep.subr.bf16.mxu0 %v10516_v49 }
 0x3d1   :  { %2606 = vmatpush1.bf16.msra.mxu1 %v8550_v13  ;;  %v3048_v13 = vld [vmem:[%s12093_s3 + $0xc0] sm:$0xff] }
 0x3d2   :  { %2607 = vmatprep.subr.bf16.mxu1 %v8555_v15  ;;  %v3049_v15 = vld [vmem:[%s12093_s3 + $0xc8] sm:$0xff] }
 0x3d5   :  { %2608 = vmatpush1.bf16.msra.mxu1 %v8553_v18  ;;  %v10552_v18 = vpack.c.bf16 %v3049_v15, %v3048_v13 }
 0x3d6   :  { %2609 = vmatprep.subr.bf16.mxu1 %v8558_v26  ;;  %v3032_v26 = vld [vmem:[%s12093_s3 + $0x40] sm:$0xff] }
 0x3d9   :  { %2610 = vmatpush1.bf16.msra.mxu1 %v8556_v40  ;;  %v3033_v40 = vld [vmem:[%s12093_s3 + $0x48] sm:$0xff] }
 0x3da   :  { %2611 = vmatprep.subr.bf16.mxu1 %v8561_v63  ;;  %v10560_v63 = vpack.c.bf16 %v3033_v40, %v3032_v26 }
 0x3dd   :  { %2612 = vmatpush1.bf16.msra.mxu1 %v8559_v3  ;;  %v3050_v3 = vld [vmem:[%s12093_s3 + $0xd0] sm:$0xff] }
 0x3de   :  { %2613 = vmatprep.subr.bf16.mxu1 %v8564_v36  ;;  %v3051_v36 = vld [vmem:[%s12093_s3 + $0xd8] sm:$0xff] }
 0x3e1   :  { %2614 = vmatpush1.bf16.msra.mxu1 %v8562_v56  ;;  %v10570_v56 = vpack.c.bf16 %v3051_v36, %v3050_v3 }
 0x3e2   :  { %2615 = vmatprep.subr.bf16.mxu1 %v8567_v35  ;;  %v3034_v35 = vld [vmem:[%s12093_s3 + $0x50] sm:$0xff] }
 0x3e5   :  { %2616 = vmatpush1.bf16.msra.mxu1 %v8565_v52  ;;  %v3035_v52 = vld [vmem:[%s12093_s3 + $0x58] sm:$0xff] }
 0x3e6   :  { %2617 = vmatprep.subr.bf16.mxu1 %v8570_v19  ;;  %v10578_v19 = vpack.c.bf16 %v3035_v52, %v3034_v35 }
 0x3e9   :  { %2618 = vmatpush1.bf16.msra.mxu1 %v8568_v5  ;;  %v3052_v5 = vld [vmem:[%s12093_s3 + $0xe0] sm:$0xff] }
 0x3ea   :  { %2919 = vmatprep.subr.bf16.mxu1 %v8573_v42  ;;  %v3053_v42 = vld [vmem:[%s12093_s3 + $0xe8] sm:$0xff] }
 0x3ec   :  { %2620 = vmatmul.mubr.bf16.vlgmr.msra.gmra.mrb[56].mxu1 %v2390_v37  ;;  %v8580_v37 = vld [vmem:[%s12091_s29 + $0x330] ss:$8 sps:$4 sm:$0xff]  }
 0x3ed   :  { %2920 = vmatpush1.bf16.msra.mxu1 %v8571_v50  ;;  %2629 = vmatprep.mubr.bf16.mxu1 %v2393_v59  ;;  %v8589_v59 = vld [vmem:[%s12091_s29 + $0x360] ss:$8 sps:$4 sm:$0xff]   ;;  %v10588_v50 = vpack.c.bf16 %v3053_v42, %v3052_v5 }
 0x3ee   :  { %2921 = vmatprep.subr.bf16.mxu1 %v8576_v57  ;;  %v3036_v57 = vld [vmem:[%s12093_s3 + $0x60] sm:$0xff] }
 0x3f1   :  { %2922 = vmatpush1.bf16.msra.mxu1 %v8574_v51  ;;  %v3037_v51 = vld [vmem:[%s12093_s3 + $0x68] sm:$0xff] }
 0x3f2   :  { %2923 = vmatprep.subr.bf16.mxu1 %v8579_v7  ;;  %v10596_v7 = vpack.c.bf16 %v3037_v51, %v3036_v57 }
 0x3f4   :  { %2630 = vmatmul.mubr.bf16.gmra.mrb[60].mxu1 %v2392_v31  ;;  %v8586_v31 = vld [vmem:[%s12091_s29 + $0x350] ss:$8 sps:$4 sm:$0xff]  }
 0x3f5   :  { %2924 = vmatpush1.bf16.msra.mxu1 %v8577_v21  ;;  %2951 = vmatprep.mubr.bf16.mxu1 %v2723_v16  ;;  %v8597_v16 = vld [vmem:[%s12091_s29 + $0x384] ss:$8 sps:$4 sm:$0xff]   ;;  %v3054_v21 = vld [vmem:[%s12093_s3 + $0xf0] sm:$0xff] }
 0x3f6   :  { %2925 = vmatprep.subr.bf16.mxu1 %v8582_v33  ;;  %v3055_v33 = vld [vmem:[%s12093_s3 + $0xf8] sm:$0xff] }
 0x3f9   :  { %2926 = vmatpush1.bf16.msra.mxu1 %v8580_v37  ;;  %v10606_v37 = vpack.c.bf16 %v3055_v33, %v3054_v21 }
 0x3fa   :  { %2927 = vmatprep.subr.bf16.mxu1 %v8585_v28  ;;  %v3038_v28 = vld [vmem:[%s12093_s3 + $0x70] sm:$0xff] }
 0x3fd   :  { %2928 = vmatpush1.bf16.msra.mxu1 %v8583_v24  ;;  %v3039_v24 = vld [vmem:[%s12093_s3 + $0x78] sm:$0xff] }
 0x3fe   :  { %2929 = vmatprep.subr.bf16.mxu1 %v8588_v29  ;;  %v10614_v29 = vpack.c.bf16 %v3039_v24, %v3038_v28 }
 0x401   :  { %2930 = vmatpush1.bf16.msra.mxu1 %v8586_v31 }
 0x402   :  { %2931 = vmatprep.subr.bf16.mxu1 %v8591_v34 }
 0x405   :  { %2932 = vmatpush1.bf16.msra.mxu1 %v8589_v59 }
 0x406   :  { %2933 = vmatprep.subr.bf16.mxu1 %v8594_v53 }
 0x409   :  { %2934 = vmatpush1.bf16.msra.mxu1 %v8592_v32 }
 0x40a   :  { %2935 = vmatprep.subr.bf16.mxu1 %v8597_v16 }
 0x40d   :  { %2936 = vmatpush1.bf16.msra.mxu1 %v8595_v17 }
 0x40e   :  { %2937 = vmatprep.subr.bf16.mxu1 %v8600_v22 }
 0x411   :  { %2938 = vmatpush1.bf16.msra.mxu1 %v8598_v38 }
 0x412   :  { %2939 = vmatprep.subr.bf16.mxu1 %v8603_v60 }
 0x415   :  { %2940 = vmatpush1.bf16.msra.mxu1 %v8601_v48 }
 0x416   :  { %2941 = vmatprep.subr.bf16.mxu1 %v8606_v25 }
 0x419   :  { %2942 = vmatpush1.bf16.msra.mxu1 %v8604_v43 }
 0x41a   :  { %2943 = vmatprep.subr.bf16.mxu1 %v8609_v14 }
 0x41d   :  { %2944 = vmatpush1.bf16.msra.mxu1 %v8607_v23 }
 0x41e   :  { %2945 = vmatprep.subr.bf16.mxu1 %v8612_v47 }
 0x421   :  { %2946 = vmatpush1.bf16.msra.mxu1 %v8610_v30 }
 0x422   :  { %2947 = vmatprep.subr.bf16.mxu1 %v8615_v39 }
 0x425   :  { %2948 = vmatpush1.bf16.msra.mxu1 %v8613_v58 }
 0x426   :  { %2949 = vmatprep.subr.bf16.mxu1 %v8618_v0 }
 0x429   :  { %2950 = vmatpush1.bf16.msra.mxu1 %v8616_v2 }
 0x42c   :  { %2952 = vmatmul.mubr.bf16.vlgmr.msra.gmra.mrb[56].mxu1 %v2722_v27  ;;  %v3029_v27 = vld [vmem:[%s12093_s3 + $0x28] sm:$0xff] }
 0x42d   :  { %2961 = vmatprep.mubr.bf16.mxu1 %v2725_v20  ;;  %v10524_v55 = vpack.c.bf16 %v3029_v27, %v3028_v54  ;;  %v3031_v20 = vld [vmem:[%s12093_s3 + $0x38] sm:$0xff] }
 0x42e   :  { %v10542_v12 = vpack.c.bf16 %v3031_v20, %v3030_v9 }
 0x42f   :  { %7900 = vmatpush3.bf16.msra.mxu0 %v10524_v55 }
 0x434   :  { %2962 = vmatmul.mubr.bf16.gmra.mrb[60].mxu1 %v2724_v4  ;;  %v10534_v4 = vpack.c.bf16 %v3047_v6, %v3046_v61 }
 0x435   :  { %4075 = vmatprep.mubr.bf16.mxu1 %v9013_v1 }
 0x436   :  { %7902 = vmatprep.subr.bf16.mxu0 %v10534_v4 }
 0x437   :  { %7904 = vmatpush3.bf16.msra.mxu0 %v10542_v12 }
 0x438   :  { %7906 = vmatprep.subr.bf16.mxu0 %v10552_v18 }
 0x43b   :  { %7908 = vmatpush3.bf16.msra.mxu0 %v10560_v63 }
 0x43c   :  { %7910 = vmatprep.subr.bf16.mxu0 %v10570_v56 }
 0x43f   :  { %7912 = vmatpush3.bf16.msra.mxu0 %v10578_v19 }
 0x440   :  { %7914 = vmatprep.subr.bf16.mxu0 %v10588_v50 }
 0x443   :  { %7916 = vmatpush3.bf16.msra.mxu0 %v10596_v7 }
 0x444   :  { %7918 = vmatprep.subr.bf16.mxu0 %v10606_v37 }
 0x447   :  { %7920 = vmatpush3.bf16.msra.mxu0 %v10614_v29 }
 0x448   :  { %7922 = vmatprep.subr.bf16.mxu0 %v10296_v46 }
 0x4ff   :  { %v10619_v31 = vpop.f32.mrb[56].mxu1 }
 0x500   :  { %v10621_v34 = vpop.f32.mrb[57].mxu1  ;;  %v2998_v53 = vmul.f32 %v10619_v31, %v10619_v31 }
 0x501   :  { %v10623_v59 = vpop.f32.mrb[58].mxu1  ;;  %v2999_v46 = vmul.f32 %v10621_v34, %v10621_v34 }
 0x502   :  { %v2980_v32 = vadd.f32 %v10623_v59, %v10619_v31  ;;  %v3000_v16 = vmul.f32 %v10623_v59, %v10623_v59  ;;  %v10631_v17 = vpop.f32.mrb[59].mxu1 }
 0x503   :  { %v2989_v22 = vadd.f32 %v10631_v17, %v10621_v34  ;;  %v3001_v38 = vmul.f32 %v10631_v17, %v10631_v17 }
 0x504   :  { %v3006_v60 = vadd.f32 %v3000_v16, %v2998_v53 }
 0x505   :  { %v3015_v48 = vadd.f32 %v3001_v38, %v2999_v46 }
 0x507   :  { %v10639_v25 = vpop.f32.mrb[60].mxu1 }
 0x508   :  { %v2981_v43 = vadd.f32 %v2980_v32, %v10639_v25  ;;  %v3002_v14 = vmul.f32 %v10639_v25, %v10639_v25  ;;  %v10644_v23 = vpop.f32.mrb[61].mxu1 }
 0x509   :  { %v2990_v47 = vadd.f32 %v2989_v22, %v10644_v23  ;;  %v3003_v30 = vmul.f32 %v10644_v23, %v10644_v23  ;;  %v10649_v39 = vpop.f32.mrb[62].mxu1 }
 0x50a   :  { %v3007_v58 = vadd.f32 %v3006_v60, %v3002_v14  ;;  %v2982_v0 = vadd.f32 %v2981_v43, %v10649_v39  ;;  %v3004_v2 = vmul.f32 %v10649_v39, %v10649_v39  ;;  %v10654_v10 = vpop.f32.mrb[63].mxu1 }
 0x50b   :  { %v3016_v8 = vadd.f32 %v3015_v48, %v3003_v30  ;;  %v2991_v54 = vadd.f32 %v2990_v47, %v10654_v10  ;;  %v3005_v27 = vmul.f32 %v10654_v10, %v10654_v10 }
 0x50c   :  { %v2983_v61 = vrot.slane %v2982_v0, 4  ;;  %v3008_v6 = vadd.f32 %v3007_v58, %v3004_v2 }
 0x50d   :  { %v2992_v9 = vrot.slane %v2991_v54, 4  ;;  %v3017_v20 = vadd.f32 %v3016_v8, %v3005_v27 }
 0x50e   :  { %v2984_v13 = vadd.f32 %v2983_v61, %v2982_v0  ;;  %v3009_v53 = vrot.slane %v3008_v6, 4 }
 0x50f   :  { %v2993_v15 = vadd.f32 %v2992_v9, %v2991_v54  ;;  %v3018_v26 = vrot.slane %v3017_v20, 4 }
 0x510   :  { %v2985_v40 = vrot.slane %v2984_v13, 2  ;;  %v3010_v32 = vadd.f32 %v3009_v53, %v3008_v6 }
 0x511   :  { %v2994_v3 = vrot.slane %v2993_v15, 2  ;;  %v3019_v36 = vadd.f32 %v3018_v26, %v3017_v20 }
 0x512   :  { %v2986_v35 = vadd.f32 %v2985_v40, %v2984_v13  ;;  %v3371_v13 = vld [vmem:[%s12052_s6] sm:$0x3] }
 0x513   :  { %v2995_v52 = vadd.f32 %v2994_v3, %v2993_v15  ;;  %v3020_v5 = vrot.slane %v3019_v36, 2 }
 0x514   :  { %v2987_v42 = vrot.slane %v2986_v35, 1 }
 0x515   :  { %v2996_v57 = vrot.slane %v2995_v52, 1  ;;  %v3021_v51 = vadd.f32 %v3020_v5, %v3019_v36 }
 0x516   :  { %v2988_v28 = vadd.f32 %v2987_v42, %v2986_v35 }
 0x517   :  { %v2997_v21 = vadd.f32 %v2996_v57, %v2995_v52  ;;  %v3022_v33 = vrot.slane %v3021_v51, 1 }
 0x519   :  { %3120 = vmatprep.mubr.f32.mxu0 %v2997_v21  ;;  %v3023_v24 = vadd.f32 %v3022_v33, %v3021_v51 }
 0x51a   :  { %3121 = vmatmul.mubr.f32.vlgmr.msra.gmra.mrb[56].mxu0 %v2988_v28 }
 0x51b   :  { %7924 = vmatpush3.bf16.msra.mxu0 %v10307_v62  ;;  %3191 = vmatprep.mubr.f32.mxu0 %v3023_v24  ;;  %v3011_v62 = vrot.slane %v3010_v32, 2 }
 0x51c   :  { %7926 = vmatprep.subr.bf16.mxu0 %v10309_v41 }
 0x51d   :  { %v3012_v41 = vadd.f32 %v3011_v62, %v3010_v32 }
 0x51f   :  { %7928 = vmatpush3.bf16.msra.mxu0 %v10322_v44  ;;  %v3013_v44 = vrot.slane %v3012_v41, 1 }
 0x520   :  { %7930 = vmatprep.subr.bf16.mxu0 %v10516_v49 }
 0x521   :  { %v3014_v49 = vadd.f32 %v3013_v44, %v3012_v41 }
 0x523   :  { %7932 = vmatpush3.bf16.msra.mxu0 %v10524_v55  ;;  %v3203_v55 = vld [vmem:[%s12094_s0 + $0x8] sm:$0xff] }
 0x524   :  { %7934 = vmatprep.subr.bf16.mxu0 %v10534_v4  ;;  %v3205_v4 = vld [vmem:[%s12094_s0 + $0x18] sm:$0xff] }
 0x527   :  { %7936 = vmatpush3.bf16.msra.mxu0 %v10542_v12  ;;  %v7953_v12 = vpack.c.bf16 %v3205_v4, %v3203_v55 }
 0x528   :  { %7938 = vmatprep.subr.bf16.mxu0 %v10552_v18  ;;  %v3202_v18 = vld [vmem:[%s12094_s0] sm:$0xff] }
 0x52b   :  { %7940 = vmatpush3.bf16.msra.mxu0 %v10560_v63  ;;  %v3204_v63 = vld [vmem:[%s12094_s0 + $0x10] sm:$0xff] }
 0x52c   :  { %7942 = vmatprep.subr.bf16.mxu0 %v10570_v56  ;;  %v7955_v56 = vpack.c.bf16 %v3204_v63, %v3202_v18 }
 0x52f   :  { %7944 = vmatpush3.bf16.msra.mxu0 %v10578_v19  ;;  %v9014_v19 = vmov 0.0  }
 0x530   :  { %7946 = vmatprep.subr.bf16.mxu0 %v10588_v50 }
 0x533   :  { %7948 = vmatpush3.bf16.msra.mxu0 %v10596_v7 }
 0x534   :  { %7950 = vmatprep.subr.bf16.mxu0 %v10606_v37 }
 0x537   :  { %7952 = vmatpush3.bf16.msra.mxu0 %v10614_v29 }
 0x538   :  { %7954 = vmatprep.subr.bf16.mxu0 %v7953_v12 }
 0x53a   :  { %3192 = vmatmul.mubr.f32.vlgmr.msra.gmra.mrb[58].mxu0 %v3014_v49 }
 0x53b   :  { %7956 = vmatpush1.bf16.msra.mxu0 %v7955_v56  ;;  %3274 = vmatprep.mubr.f32.mxu0 %v9014_v19 }
 0x53c   :  { %7958 = vmatprep.subr.bf16.mxu0 %v7953_v12 }
 0x5ed   :  { %v7711_v50 = vpop.f32.mrb[56].mxu0 }
 0x5ee   :  { %v7712_v7 = vpop.f32.mrb[57].mxu0 }
 0x5ef   :  { %v7713_v37 = vadd.f32 %v7712_v7, %v7711_v50 }
 0x5f1   :  { %v3126_v29 = vmul.f32 0.001953125, %v7713_v37 }
 0x5f3   :  { %7202 = vmatmul.mubr.msk.f32.vlgmr.msra.gmra.mrb[60].mxu0 %vm3206_vm2, %v3126_v29  ;;  %v3198_v38 = vmul.f32 %v3126_v29, %v3126_v29 }
 0x5f4   :  { %7960 = vmatpush1.bf16.msra.mxu0 %v7955_v56  ;;  %3348 = vmatprep.mubr.f32.mxu0 %v9014_v19 }
 0x60d   :  { %v7746_v16 = vpop.f32.mrb[58].mxu0 }
 0x60e   :  { %v7747_v46 = vpop.f32.mrb[59].mxu0 }
 0x60f   :  { %v7748_v22 = vadd.f32 %v7747_v46, %v7746_v16 }
 0x611   :  { %v3197_v60 = vmul.f32 0.001953125, %v7748_v22 }
 0x613   :  { %v3199_v48 = vsub.f32 %v3197_v60, %v3198_v38 }
 0x615   :  { %v3200_v43 = vadd.f32 1e-05, %v3199_v48 }
 0x617   :  { %9007 = vrsqrt.f32 %v3200_v43 }
 0x621   :  { %v9008_v14 = vpop.eup %9007 }
 0x622   :  { %7203 = vmatmul.mubr.msk.f32.vlgmr.msra.gmra.mrb[62].mxu0 %vm3206_vm2, %v9008_v14 }
 0x623   :  { %3492 = vmatprep.mubr.bf16.mxu0 %v9013_v1 }
 0x6c6   :  { %v3276_v47 = vpop.f32.mrb[60].mxu0 }
 0x6c7   :  { %v3358_v30 = vrot.slane %v3276_v47, %v9875_v45  ;;  %v3278_v58 = vpop.f32.mrb[61].mxu0  ;;  %v8619_v47 = vld [vmem:[%s12095_s11] sm:$0xff]  }
 0x6c8   :  { %v3362_v0 = vrot.slane %v3278_v58, %v9875_v45  ;;  %v8624_v58 = vld [vmem:[%s12096_s2 + $0x104] ss:$8 sps:$4 sm:$0xff]  }
 0x6c9   :  { %v3363_v2 = vsub.f32 %v10619_v31, %v3358_v30  ;;  %v3365_v8 = vsub.f32 %v10623_v59, %v3358_v30  ;;  %v3367_v54 = vsub.f32 %v10639_v25, %v3358_v30  ;;  %v3369_v27 = vsub.f32 %v10649_v39, %v3358_v30  ;;  %v3401_v25 = vld [vmem:[%s12053_s7] sm:$0x3]  ;;  %v8620_v30 = vld [vmem:[%s12095_s11 + $0x10] sm:$0xff]  }
 0x6ca   :  { %v3364_v61 = vsub.f32 %v10621_v34, %v3362_v0  ;;  %v3366_v6 = vsub.f32 %v10631_v17, %v3362_v0  ;;  %v3368_v9 = vsub.f32 %v10644_v23, %v3362_v0  ;;  %v3370_v20 = vsub.f32 %v10654_v10, %v3362_v0  ;;  %v8621_v0 = vld [vmem:[%s12095_s11 + $0x8] sm:$0xff]  }
 0x6cb   :  { %v3376_v31 = vrot.slane %v3371_v13, %v9875_v45  ;;  %v3380_v59 = vrot.slane %v3371_v13, %v9880_v11  ;;  %v3406_v10 = vrot.slane %v3401_v25, %v9875_v45  ;;  %v3410_v40 = vrot.slane %v3401_v25, %v9880_v11  ;;  %v8636_v13 = vld [vmem:[%s12096_s2 + $0x144] ss:$8 sps:$4 sm:$0xff]  }
 0x6cc   :  { %v8642_v25 = vld [vmem:[%s12096_s2 + $0x164] ss:$8 sps:$4 sm:$0xff]  }
 0x6f5   :  { %v3350_v15 = vpop.f32.mrb[62].mxu0 }
 0x6f6   :  { %v3383_v34 = vmul.f32 %v3376_v31, %v3350_v15  ;;  %v3352_v39 = vpop.f32.mrb[63].mxu0  ;;  %v8634_v31 = vld [vmem:[%s12096_s2 + $0x140] ss:$8 sps:$4 sm:$0xff]   ;;  %v8637_v15 = vld [vmem:[%s12096_s2 + $0x150] ss:$8 sps:$4 sm:$0xff]  }
 0x6f7   :  { %v3384_v17 = vmul.f32 %v3380_v59, %v3352_v39  ;;  %v8639_v59 = vld [vmem:[%s12096_s2 + $0x154] ss:$8 sps:$4 sm:$0xff]  }
 0x6f8   :  { %v3388_v23 = vrot.slane %v3383_v34, %v9875_v45  ;;  %v8640_v34 = vld [vmem:[%s12096_s2 + $0x160] ss:$8 sps:$4 sm:$0xff]   ;;  %v8645_v39 = vld [vmem:[%s12096_s2 + $0x174] ss:$8 sps:$4 sm:$0xff]  }
 0x6f9   :  { %v3392_v26 = vrot.slane %v3384_v17, %v9875_v45  ;;  %v8643_v17 = vld [vmem:[%s12096_s2 + $0x170] ss:$8 sps:$4 sm:$0xff]  }
 0x6fa   :  { %v3393_v3 = vmul.f32 %v3388_v23, %v3363_v2  ;;  %v3395_v36 = vmul.f32 %v3388_v23, %v3365_v8  ;;  %v3397_v35 = vmul.f32 %v3388_v23, %v3367_v54  ;;  %v3399_v52 = vmul.f32 %v3388_v23, %v3369_v27  ;;  %v8652_v2 = vld [vmem:[%s12095_s11 + $0x18] sm:$0xff]   ;;  %v8622_v8 = vld [vmem:[%s12096_s2 + $0x100] ss:$8 sps:$4 sm:$0xff]   ;;  %v8648_v23 = vld [vmem:[%s12096_s2 + $0x184] ss:$8 sps:$4 sm:$0xff]  }
 0x6fb   :  { %v3394_v5 = vmul.f32 %v3392_v26, %v3364_v61  ;;  %v3396_v42 = vmul.f32 %v3392_v26, %v3366_v6  ;;  %v3398_v57 = vmul.f32 %v3392_v26, %v3368_v9  ;;  %v3400_v51 = vmul.f32 %v3392_v26, %v3370_v20  ;;  %v8627_v54 = vld [vmem:[%s12096_s2 + $0x114] ss:$8 sps:$4 sm:$0xff]   ;;  %v8625_v27 = vld [vmem:[%s12096_s2 + $0x110] ss:$8 sps:$4 sm:$0xff]   ;;  %v8630_v61 = vld [vmem:[%s12096_s2 + $0x124] ss:$8 sps:$4 sm:$0xff]  }
 0x6fc   :  { %v3413_v21 = vadd.f32 %v3406_v10, %v3393_v3  ;;  %v3415_v33 = vadd.f32 %v3406_v10, %v3395_v36  ;;  %v3417_v28 = vadd.f32 %v3406_v10, %v3397_v35  ;;  %v3419_v24 = vadd.f32 %v3406_v10, %v3399_v52  ;;  %v8628_v6 = vld [vmem:[%s12096_s2 + $0x120] ss:$8 sps:$4 sm:$0xff]   ;;  %v8633_v9 = vld [vmem:[%s12096_s2 + $0x134] ss:$8 sps:$4 sm:$0xff]   ;;  %v8631_v20 = vld [vmem:[%s12096_s2 + $0x130] ss:$8 sps:$4 sm:$0xff]  }
 0x6fd   :  { %v3414_v53 = vadd.f32 %v3410_v40, %v3394_v5  ;;  %v3416_v32 = vadd.f32 %v3410_v40, %v3396_v42  ;;  %v3418_v62 = vadd.f32 %v3410_v40, %v3398_v57  ;;  %v3420_v41 = vadd.f32 %v3410_v40, %v3400_v51  ;;  %v8646_v10 = vld [vmem:[%s12096_s2 + $0x180] ss:$8 sps:$4 sm:$0xff]   ;;  %v8651_v26 = vld [vmem:[%s12096_s2 + $0x194] ss:$8 sps:$4 sm:$0xff]   ;;  %v8649_v40 = vld [vmem:[%s12096_s2 + $0x190] ss:$8 sps:$4 sm:$0xff]  }
 0x6fe   :  { %vm3421_vm3 = vcmp.gt.f32.partialorder %v3413_v21, 0.0  ;;  %vm3423_vm4 = vcmp.gt.f32.partialorder %v3415_v33, 0.0  ;;  %v3429_v44 = vmul.f32 0.2, %v3413_v21  ;;  %v3431_v49 = vmul.f32 0.2, %v3415_v33 }
 0x6ff   :  { %vm3422_vm5 = vcmp.gt.f32.partialorder %v3414_v53, 0.0  ;;  %vm3424_vm6 = vcmp.gt.f32.partialorder %v3416_v32, 0.0  ;;  %v3430_v55 = vmul.f32 0.2, %v3414_v53  ;;  %v3432_v4 = vmul.f32 0.2, %v3416_v32 }
 0x700   :  { %v3437_v12 = vsel %vm3421_vm3, %v3413_v21, %v3429_v44  ;;  %v3439_v18 = vsel %vm3423_vm4, %v3415_v33, %v3431_v49  ;;  %vm3426_vm7 = vcmp.gt.f32.partialorder %v3418_v62, 0.0  ;;  %vm3428_vm8 = vcmp.gt.f32.partialorder %v3420_v41, 0.0  ;;  %v8655_v3 = vld [vmem:[%s12096_s2 + $0x1a4] ss:$8 sps:$4 sm:$0xff]   ;;  %v8653_v36 = vld [vmem:[%s12096_s2 + $0x1a0] ss:$8 sps:$4 sm:$0xff]  }
 0x701   :  { %v3438_v63 = vsel %vm3422_vm5, %v3414_v53, %v3430_v55  ;;  %v3440_v56 = vsel %vm3424_vm6, %v3416_v32, %v3432_v4  ;;  %v3445_v50 = vpack.c.bf16 %v3439_v18, %v3437_v12  ;;  %v3434_v7 = vmul.f32 0.2, %v3418_v62  ;;  %v8658_v35 = vld [vmem:[%s12096_s2 + $0x1b4] ss:$8 sps:$4 sm:$0xff]   ;;  %v8656_v52 = vld [vmem:[%s12096_s2 + $0x1b0] ss:$8 sps:$4 sm:$0xff]  }
 0x702   :  { %v3446_v37 = vpack.c.bf16 %v3440_v56, %v3438_v63  ;;  %v3436_v29 = vmul.f32 0.2, %v3420_v41  ;;  %vm3425_vm9 = vcmp.gt.f32.partialorder %v3417_v28, 0.0  ;;  %vm3427_vm10 = vcmp.gt.f32.partialorder %v3419_v24, 0.0  ;;  %v8661_v5 = vld [vmem:[%s12096_s2 + $0x1c4] ss:$8 sps:$4 sm:$0xff]  }
 0x703   :  { %v3442_v16 = vsel %vm3426_vm7, %v3418_v62, %v3434_v7  ;;  %v3433_v46 = vmul.f32 0.2, %v3417_v28  ;;  %v3435_v22 = vmul.f32 0.2, %v3419_v24  ;;  %v8659_v42 = vld [vmem:[%s12096_s2 + $0x1c0] ss:$8 sps:$4 sm:$0xff]  }
 0x704   :  { %3460 = vmatprep.subr.bf16.mxu0 %v3446_v37  ;;  %4043 = vmatprep.subr.bf16.mxu1 %v3446_v37  ;;  %v3444_v38 = vsel %vm3428_vm8, %v3420_v41, %v3436_v29  ;;  %v8662_v57 = vld [vmem:[%s12096_s2 + $0x1d0] ss:$8 sps:$4 sm:$0xff]   ;;  %v8664_v51 = vld [vmem:[%s12096_s2 + $0x1d4] ss:$8 sps:$4 sm:$0xff]   ;;  %v8667_v21 = vld [vmem:[%s12096_s2 + $0x1e4] ss:$8 sps:$4 sm:$0xff]  }
 0x705   :  { %3461 = vmatpush1.bf16.msra.mxu0 %v3445_v50  ;;  %4044 = vmatpush1.bf16.msra.mxu1 %v3445_v50  ;;  %v3448_v60 = vpack.c.bf16 %v3444_v38, %v3442_v16  ;;  %v3441_v48 = vsel %vm3425_vm9, %v3417_v28, %v3433_v46  ;;  %v3443_v43 = vsel %vm3427_vm10, %v3419_v24, %v3435_v22  ;;  %v8665_v33 = vld [vmem:[%s12096_s2 + $0x1e0] ss:$8 sps:$4 sm:$0xff]   ;;  %v8668_v28 = vld [vmem:[%s12096_s2 + $0x1f0] ss:$8 sps:$4 sm:$0xff]   ;;  %v8670_v24 = vld [vmem:[%s12096_s2 + $0x1f4] ss:$8 sps:$4 sm:$0xff]  }
 0x706   :  { %v3447_v14 = vpack.c.bf16 %v3443_v43, %v3441_v48  ;;  %v8673_v53 = vld [vmem:[%s12096_s2 + $0x4] ss:$8 sps:$4 sm:$0xff]   ;;  %v8671_v38 = vld [vmem:[%s12096_s2] ss:$8 sps:$4 sm:$0xff]   ;;  %v8674_v48 = vld [vmem:[%s12096_s2 + $0x10] ss:$8 sps:$4 sm:$0xff]  }
 0x707   :  { %3462 = vmatprep.subr.bf16.mxu0 %v3448_v60  ;;  %4045 = vmatprep.subr.bf16.mxu1 %v3448_v60  ;;  %v8679_v43 = vld [vmem:[%s12096_s2 + $0x24] ss:$8 sps:$4 sm:$0xff]   ;;  %vm6690_vm3 = vcmask 1041408   ;;  %vm6704_vm4 = vcmask 1024  }
 0x709   :  { %3463 = vmatpush1.bf16.msra.mxu0 %v3447_v14  ;;  %4046 = vmatpush1.bf16.msra.mxu1 %v3447_v14 }
 0x70a   :  { %3548 = vmatprep.subr.bf16.mxu0 %v3446_v37  ;;  %4339 = vmatprep.subr.bf16.mxu1 %v3446_v37 }
 0x70c   :  { %7205 = vmatmul.mubr.msk.bf16.vlgmr.msra.gmra.mrb[64].mxu0 %vm3456_vm11, %v8619_v47  ;;  %7309 = vmatmul.mubr.msk.bf16.vlgmr.msra.gmra.mrb[64].mxu1 %vm3456_vm11, %v8620_v30  ;;  %v8682_v47 = vld [vmem:[%s12096_s2 + $0x34] ss:$8 sps:$4 sm:$0xff]   ;;  %v8680_v30 = vld [vmem:[%s12096_s2 + $0x30] ss:$8 sps:$4 sm:$0xff]  }
 0x70d   :  { %3549 = vmatpush1.bf16.msra.mxu0 %v3445_v50  ;;  %4340 = vmatpush1.bf16.msra.mxu1 %v3445_v50 }
 0x70e   :  { %3550 = vmatprep.subr.bf16.mxu0 %v3448_v60  ;;  %4341 = vmatprep.subr.bf16.mxu1 %v3448_v60  ;;  %v8676_v60 = vld [vmem:[%s12096_s2 + $0x14] ss:$8 sps:$4 sm:$0xff]  }
 0x70f   :  { %3580 = vmatprep.mubr.bf16.mxu0 %v9013_v1  ;;  %4371 = vmatprep.mubr.bf16.mxu1 %v9013_v1 }
 0x711   :  { %3551 = vmatpush1.bf16.msra.mxu0 %v3447_v14  ;;  %4342 = vmatpush1.bf16.msra.mxu1 %v3447_v14  ;;  %v8677_v14 = vld [vmem:[%s12096_s2 + $0x20] ss:$8 sps:$4 sm:$0xff]  }
 0x712   :  { %3786 = vmatprep.subr.bf16.mxu0 %v8624_v58  ;;  %v8685_v58 = vld [vmem:[%s12096_s2 + $0x44] ss:$8 sps:$4 sm:$0xff]  }
 0x714   :  { %7209 = vmatmul.mubr.msk.bf16.vlgmr.msra.gmra.mrb[68].mxu0 %vm3456_vm11, %v8621_v0  ;;  %7377 = vmatmul.mubr.msk.bf16.vlgmr.msra.gmra.mrb[68].mxu1 %vm3456_vm11, %v8652_v2  ;;  %v8683_v0 = vld [vmem:[%s12096_s2 + $0x40] ss:$8 sps:$4 sm:$0xff]   ;;  %v8688_v2 = vld [vmem:[%s12096_s2 + $0x54] ss:$8 sps:$4 sm:$0xff]  }
 0x715   :  { %3787 = vmatpush1.bf16.msra.mxu0 %v8622_v8  ;;  %v8686_v8 = vld [vmem:[%s12096_s2 + $0x50] ss:$8 sps:$4 sm:$0xff]  }
 0x716   :  { %3788 = vmatprep.subr.bf16.mxu0 %v8627_v54  ;;  %v8691_v54 = vld [vmem:[%s12096_s2 + $0x64] ss:$8 sps:$4 sm:$0xff]  }
 0x719   :  { %3789 = vmatpush1.bf16.msra.mxu0 %v8625_v27  ;;  %v8689_v27 = vld [vmem:[%s12096_s2 + $0x60] ss:$8 sps:$4 sm:$0xff]  }
 0x71a   :  { %3790 = vmatprep.subr.bf16.mxu0 %v8630_v61  ;;  %v8694_v61 = vld [vmem:[%s12096_s2 + $0x74] ss:$8 sps:$4 sm:$0xff]  }
 0x71d   :  { %3791 = vmatpush1.bf16.msra.mxu0 %v8628_v6  ;;  %v8692_v6 = vld [vmem:[%s12096_s2 + $0x70] ss:$8 sps:$4 sm:$0xff]  }
 0x71e   :  { %3792 = vmatprep.subr.bf16.mxu0 %v8633_v9  ;;  %v8697_v9 = vld [vmem:[%s12096_s2 + $0x84] ss:$8 sps:$4 sm:$0xff]  }
 0x721   :  { %3793 = vmatpush1.bf16.msra.mxu0 %v8631_v20  ;;  %v8695_v20 = vld [vmem:[%s12096_s2 + $0x80] ss:$8 sps:$4 sm:$0xff]  }
 0x722   :  { %3794 = vmatprep.subr.bf16.mxu0 %v8636_v13  ;;  %v8700_v13 = vld [vmem:[%s12096_s2 + $0x94] ss:$8 sps:$4 sm:$0xff]  }
 0x725   :  { %3795 = vmatpush1.bf16.msra.mxu0 %v8634_v31  ;;  %v8698_v31 = vld [vmem:[%s12096_s2 + $0x90] ss:$8 sps:$4 sm:$0xff]  }
 0x726   :  { %3796 = vmatprep.subr.bf16.mxu0 %v8639_v59  ;;  %v8703_v59 = vld [vmem:[%s12096_s2 + $0xa4] ss:$8 sps:$4 sm:$0xff]  }
 0x729   :  { %3797 = vmatpush1.bf16.msra.mxu0 %v8637_v15  ;;  %v8701_v15 = vld [vmem:[%s12096_s2 + $0xa0] ss:$8 sps:$4 sm:$0xff]  }
 0x72a   :  { %3798 = vmatprep.subr.bf16.mxu0 %v8642_v25  ;;  %v8706_v25 = vld [vmem:[%s12096_s2 + $0xb4] ss:$8 sps:$4 sm:$0xff]  }
 0x72d   :  { %3799 = vmatpush1.bf16.msra.mxu0 %v8640_v34  ;;  %v8704_v34 = vld [vmem:[%s12096_s2 + $0xb0] ss:$8 sps:$4 sm:$0xff]  }
 0x72e   :  { %3800 = vmatprep.subr.bf16.mxu0 %v8645_v39  ;;  %v8709_v39 = vld [vmem:[%s12096_s2 + $0xc4] ss:$8 sps:$4 sm:$0xff]  }
 0x731   :  { %3801 = vmatpush1.bf16.msra.mxu0 %v8643_v17  ;;  %v8707_v17 = vld [vmem:[%s12096_s2 + $0xc0] ss:$8 sps:$4 sm:$0xff]  }
 0x732   :  { %3802 = vmatprep.subr.bf16.mxu0 %v8648_v23  ;;  %v8712_v23 = vld [vmem:[%s12096_s2 + $0xd4] ss:$8 sps:$4 sm:$0xff]  }
 0x735   :  { %3803 = vmatpush1.bf16.msra.mxu0 %v8646_v10  ;;  %v8710_v10 = vld [vmem:[%s12096_s2 + $0xd0] ss:$8 sps:$4 sm:$0xff]  }
 0x736   :  { %3804 = vmatprep.subr.bf16.mxu0 %v8651_v26  ;;  %v8715_v26 = vld [vmem:[%s12096_s2 + $0xe4] ss:$8 sps:$4 sm:$0xff]  }
 0x739   :  { %3805 = vmatpush1.bf16.msra.mxu0 %v8649_v40  ;;  %v8713_v40 = vld [vmem:[%s12096_s2 + $0xe0] ss:$8 sps:$4 sm:$0xff]  }
 0x73a   :  { %3806 = vmatprep.subr.bf16.mxu0 %v8655_v3 }
 0x73d   :  { %3807 = vmatpush1.bf16.msra.mxu0 %v8653_v36  ;;  %v8718_v36 = vld [vmem:[%s12096_s2 + $0xf4] ss:$8 sps:$4 sm:$0xff]  }
 0x73e   :  { %3808 = vmatprep.subr.bf16.mxu0 %v8658_v35 }
 0x741   :  { %3809 = vmatpush1.bf16.msra.mxu0 %v8656_v52  ;;  %v8716_v52 = vld [vmem:[%s12096_s2 + $0xf0] ss:$8 sps:$4 sm:$0xff]  }
 0x742   :  { %3810 = vmatprep.subr.bf16.mxu0 %v8661_v5 }
 0x745   :  { %3811 = vmatpush1.bf16.msra.mxu0 %v8659_v42  ;;  %v8721_v42 = vld [vmem:[%s12096_s2 + $0x204] ss:$8 sps:$4 sm:$0xff]  }
 0x746   :  { %3812 = vmatprep.subr.bf16.mxu0 %v8664_v51 }
 0x749   :  { %3813 = vmatpush1.bf16.msra.mxu0 %v8662_v57 }
 0x74a   :  { %3814 = vmatprep.subr.bf16.mxu0 %v8667_v21 }
 0x74d   :  { %3815 = vmatpush1.bf16.msra.mxu0 %v8665_v33  ;;  %v8719_v33 = vld [vmem:[%s12096_s2 + $0x200] ss:$8 sps:$4 sm:$0xff]  }
 0x74e   :  { %3816 = vmatprep.subr.bf16.mxu0 %v8670_v24  ;;  %v8722_v24 = vld [vmem:[%s12096_s2 + $0x210] ss:$8 sps:$4 sm:$0xff]  }
 0x751   :  { %3817 = vmatpush1.bf16.msra.mxu0 %v8668_v28  ;;  %v8724_v28 = vld [vmem:[%s12096_s2 + $0x214] ss:$8 sps:$4 sm:$0xff]  }
 0x752   :  { %3989 = vmatprep.subr.bf16.mxu0 %v8673_v53  ;;  %v8727_v53 = vld [vmem:[%s12096_s2 + $0x224] ss:$8 sps:$4 sm:$0xff]  }
 0x7df   :  { %v10830_v32 = vpop.f32.mrb[64].mxu0  ;;  %v10836_v4 = vpop.f32.mrb[64].mxu1 }
 0x7e0   :  { %v3496_v62 = vpop.f32.mrb[65].mxu0  ;;  %v10838_v18 = vpop.f32.mrb[65].mxu1 }
 0x7e1   :  { %v10832_v41 = vpop.f32.mrb[66].mxu0  ;;  %v10840_v56 = vpop.f32.mrb[66].mxu1 }
 0x7e2   :  { %v3503_v44 = vpack.c.bf16 %v10832_v41, %v10830_v32  ;;  %v3500_v49 = vpop.f32.mrb[67].mxu0  ;;  %v4086_v7 = vpack.c.bf16 %v10840_v56, %v10836_v4  ;;  %v10844_v37 = vpop.f32.mrb[67].mxu1  ;;  %v4673_v32 = vld [vmem:[%s12054_s14 + $0x88] sm:$0xff]  ;;  %v4656_v41 = vld [vmem:[%s12054_s14] sm:$0xff]  ;;  %v8778_v56 = vld [vmem:[%s12096_s2 + $0x334] ss:$8 sps:$4 sm:$0xff]  }
 0x7e3   :  { %v3504_v55 = vpack.c.bf16 %v3500_v49, %v3496_v62  ;;  %v4087_v46 = vpack.c.bf16 %v10844_v37, %v10838_v18  ;;  %v4672_v62 = vld [vmem:[%s12054_s14 + $0x80] sm:$0xff]  ;;  %v4657_v49 = vld [vmem:[%s12054_s14 + $0x8] sm:$0xff]  ;;  %v4659_v37 = vld [vmem:[%s12054_s14 + $0x18] sm:$0xff] }
 0x7e4   :  { %v10994_v18 = vpack.c.bf16 %v4657_v49, %v4656_v41  ;;  %v8772_v41 = vld [vmem:[%s12096_s2 + $0x314] ss:$8 sps:$4 sm:$0xff]   ;;  %v8770_v49 = vld [vmem:[%s12096_s2 + $0x310] ss:$8 sps:$4 sm:$0xff]   ;;  %v8773_v4 = vld [vmem:[%s12096_s2 + $0x320] ss:$8 sps:$4 sm:$0xff]  }
 0x7e7   :  { %v3582_v12 = vpop.f32.mrb[68].mxu0  ;;  %v10935_v3 = vpop.f32.mrb[68].mxu1 }
 0x7e8   :  { %v3584_v63 = vpop.f32.mrb[69].mxu0  ;;  %v10940_v35 = vpop.f32.mrb[69].mxu1 }
 0x7e9   :  { %v3586_v50 = vpop.f32.mrb[70].mxu0  ;;  %v10945_v5 = vpop.f32.mrb[70].mxu1 }
 0x7ea   :  { %v3591_v29 = vpack.c.bf16 %v3586_v50, %v3582_v12  ;;  %v3588_v16 = vpop.f32.mrb[71].mxu0  ;;  %v4382_v57 = vpack.c.bf16 %v10945_v5, %v10935_v3  ;;  %v10952_v51 = vpop.f32.mrb[71].mxu1  ;;  %v4675_v12 = vld [vmem:[%s12054_s14 + $0x98] sm:$0xff]  ;;  %v4658_v50 = vld [vmem:[%s12054_s14 + $0x10] sm:$0xff]  ;;  %v4665_v3 = vld [vmem:[%s12054_s14 + $0x48] sm:$0xff] }
 0x7eb   :  { %v3592_v22 = vpack.c.bf16 %v3588_v16, %v3584_v63  ;;  %v4383_v21 = vpack.c.bf16 %v10952_v51, %v10940_v35  ;;  %v4677_v16 = vld [vmem:[%s12054_s14 + $0xa8] sm:$0xff] }
 0x7ec   :  { %v8781_v35 = vld [vmem:[%s12096_s2 + $0x344] ss:$8 sps:$4 sm:$0xff]   ;;  %v8779_v51 = vld [vmem:[%s12096_s2 + $0x340] ss:$8 sps:$4 sm:$0xff]  }
 0x7ed   :  { %3818 = vmatprep.mubr.bf16.mxu0 %v3592_v22  ;;  %v11015_v22 = vpack.c.bf16 %v4659_v37, %v4658_v50  ;;  %v8787_v50 = vld [vmem:[%s12096_s2 + $0x364] ss:$8 sps:$4 sm:$0xff]   ;;  %v8785_v37 = vld [vmem:[%s12096_s2 + $0x360] ss:$8 sps:$4 sm:$0xff]  }
 0x7ee   :  { %3819 = vmatmul.mubr.bf16.vlgmr.msra.gmra.mrb[72].mxu0 %v3591_v29  ;;  %v4676_v29 = vld [vmem:[%s12054_s14 + $0xa0] sm:$0xff] }
 0x7ef   :  { %3990 = vmatpush1.bf16.msra.mxu0 %v8671_v38  ;;  %4021 = vmatprep.mubr.bf16.mxu0 %v3504_v55  ;;  %v4674_v55 = vld [vmem:[%s12054_s14 + $0x90] sm:$0xff] }
 0x7f0   :  { %3991 = vmatprep.subr.bf16.mxu0 %v8676_v60  ;;  %v10996_v63 = vpack.c.bf16 %v4675_v12, %v4674_v55  ;;  %v8730_v38 = vld [vmem:[%s12096_s2 + $0x234] ss:$8 sps:$4 sm:$0xff]   ;;  %v11021_v60 = vpack.c.bf16 %v4677_v16, %v4676_v29  ;;  %v8775_v55 = vld [vmem:[%s12096_s2 + $0x324] ss:$8 sps:$4 sm:$0xff]   ;;  %v8782_v12 = vld [vmem:[%s12096_s2 + $0x350] ss:$8 sps:$4 sm:$0xff]  }
 0x7f1   :  { %v8790_v29 = vld [vmem:[%s12096_s2 + $0x374] ss:$8 sps:$4 sm:$0xff]   ;;  %v8788_v16 = vld [vmem:[%s12096_s2 + $0x370] ss:$8 sps:$4 sm:$0xff]  }
 0x7f3   :  { %3992 = vmatpush1.bf16.msra.mxu0 %v8674_v48  ;;  %v4660_v48 = vld [vmem:[%s12054_s14 + $0x20] sm:$0xff] }
 0x7f4   :  { %3993 = vmatprep.subr.bf16.mxu0 %v8679_v43  ;;  %v4661_v43 = vld [vmem:[%s12054_s14 + $0x28] sm:$0xff] }
 0x7f7   :  { %3994 = vmatpush1.bf16.msra.mxu0 %v8677_v14  ;;  %v4678_v14 = vld [vmem:[%s12054_s14 + $0xb0] sm:$0xff] }
 0x7f8   :  { %3995 = vmatprep.subr.bf16.mxu0 %v8682_v47  ;;  %v4679_v47 = vld [vmem:[%s12054_s14 + $0xb8] sm:$0xff] }
 0x7fb   :  { %3996 = vmatpush1.bf16.msra.mxu0 %v8680_v30  ;;  %v8728_v30 = vld [vmem:[%s12096_s2 + $0x230] ss:$8 sps:$4 sm:$0xff]  }
 0x7fc   :  { %3997 = vmatprep.subr.bf16.mxu0 %v8685_v58  ;;  %v11039_v58 = vpack.c.bf16 %v4661_v43, %v4660_v48  ;;  %v8796_v48 = vld [vmem:[%s12096_s2 + $0x394] ss:$8 sps:$4 sm:$0xff]   ;;  %v8794_v43 = vld [vmem:[%s12096_s2 + $0x390] ss:$8 sps:$4 sm:$0xff]  }
 0x7ff   :  { %3998 = vmatpush1.bf16.msra.mxu0 %v8683_v0  ;;  %v8733_v0 = vld [vmem:[%s12096_s2 + $0x244] ss:$8 sps:$4 sm:$0xff]  }
 0x800   :  { %3999 = vmatprep.subr.bf16.mxu0 %v8688_v2  ;;  %v11045_v2 = vpack.c.bf16 %v4679_v47, %v4678_v14  ;;  %v8799_v14 = vld [vmem:[%s12096_s2 + $0x3a4] ss:$8 sps:$4 sm:$0xff]   ;;  %v8797_v47 = vld [vmem:[%s12096_s2 + $0x3a0] ss:$8 sps:$4 sm:$0xff]  }
 0x803   :  { %4000 = vmatpush1.bf16.msra.mxu0 %v8686_v8  ;;  %v4662_v8 = vld [vmem:[%s12054_s14 + $0x30] sm:$0xff] }
 0x804   :  { %4001 = vmatprep.subr.bf16.mxu0 %v8691_v54  ;;  %v4663_v54 = vld [vmem:[%s12054_s14 + $0x38] sm:$0xff] }
 0x807   :  { %4002 = vmatpush1.bf16.msra.mxu0 %v8689_v27  ;;  %v8731_v27 = vld [vmem:[%s12096_s2 + $0x240] ss:$8 sps:$4 sm:$0xff]  }
 0x808   :  { %4003 = vmatprep.subr.bf16.mxu0 %v8694_v61  ;;  %v11057_v61 = vpack.c.bf16 %v4663_v54, %v4662_v8  ;;  %v8805_v8 = vld [vmem:[%s12096_s2 + $0x3c4] ss:$8 sps:$4 sm:$0xff]   ;;  %v8803_v54 = vld [vmem:[%s12096_s2 + $0x3c0] ss:$8 sps:$4 sm:$0xff]  }
 0x80b   :  { %4004 = vmatpush1.bf16.msra.mxu0 %v8692_v6  ;;  %v8736_v6 = vld [vmem:[%s12096_s2 + $0x254] ss:$8 sps:$4 sm:$0xff]  }
 0x80c   :  { %4005 = vmatprep.subr.bf16.mxu0 %v8697_v9  ;;  %v8734_v9 = vld [vmem:[%s12096_s2 + $0x250] ss:$8 sps:$4 sm:$0xff]  }
 0x80f   :  { %4006 = vmatpush1.bf16.msra.mxu0 %v8695_v20  ;;  %v8739_v20 = vld [vmem:[%s12096_s2 + $0x264] ss:$8 sps:$4 sm:$0xff]  }
 0x810   :  { %4007 = vmatprep.subr.bf16.mxu0 %v8700_v13  ;;  %v8737_v13 = vld [vmem:[%s12096_s2 + $0x260] ss:$8 sps:$4 sm:$0xff]  }
 0x813   :  { %4008 = vmatpush1.bf16.msra.mxu0 %v8698_v31  ;;  %v8742_v31 = vld [vmem:[%s12096_s2 + $0x274] ss:$8 sps:$4 sm:$0xff]  }
 0x814   :  { %4009 = vmatprep.subr.bf16.mxu0 %v8703_v59  ;;  %v8740_v59 = vld [vmem:[%s12096_s2 + $0x270] ss:$8 sps:$4 sm:$0xff]  }
 0x817   :  { %4010 = vmatpush1.bf16.msra.mxu0 %v8701_v15  ;;  %v8745_v15 = vld [vmem:[%s12096_s2 + $0x284] ss:$8 sps:$4 sm:$0xff]  }
 0x818   :  { %4011 = vmatprep.subr.bf16.mxu0 %v8706_v25  ;;  %v8743_v25 = vld [vmem:[%s12096_s2 + $0x280] ss:$8 sps:$4 sm:$0xff]  }
 0x81b   :  { %4012 = vmatpush1.bf16.msra.mxu0 %v8704_v34  ;;  %v8748_v34 = vld [vmem:[%s12096_s2 + $0x294] ss:$8 sps:$4 sm:$0xff]  }
 0x81c   :  { %4013 = vmatprep.subr.bf16.mxu0 %v8709_v39  ;;  %v8746_v39 = vld [vmem:[%s12096_s2 + $0x290] ss:$8 sps:$4 sm:$0xff]  }
 0x81f   :  { %4014 = vmatpush1.bf16.msra.mxu0 %v8707_v17  ;;  %v8751_v17 = vld [vmem:[%s12096_s2 + $0x2a4] ss:$8 sps:$4 sm:$0xff]  }
 0x820   :  { %4015 = vmatprep.subr.bf16.mxu0 %v8712_v23  ;;  %v8749_v23 = vld [vmem:[%s12096_s2 + $0x2a0] ss:$8 sps:$4 sm:$0xff]  }
 0x823   :  { %4016 = vmatpush1.bf16.msra.mxu0 %v8710_v10  ;;  %v8754_v10 = vld [vmem:[%s12096_s2 + $0x2b4] ss:$8 sps:$4 sm:$0xff]  }
 0x824   :  { %4017 = vmatprep.subr.bf16.mxu0 %v8715_v26  ;;  %v8752_v26 = vld [vmem:[%s12096_s2 + $0x2b0] ss:$8 sps:$4 sm:$0xff]  }
 0x827   :  { %4018 = vmatpush1.bf16.msra.mxu0 %v8713_v40  ;;  %v8757_v40 = vld [vmem:[%s12096_s2 + $0x2c4] ss:$8 sps:$4 sm:$0xff]  }
 0x828   :  { %4019 = vmatprep.subr.bf16.mxu0 %v8718_v36  ;;  %v8755_v36 = vld [vmem:[%s12096_s2 + $0x2c0] ss:$8 sps:$4 sm:$0xff]  }
 0x82b   :  { %4020 = vmatpush1.bf16.msra.mxu0 %v8716_v52  ;;  %v8760_v52 = vld [vmem:[%s12096_s2 + $0x2d4] ss:$8 sps:$4 sm:$0xff]  }
 0x82c   :  { %4281 = vmatprep.subr.bf16.mxu0 %v8721_v42  ;;  %v8758_v42 = vld [vmem:[%s12096_s2 + $0x2d0] ss:$8 sps:$4 sm:$0xff]  }
 0x82e   :  { %4022 = vmatmul.mubr.bf16.vlgmr.msra.gmra.mrb[72].mxu0 %v3503_v44  ;;  %v10983_v44 = vpack.c.bf16 %v4673_v32, %v4672_v62  ;;  %v8769_v62 = vld [vmem:[%s12096_s2 + $0x304] ss:$8 sps:$4 sm:$0xff]   ;;  %v8767_v32 = vld [vmem:[%s12096_s2 + $0x300] ss:$8 sps:$4 sm:$0xff]  }
 0x82f   :  { %4282 = vmatpush1.bf16.msra.mxu0 %v8719_v33  ;;  %4313 = vmatprep.mubr.bf16.mxu0 %v4087_v46  ;;  %v8725_v46 = vld [vmem:[%s12096_s2 + $0x220] ss:$8 sps:$4 sm:$0xff]   ;;  %v8763_v33 = vld [vmem:[%s12096_s2 + $0x2e4] ss:$8 sps:$4 sm:$0xff]  }
 0x830   :  { %4283 = vmatprep.subr.bf16.mxu0 %v8724_v28  ;;  %7962 = vmatprep.subr.bf16.mxu1 %v10983_v44  ;;  %v8761_v28 = vld [vmem:[%s12096_s2 + $0x2e0] ss:$8 sps:$4 sm:$0xff]  }
 0x831   :  { %7964 = vmatpush3.bf16.msra.mxu1 %v10994_v18 }
 0x832   :  { %7966 = vmatprep.subr.bf16.mxu1 %v10996_v63 }
 0x833   :  { %4284 = vmatpush1.bf16.msra.mxu0 %v8722_v24  ;;  %v8766_v24 = vld [vmem:[%s12096_s2 + $0x2f4] ss:$8 sps:$4 sm:$0xff]  }
 0x834   :  { %4285 = vmatprep.subr.bf16.mxu0 %v8727_v53  ;;  %v8764_v53 = vld [vmem:[%s12096_s2 + $0x2f0] ss:$8 sps:$4 sm:$0xff]  }
 0x835   :  { %7968 = vmatpush3.bf16.msra.mxu1 %v11015_v22 }
 0x836   :  { %7970 = vmatprep.subr.bf16.mxu1 %v11021_v60 }
 0x837   :  { %4286 = vmatpush1.bf16.msra.mxu0 %v8725_v46  ;;  %v8793_v46 = vld [vmem:[%s12096_s2 + $0x384] ss:$8 sps:$4 sm:$0xff]  }
 0x838   :  { %4287 = vmatprep.subr.bf16.mxu0 %v8730_v38  ;;  %v8791_v38 = vld [vmem:[%s12096_s2 + $0x380] ss:$8 sps:$4 sm:$0xff]  }
 0x839   :  { %7972 = vmatpush3.bf16.msra.mxu1 %v11039_v58 }
 0x83a   :  { %7974 = vmatprep.subr.bf16.mxu1 %v11045_v2 }
 0x83b   :  { %4288 = vmatpush1.bf16.msra.mxu0 %v8728_v30  ;;  %v8802_v30 = vld [vmem:[%s12096_s2 + $0x3b4] ss:$8 sps:$4 sm:$0xff]  }
 0x83c   :  { %4289 = vmatprep.subr.bf16.mxu0 %v8733_v0  ;;  %v8800_v0 = vld [vmem:[%s12096_s2 + $0x3b0] ss:$8 sps:$4 sm:$0xff]  }
 0x83d   :  { %7976 = vmatpush3.bf16.msra.mxu1 %v11057_v61 }
 0x83f   :  { %4290 = vmatpush1.bf16.msra.mxu0 %v8731_v27  ;;  %v8808_v27 = vld [vmem:[%s12096_s2 + $0x3d4] ss:$8 sps:$4 sm:$0xff]  }
 0x840   :  { %4291 = vmatprep.subr.bf16.mxu0 %v8736_v6  ;;  %v8806_v6 = vld [vmem:[%s12096_s2 + $0x3d0] ss:$8 sps:$4 sm:$0xff]  }
 0x843   :  { %4292 = vmatpush1.bf16.msra.mxu0 %v8734_v9  ;;  %v8811_v9 = vld [vmem:[%s12096_s2 + $0x3e4] ss:$8 sps:$4 sm:$0xff]  }
 0x844   :  { %4293 = vmatprep.subr.bf16.mxu0 %v8739_v20  ;;  %v8809_v20 = vld [vmem:[%s12096_s2 + $0x3e0] ss:$8 sps:$4 sm:$0xff]  }
 0x847   :  { %4294 = vmatpush1.bf16.msra.mxu0 %v8737_v13  ;;  %v8814_v13 = vld [vmem:[%s12096_s2 + $0x3f4] ss:$8 sps:$4 sm:$0xff]  }
 0x848   :  { %4295 = vmatprep.subr.bf16.mxu0 %v8742_v31  ;;  %v8812_v31 = vld [vmem:[%s12096_s2 + $0x3f0] ss:$8 sps:$4 sm:$0xff]  }
 0x84b   :  { %4296 = vmatpush1.bf16.msra.mxu0 %v8740_v59  ;;  %v4680_v59 = vld [vmem:[%s12054_s14 + $0xc0] sm:$0xff] }
 0x84c   :  { %4297 = vmatprep.subr.bf16.mxu0 %v8745_v15  ;;  %v4681_v15 = vld [vmem:[%s12054_s14 + $0xc8] sm:$0xff] }
 0x84f   :  { %4298 = vmatpush1.bf16.msra.mxu0 %v8743_v25  ;;  %v11239_v25 = vpack.c.bf16 %v4681_v15, %v4680_v59 }
 0x850   :  { %4299 = vmatprep.subr.bf16.mxu0 %v8748_v34  ;;  %v4664_v34 = vld [vmem:[%s12054_s14 + $0x40] sm:$0xff] }
 0x851   :  { %v11247_v5 = vpack.c.bf16 %v4665_v3, %v4664_v34  ;;  %7978 = vmatprep.subr.bf16.mxu1 %v11239_v25 }
 0x853   :  { %4300 = vmatpush1.bf16.msra.mxu0 %v8746_v39  ;;  %7980 = vmatpush3.bf16.msra.mxu1 %v11247_v5  ;;  %v4683_v39 = vld [vmem:[%s12054_s14 + $0xd8] sm:$0xff] }
 0x854   :  { %4301 = vmatprep.subr.bf16.mxu0 %v8751_v17 }
 0x857   :  { %4302 = vmatpush1.bf16.msra.mxu0 %v8749_v23  ;;  %v4666_v23 = vld [vmem:[%s12054_s14 + $0x50] sm:$0xff] }
 0x858   :  { %4303 = vmatprep.subr.bf16.mxu0 %v8754_v10  ;;  %v4667_v10 = vld [vmem:[%s12054_s14 + $0x58] sm:$0xff] }
 0x85b   :  { %4304 = vmatpush1.bf16.msra.mxu0 %v8752_v26  ;;  %v11265_v26 = vpack.c.bf16 %v4667_v10, %v4666_v23 }
 0x85c   :  { %4305 = vmatprep.subr.bf16.mxu0 %v8757_v40  ;;  %v4684_v40 = vld [vmem:[%s12054_s14 + $0xe0] sm:$0xff] }
 0x85f   :  { %4306 = vmatpush1.bf16.msra.mxu0 %v8755_v36  ;;  %v4685_v36 = vld [vmem:[%s12054_s14 + $0xe8] sm:$0xff] }
 0x860   :  { %4307 = vmatprep.subr.bf16.mxu0 %v8760_v52  ;;  %v4668_v52 = vld [vmem:[%s12054_s14 + $0x60] sm:$0xff] }
 0x863   :  { %4308 = vmatpush1.bf16.msra.mxu0 %v8758_v42  ;;  %v11278_v42 = vpack.c.bf16 %v4685_v36, %v4684_v40 }
 0x864   :  { %4309 = vmatprep.subr.bf16.mxu0 %v8763_v33  ;;  %v4669_v33 = vld [vmem:[%s12054_s14 + $0x68] sm:$0xff] }
 0x867   :  { %4310 = vmatpush1.bf16.msra.mxu0 %v8761_v28  ;;  %v4686_v28 = vld [vmem:[%s12054_s14 + $0xf0] sm:$0xff] }
 0x868   :  { %4311 = vmatprep.subr.bf16.mxu0 %v8766_v24  ;;  %v4687_v24 = vld [vmem:[%s12054_s14 + $0xf8] sm:$0xff] }
 0x86b   :  { %4312 = vmatpush1.bf16.msra.mxu0 %v8764_v53  ;;  %v11289_v53 = vpack.c.bf16 %v4669_v33, %v4668_v52 }
 0x86c   :  { %4577 = vmatprep.subr.bf16.mxu0 %v8769_v62  ;;  %v11291_v62 = vpack.c.bf16 %v4687_v24, %v4686_v28 }
 0x86e   :  { %4314 = vmatmul.mubr.bf16.vlgmr.msra.gmra.mrb[72].mxu0 %v4086_v7  ;;  %v8776_v7 = vld [vmem:[%s12096_s2 + $0x330] ss:$8 sps:$4 sm:$0xff]  }
 0x86f   :  { %4578 = vmatpush1.bf16.msra.mxu0 %v8767_v32  ;;  %4609 = vmatprep.mubr.bf16.mxu0 %v4383_v21  ;;  %v8784_v21 = vld [vmem:[%s12096_s2 + $0x354] ss:$8 sps:$4 sm:$0xff]  }
 0x870   :  { %4579 = vmatprep.subr.bf16.mxu0 %v8772_v41  ;;  %v4670_v32 = vld [vmem:[%s12054_s14 + $0x70] sm:$0xff]  ;;  %v4671_v41 = vld [vmem:[%s12054_s14 + $0x78] sm:$0xff] }
 0x873   :  { %4580 = vmatpush1.bf16.msra.mxu0 %v8770_v49  ;;  %v11301_v49 = vpack.c.bf16 %v4671_v41, %v4670_v32 }
 0x874   :  { %4581 = vmatprep.subr.bf16.mxu0 %v8775_v55  ;;  %v4835_v55 = vld [vmem:[%s12055_s15 + $0x8] sm:$0xff] }
 0x877   :  { %4582 = vmatpush1.bf16.msra.mxu0 %v8773_v4  ;;  %v4837_v4 = vld [vmem:[%s12055_s15 + $0x18] sm:$0xff] }
 0x878   :  { %4583 = vmatprep.subr.bf16.mxu0 %v8778_v56  ;;  %v4834_v56 = vld [vmem:[%s12055_s15] sm:$0xff] }
 0x87b   :  { %4584 = vmatpush1.bf16.msra.mxu0 %v8776_v7  ;;  %v8025_v7 = vpack.c.bf16 %v4837_v4, %v4835_v55 }
 0x87c   :  { %4585 = vmatprep.subr.bf16.mxu0 %v8781_v35  ;;  %v4836_v35 = vld [vmem:[%s12055_s15 + $0x10] sm:$0xff] }
 0x87f   :  { %4586 = vmatpush1.bf16.msra.mxu0 %v8779_v51  ;;  %v8027_v51 = vpack.c.bf16 %v4836_v35, %v4834_v56 }
 0x880   :  { %4587 = vmatprep.subr.bf16.mxu0 %v8784_v21 }
 0x883   :  { %4588 = vmatpush1.bf16.msra.mxu0 %v8782_v12 }
 0x884   :  { %4589 = vmatprep.subr.bf16.mxu0 %v8787_v50 }
 0x887   :  { %4590 = vmatpush1.bf16.msra.mxu0 %v8785_v37 }
 0x888   :  { %4591 = vmatprep.subr.bf16.mxu0 %v8790_v29 }
 0x88b   :  { %4592 = vmatpush1.bf16.msra.mxu0 %v8788_v16 }
 0x88c   :  { %4593 = vmatprep.subr.bf16.mxu0 %v8793_v46 }
 0x88f   :  { %4594 = vmatpush1.bf16.msra.mxu0 %v8791_v38 }
 0x890   :  { %4595 = vmatprep.subr.bf16.mxu0 %v8796_v48 }
 0x893   :  { %4596 = vmatpush1.bf16.msra.mxu0 %v8794_v43 }
 0x894   :  { %4597 = vmatprep.subr.bf16.mxu0 %v8799_v14 }
 0x897   :  { %4598 = vmatpush1.bf16.msra.mxu0 %v8797_v47 }
 0x898   :  { %4599 = vmatprep.subr.bf16.mxu0 %v8802_v30 }
 0x89b   :  { %4600 = vmatpush1.bf16.msra.mxu0 %v8800_v0 }
 0x89c   :  { %4601 = vmatprep.subr.bf16.mxu0 %v8805_v8 }
 0x89f   :  { %4602 = vmatpush1.bf16.msra.mxu0 %v8803_v54 }
 0x8a0   :  { %4603 = vmatprep.subr.bf16.mxu0 %v8808_v27 }
 0x8a3   :  { %4604 = vmatpush1.bf16.msra.mxu0 %v8806_v6 }
 0x8a4   :  { %4605 = vmatprep.subr.bf16.mxu0 %v8811_v9 }
 0x8a7   :  { %4606 = vmatpush1.bf16.msra.mxu0 %v8809_v20 }
 0x8a8   :  { %4607 = vmatprep.subr.bf16.mxu0 %v8814_v13 }
 0x8ab   :  { %4608 = vmatpush1.bf16.msra.mxu0 %v8812_v31 }
 0x8ac   :  { %8026 = vmatprep.subr.bf16.mxu0 %v8025_v7 }
 0x8ae   :  { %4610 = vmatmul.mubr.bf16.vlgmr.msra.gmra.mrb[72].mxu0 %v4382_v57  ;;  %v4682_v57 = vld [vmem:[%s12054_s14 + $0xd0] sm:$0xff] }
 0x8af   :  { %4909 = vmatprep.mubr.f32.mxu0 %v9014_v19  ;;  %v11257_v17 = vpack.c.bf16 %v4683_v39, %v4682_v57  ;;  %8028 = vmatpush1.bf16.msra.mxu0 %v8027_v51 }
 0x8b1   :  { %7982 = vmatprep.subr.bf16.mxu1 %v11257_v17 }
 0x8b2   :  { %7984 = vmatpush3.bf16.msra.mxu1 %v11265_v26 }
 0x8b3   :  { %7986 = vmatprep.subr.bf16.mxu1 %v11278_v42 }
 0x8b6   :  { %7988 = vmatpush3.bf16.msra.mxu1 %v11289_v53 }
 0x8b7   :  { %7990 = vmatprep.subr.bf16.mxu1 %v11291_v62 }
 0x8ba   :  { %7992 = vmatpush3.bf16.msra.mxu1 %v11301_v49 }
 0x8bb   :  { %7994 = vmatprep.subr.bf16.mxu1 %v10983_v44 }
 0x981   :  { %v11318_v44 = vpop.f32.mrb[72].mxu0 }
 0x982   :  { %v11320_v21 = vpop.f32.mrb[73].mxu0  ;;  %v4638_v50 = vmul.f32 %v11318_v44, %v11318_v44 }
 0x983   :  { %v11322_v12 = vpop.f32.mrb[74].mxu0  ;;  %v4639_v46 = vmul.f32 %v11320_v21, %v11320_v21 }
 0x984   :  { %v4624_v37 = vadd.f32 %v11322_v12, %v11318_v44  ;;  %v4640_v29 = vmul.f32 %v11322_v12, %v11322_v12  ;;  %v11330_v16 = vpop.f32.mrb[75].mxu0 }
 0x985   :  { %v4631_v38 = vadd.f32 %v11330_v16, %v11320_v21  ;;  %v4641_v48 = vmul.f32 %v11330_v16, %v11330_v16 }
 0x986   :  { %v4625_v43 = vrot.slane %v4624_v37, 4  ;;  %v4642_v14 = vadd.f32 %v4640_v29, %v4638_v50  ;;  %v5002_v29 = vld [vmem:[%s12057_s12] sm:$0x3] }
 0x987   :  { %v4632_v47 = vrot.slane %v4631_v38, 4  ;;  %v4649_v30 = vadd.f32 %v4641_v48, %v4639_v46  ;;  %v5007_v46 = vrot.slane %v5002_v29, %v9875_v45 }
 0x988   :  { %v4626_v0 = vadd.f32 %v4625_v43, %v4624_v37  ;;  %v4643_v10 = vrot.slane %v4642_v14, 4  ;;  %v5028_v43 = vld [vmem:[%s12058_s13] sm:$0x3] }
 0x989   :  { %v4633_v8 = vadd.f32 %v4632_v47, %v4631_v38  ;;  %v4650_v54 = vrot.slane %v4649_v30, 4  ;;  %v5011_v38 = vrot.slane %v5002_v29, %v9880_v11  ;;  %v8856_v29 = vld [vmem:[%s12056_s17 + $0x1d4] ss:$8 sps:$4 sm:$0xff]  }
 0x98a   :  { %v4627_v27 = vrot.slane %v4626_v0, 2  ;;  %v4644_v40 = vadd.f32 %v4643_v10, %v4642_v14 }
 0x98b   :  { %v4634_v6 = vrot.slane %v4633_v8, 2  ;;  %v4651_v9 = vadd.f32 %v4650_v54, %v4649_v30  ;;  %v5037_v30 = vrot.slane %v5028_v43, %v9880_v11 }
 0x98c   :  { %v4628_v20 = vadd.f32 %v4627_v27, %v4626_v0 }
 0x98d   :  { %v4635_v13 = vadd.f32 %v4634_v6, %v4633_v8  ;;  %v4652_v31 = vrot.slane %v4651_v9, 2 }
 0x98e   :  { %v4629_v59 = vrot.slane %v4628_v20, 1 }
 0x98f   :  { %v4636_v15 = vrot.slane %v4635_v13, 1  ;;  %v4653_v34 = vadd.f32 %v4652_v31, %v4651_v9 }
 0x990   :  { %v4630_v39 = vadd.f32 %v4629_v59, %v4628_v20 }
 0x991   :  { %v4637_v3 = vadd.f32 %v4636_v15, %v4635_v13  ;;  %v4654_v57 = vrot.slane %v4653_v34, 1 }
 0x993   :  { %4752 = vmatprep.mubr.f32.mxu1 %v4637_v3  ;;  %v4655_v23 = vadd.f32 %v4654_v57, %v4653_v34 }
 0x994   :  { %4753 = vmatmul.mubr.f32.vlgmr.msra.gmra.mrb[72].mxu1 %v4630_v39 }
 0x995   :  { %7996 = vmatpush3.bf16.msra.mxu1 %v10994_v18  ;;  %4823 = vmatprep.mubr.f32.mxu1 %v4655_v23  ;;  %v4645_v18 = vrot.slane %v4644_v40, 2 }
 0x996   :  { %7998 = vmatprep.subr.bf16.mxu1 %v10996_v63 }
 0x997   :  { %v4646_v63 = vadd.f32 %v4645_v18, %v4644_v40  ;;  %v5058_v18 = vld [vmem:[%s12059_s16] sm:$0xf] }
 0x999   :  { %8000 = vmatpush3.bf16.msra.mxu1 %v11015_v22  ;;  %v4647_v22 = vrot.slane %v4646_v63, 1 }
 0x99a   :  { %8002 = vmatprep.subr.bf16.mxu1 %v11021_v60 }
 0x99b   :  { %v4648_v60 = vadd.f32 %v4647_v22, %v4646_v63  ;;  %v7543_v63 = vld [vmem:[%s12059_s16 + $0x8] sm:$0xf]  ;;  %v8817_v22 = vld [vmem:[%s12056_s17 + $0x104] ss:$8 sps:$4 sm:$0xff]  }
 0x99d   :  { %8004 = vmatpush3.bf16.msra.mxu1 %v11039_v58  ;;  %v4839_v58 = vld [vmem:[%s12055_s15 + $0x28] sm:$0xff] }
 0x99e   :  { %8006 = vmatprep.subr.bf16.mxu1 %v11045_v2  ;;  %v4841_v2 = vld [vmem:[%s12055_s15 + $0x38] sm:$0xff] }
 0x9a1   :  { %8008 = vmatpush3.bf16.msra.mxu1 %v11057_v61  ;;  %v8029_v61 = vpack.c.bf16 %v4841_v2, %v4839_v58  ;;  %v8815_v58 = vld [vmem:[%s12056_s17 + $0x100] ss:$8 sps:$4 sm:$0xff]   ;;  %v7609_v2 = vld [vmem:[%s12059_s16 + $0xc] sm:$0xf] }
 0x9a2   :  { %8010 = vmatprep.subr.bf16.mxu1 %v11239_v25  ;;  %v4838_v25 = vld [vmem:[%s12055_s15 + $0x20] sm:$0xff] }
 0x9a3   :  { %8030 = vmatprep.subr.bf16.mxu0 %v8029_v61 }
 0x9a5   :  { %8012 = vmatpush3.bf16.msra.mxu1 %v11247_v5  ;;  %v4840_v5 = vld [vmem:[%s12055_s15 + $0x30] sm:$0xff] }
 0x9a6   :  { %8014 = vmatprep.subr.bf16.mxu1 %v11257_v17  ;;  %v8031_v17 = vpack.c.bf16 %v4840_v5, %v4838_v25  ;;  %v8823_v25 = vld [vmem:[%s12056_s17 + $0x124] ss:$8 sps:$4 sm:$0xff]   ;;  %v8821_v5 = vld [vmem:[%s12056_s17 + $0x120] ss:$8 sps:$4 sm:$0xff]  }
 0x9a8   :  { %8032 = vmatpush1.bf16.msra.mxu0 %v8031_v17 }
 0x9a9   :  { %8016 = vmatpush3.bf16.msra.mxu1 %v11265_v26 }
 0x9aa   :  { %8018 = vmatprep.subr.bf16.mxu1 %v11278_v42 }
 0x9ad   :  { %8020 = vmatpush3.bf16.msra.mxu1 %v11289_v53 }
 0x9ae   :  { %8022 = vmatprep.subr.bf16.mxu1 %v11291_v62 }
 0x9b1   :  { %8024 = vmatpush3.bf16.msra.mxu1 %v11301_v49 }
 0x9b2   :  { %8034 = vmatprep.subr.bf16.mxu1 %v8025_v7 }
 0x9b4   :  { %4824 = vmatmul.mubr.f32.vlgmr.msra.gmra.mrb[74].mxu1 %v4648_v60  ;;  %v7445_v60 = vld [vmem:[%s12059_s16 + $0x4] sm:$0xf] }
 0x9b5   :  { %8036 = vmatpush1.bf16.msra.mxu1 %v8027_v51  ;;  %4983 = vmatprep.mubr.f32.mxu1 %v9014_v19 }
 0x9b6   :  { %8038 = vmatprep.subr.bf16.mxu1 %v8029_v61  ;;  %v8820_v61 = vld [vmem:[%s12056_s17 + $0x114] ss:$8 sps:$4 sm:$0xff]  }
 0x9b9   :  { %8040 = vmatpush1.bf16.msra.mxu1 %v8031_v17  ;;  %v8826_v17 = vld [vmem:[%s12056_s17 + $0x134] ss:$8 sps:$4 sm:$0xff]  }
 0xa67   :  { %v7781_v26 = vpop.f32.mrb[72].mxu1 }
 0xa68   :  { %v7782_v36 = vpop.f32.mrb[73].mxu1 }
 0xa69   :  { %v7783_v52 = vadd.f32 %v7782_v36, %v7781_v26  ;;  %v8824_v26 = vld [vmem:[%s12056_s17 + $0x130] ss:$8 sps:$4 sm:$0xff]   ;;  %v8829_v36 = vld [vmem:[%s12056_s17 + $0x144] ss:$8 sps:$4 sm:$0xff]  }
 0xa6b   :  { %v4758_v42 = vmul.f32 0.0078125, %v7783_v52  ;;  %v8827_v52 = vld [vmem:[%s12056_s17 + $0x140] ss:$8 sps:$4 sm:$0xff]  }
 0xa6d   :  { %7442 = vmatmul.mubr.msk.f32.vlgmr.msra.gmra.mrb[76].mxu0 %vm3456_vm11, %v4758_v42  ;;  %v4830_v53 = vmul.f32 %v4758_v42, %v4758_v42  ;;  %v8832_v42 = vld [vmem:[%s12056_s17 + $0x154] ss:$8 sps:$4 sm:$0xff]  }
 0xa6e   :  { %5657 = vmatprep.mubr.bf16.mxu0 %v9013_v1 }
 0xa87   :  { %v7816_v33 = vpop.f32.mrb[74].mxu1 }
 0xa88   :  { %v7817_v28 = vpop.f32.mrb[75].mxu1 }
 0xa89   :  { %v7818_v24 = vadd.f32 %v7817_v28, %v7816_v33  ;;  %v8830_v33 = vld [vmem:[%s12056_s17 + $0x150] ss:$8 sps:$4 sm:$0xff]   ;;  %v8835_v28 = vld [vmem:[%s12056_s17 + $0x164] ss:$8 sps:$4 sm:$0xff]  }
 0xa8b   :  { %v4829_v62 = vmul.f32 0.0078125, %v7818_v24  ;;  %v8833_v24 = vld [vmem:[%s12056_s17 + $0x160] ss:$8 sps:$4 sm:$0xff]  }
 0xa8d   :  { %v4831_v32 = vsub.f32 %v4829_v62, %v4830_v53  ;;  %v8838_v53 = vld [vmem:[%s12056_s17 + $0x174] ss:$8 sps:$4 sm:$0xff]   ;;  %v8836_v62 = vld [vmem:[%s12056_s17 + $0x170] ss:$8 sps:$4 sm:$0xff]  }
 0xa8f   :  { %v4832_v41 = vadd.f32 1e-05, %v4831_v32  ;;  %v8841_v32 = vld [vmem:[%s12056_s17 + $0x184] ss:$8 sps:$4 sm:$0xff]  }
 0xa91   :  { %9009 = vrsqrt.f32 %v4832_v41  ;;  %v8839_v41 = vld [vmem:[%s12056_s17 + $0x180] ss:$8 sps:$4 sm:$0xff]  }
 0xa9b   :  { %v9010_v49 = vpop.eup %9009 }
 0xa9c   :  { %7443 = vmatmul.mubr.msk.f32.vlgmr.msra.gmra.mrb[76].mxu1 %vm3456_vm11, %v9010_v49  ;;  %v8844_v49 = vld [vmem:[%s12056_s17 + $0x194] ss:$8 sps:$4 sm:$0xff]  }
 0xa9d   :  { %5094 = vmatprep.mubr.bf16.mxu1 %v9013_v1 }
 0xb40   :  { %v4911_v55 = vpop.f32.mrb[76].mxu0 }
 0xb41   :  { %v4993_v4 = vrot.slane %v4911_v55, %v9875_v45  ;;  %v4913_v56 = vpop.f32.mrb[77].mxu0  ;;  %v8842_v55 = vld [vmem:[%s12056_s17 + $0x190] ss:$8 sps:$4 sm:$0xff]  }
 0xb42   :  { %v4997_v7 = vrot.slane %v4913_v56, %v9875_v45  ;;  %v8845_v56 = vld [vmem:[%s12056_s17 + $0x1a0] ss:$8 sps:$4 sm:$0xff]  }
 0xb43   :  { %v4998_v35 = vsub.f32 %v11318_v44, %v4993_v4  ;;  %v5000_v51 = vsub.f32 %v11322_v12, %v4993_v4  ;;  %v8847_v4 = vld [vmem:[%s12056_s17 + $0x1a4] ss:$8 sps:$4 sm:$0xff]  }
 0xb44   :  { %v4999_v50 = vsub.f32 %v11320_v21, %v4997_v7  ;;  %v5001_v37 = vsub.f32 %v11330_v16, %v4997_v7  ;;  %v5033_v16 = vrot.slane %v5028_v43, %v9875_v45  ;;  %v8850_v7 = vld [vmem:[%s12056_s17 + $0x1b4] ss:$8 sps:$4 sm:$0xff]  }
 0xb45   :  { %v8862_v43 = vld [vmem:[%s12056_s17 + $0x1f4] ss:$8 sps:$4 sm:$0xff]  }
 0xb6f   :  { %v4985_v48 = vpop.f32.mrb[76].mxu1 }
 0xb70   :  { %v5014_v44 = vmul.f32 %v5007_v46, %v4985_v48  ;;  %v4987_v14 = vpop.f32.mrb[77].mxu1  ;;  %v8859_v46 = vld [vmem:[%s12056_s17 + $0x1e4] ss:$8 sps:$4 sm:$0xff]   ;;  %v8860_v48 = vld [vmem:[%s12056_s17 + $0x1f0] ss:$8 sps:$4 sm:$0xff]  }
 0xb71   :  { %v5015_v12 = vmul.f32 %v5011_v38, %v4987_v14  ;;  %v8857_v38 = vld [vmem:[%s12056_s17 + $0x1e0] ss:$8 sps:$4 sm:$0xff]  }
 0xb72   :  { %v5019_v21 = vrot.slane %v5014_v44, %v9875_v45  ;;  %v8865_v44 = vld [vmem:[%s12056_s17 + $0x4] ss:$8 sps:$4 sm:$0xff]  }
 0xb73   :  { %v5023_v47 = vrot.slane %v5015_v12, %v9875_v45 }
 0xb74   :  { %v5024_v0 = vmul.f32 %v5019_v21, %v4998_v35  ;;  %v5026_v8 = vmul.f32 %v5019_v21, %v5000_v51  ;;  %v8848_v35 = vld [vmem:[%s12056_s17 + $0x1b0] ss:$8 sps:$4 sm:$0xff]   ;;  %v8853_v51 = vld [vmem:[%s12056_s17 + $0x1c4] ss:$8 sps:$4 sm:$0xff]  }
 0xb75   :  { %v5025_v54 = vmul.f32 %v5023_v47, %v4999_v50  ;;  %v5027_v27 = vmul.f32 %v5023_v47, %v5001_v37  ;;  %v8851_v50 = vld [vmem:[%s12056_s17 + $0x1c0] ss:$8 sps:$4 sm:$0xff]   ;;  %v8854_v37 = vld [vmem:[%s12056_s17 + $0x1d0] ss:$8 sps:$4 sm:$0xff]  }
 0xb76   :  { %v5040_v6 = vadd.f32 %v5033_v16, %v5024_v0  ;;  %v5042_v9 = vadd.f32 %v5033_v16, %v5026_v8 }
 0xb77   :  { %v5041_v20 = vadd.f32 %v5037_v30, %v5025_v54  ;;  %v5043_v13 = vadd.f32 %v5037_v30, %v5027_v27 }
 0xb78   :  { %v5048_v31 = vmul.f32 0.2, %v5040_v6  ;;  %v5050_v59 = vmul.f32 0.2, %v5042_v9  ;;  %vm5044_vm12 = vcmp.gt.f32.partialorder %v5040_v6, 0.0  ;;  %vm5046_vm13 = vcmp.gt.f32.partialorder %v5042_v9, 0.0 }
 0xb79   :  { %v5049_v15 = vmul.f32 0.2, %v5041_v20  ;;  %v5051_v34 = vmul.f32 0.2, %v5043_v13  ;;  %vm5045_vm14 = vcmp.gt.f32.partialorder %v5041_v20, 0.0  ;;  %vm5047_vm15 = vcmp.gt.f32.partialorder %v5043_v13, 0.0 }
 0xb7a   :  { %v5052_v3 = vsel %vm5044_vm12, %v5040_v6, %v5048_v31  ;;  %v5054_v57 = vsel %vm5046_vm13, %v5042_v9, %v5050_v59  ;;  %v8868_v59 = vld [vmem:[%s12056_s17 + $0x14] ss:$8 sps:$4 sm:$0xff]  }
 0xb7b   :  { %v5053_v39 = vsel %vm5045_vm14, %v5041_v20, %v5049_v15  ;;  %v5055_v23 = vsel %vm5047_vm15, %v5043_v13, %v5051_v34  ;;  %v5056_v10 = vpack.c.bf16 %v5054_v57, %v5052_v3  ;;  %v8863_v20 = vld [vmem:[%s12056_s17] ss:$8 sps:$4 sm:$0xff]   ;;  %v8866_v34 = vld [vmem:[%s12056_s17 + $0x10] ss:$8 sps:$4 sm:$0xff]   ;;  %v8871_v3 = vld [vmem:[%s12056_s17 + $0x24] ss:$8 sps:$4 sm:$0xff]  }
 0xb7c   :  { %v5057_v40 = vpack.c.bf16 %v5055_v23, %v5053_v39  ;;  %v8869_v57 = vld [vmem:[%s12056_s17 + $0x20] ss:$8 sps:$4 sm:$0xff]   ;;  %v8874_v39 = vld [vmem:[%s12056_s17 + $0x34] ss:$8 sps:$4 sm:$0xff]   ;;  %v8872_v23 = vld [vmem:[%s12056_s17 + $0x30] ss:$8 sps:$4 sm:$0xff]  }
 0xb7e   :  { %5062 = vmatprep.subr.bf16.mxu1 %v5057_v40  ;;  %5625 = vmatprep.subr.bf16.mxu0 %v5057_v40 }
 0xb7f   :  { %5063 = vmatpush1.bf16.msra.mxu1 %v5056_v10  ;;  %5626 = vmatpush1.bf16.msra.mxu0 %v5056_v10 }
 0xb80   :  { %5142 = vmatprep.subr.bf16.mxu1 %v5057_v40  ;;  %5909 = vmatprep.subr.bf16.mxu0 %v5057_v40  ;;  %v8875_v40 = vld [vmem:[%s12056_s17 + $0x40] ss:$8 sps:$4 sm:$0xff]  }
 0xb82   :  { %7444 = vmatmul.mubr.msk.bf16.vlgmr.msra.gmra.mrb[80].mxu1 %vm3206_vm2, %v5058_v18  ;;  %7544 = vmatmul.mubr.msk.bf16.vlgmr.msra.gmra.mrb[80].mxu0 %vm3206_vm2, %v7543_v63  ;;  %v8880_v18 = vld [vmem:[%s12056_s17 + $0x54] ss:$8 sps:$4 sm:$0xff]   ;;  %v8878_v63 = vld [vmem:[%s12056_s17 + $0x50] ss:$8 sps:$4 sm:$0xff]  }
 0xb83   :  { %5143 = vmatpush1.bf16.msra.mxu1 %v5056_v10  ;;  %5910 = vmatpush1.bf16.msra.mxu0 %v5056_v10  ;;  %v8877_v10 = vld [vmem:[%s12056_s17 + $0x44] ss:$8 sps:$4 sm:$0xff]  }
 0xb84   :  { %5174 = vmatprep.mubr.bf16.mxu1 %v9013_v1  ;;  %5378 = vmatprep.subr.bf16.mxu1 %v8817_v22  ;;  %v8883_v22 = vld [vmem:[%s12056_s17 + $0x64] ss:$8 sps:$4 sm:$0xff]  }
 0xb85   :  { %5941 = vmatprep.mubr.bf16.mxu0 %v9013_v1  ;;  %v8818_v1 = vld [vmem:[%s12056_s17 + $0x110] ss:$8 sps:$4 sm:$0xff]  }
 0xb8a   :  { %7446 = vmatmul.mubr.msk.bf16.vlgmr.msra.gmra.mrb[84].mxu1 %vm3206_vm2, %v7445_v60  ;;  %7610 = vmatmul.mubr.msk.bf16.vlgmr.msra.gmra.mrb[84].mxu0 %vm3206_vm2, %v7609_v2  ;;  %v8881_v60 = vld [vmem:[%s12056_s17 + $0x60] ss:$8 sps:$4 sm:$0xff]   ;;  %v8884_v2 = vld [vmem:[%s12056_s17 + $0x70] ss:$8 sps:$4 sm:$0xff]   ;;  %vm6615_vm2 = vcmask 64512  }
 0xb8b   :  { %5379 = vmatpush1.bf16.msra.mxu1 %v8815_v58  ;;  %v8886_v58 = vld [vmem:[%s12056_s17 + $0x74] ss:$8 sps:$4 sm:$0xff]  }
 0xb8c   :  { %5380 = vmatprep.subr.bf16.mxu1 %v8820_v61  ;;  %v8889_v61 = vld [vmem:[%s12056_s17 + $0x84] ss:$8 sps:$4 sm:$0xff]  }
 0xb8f   :  { %5381 = vmatpush1.bf16.msra.mxu1 %v8818_v1  ;;  %v8887_v1 = vld [vmem:[%s12056_s17 + $0x80] ss:$8 sps:$4 sm:$0xff]  }
 0xb90   :  { %5382 = vmatprep.subr.bf16.mxu1 %v8823_v25  ;;  %v8892_v25 = vld [vmem:[%s12056_s17 + $0x94] ss:$8 sps:$4 sm:$0xff]  }
 0xb93   :  { %5383 = vmatpush1.bf16.msra.mxu1 %v8821_v5  ;;  %v8890_v5 = vld [vmem:[%s12056_s17 + $0x90] ss:$8 sps:$4 sm:$0xff]  }
 0xb94   :  { %5384 = vmatprep.subr.bf16.mxu1 %v8826_v17  ;;  %v8895_v17 = vld [vmem:[%s12056_s17 + $0xa4] ss:$8 sps:$4 sm:$0xff]  }
 0xb97   :  { %5385 = vmatpush1.bf16.msra.mxu1 %v8824_v26  ;;  %v8893_v26 = vld [vmem:[%s12056_s17 + $0xa0] ss:$8 sps:$4 sm:$0xff]  }
 0xb98   :  { %5386 = vmatprep.subr.bf16.mxu1 %v8829_v36  ;;  %v8898_v36 = vld [vmem:[%s12056_s17 + $0xb4] ss:$8 sps:$4 sm:$0xff]  }
 0xb9b   :  { %5387 = vmatpush1.bf16.msra.mxu1 %v8827_v52  ;;  %v8896_v52 = vld [vmem:[%s12056_s17 + $0xb0] ss:$8 sps:$4 sm:$0xff]  }
 0xb9c   :  { %5388 = vmatprep.subr.bf16.mxu1 %v8832_v42  ;;  %v8901_v42 = vld [vmem:[%s12056_s17 + $0xc4] ss:$8 sps:$4 sm:$0xff]  }
 0xb9f   :  { %5389 = vmatpush1.bf16.msra.mxu1 %v8830_v33  ;;  %v8899_v33 = vld [vmem:[%s12056_s17 + $0xc0] ss:$8 sps:$4 sm:$0xff]  }
 0xba0   :  { %5390 = vmatprep.subr.bf16.mxu1 %v8835_v28  ;;  %v8904_v28 = vld [vmem:[%s12056_s17 + $0xd4] ss:$8 sps:$4 sm:$0xff]  }
 0xba3   :  { %5391 = vmatpush1.bf16.msra.mxu1 %v8833_v24  ;;  %v8902_v24 = vld [vmem:[%s12056_s17 + $0xd0] ss:$8 sps:$4 sm:$0xff]  }
 0xba4   :  { %5392 = vmatprep.subr.bf16.mxu1 %v8838_v53  ;;  %v8907_v53 = vld [vmem:[%s12056_s17 + $0xe4] ss:$8 sps:$4 sm:$0xff]  }
 0xba7   :  { %5393 = vmatpush1.bf16.msra.mxu1 %v8836_v62  ;;  %v8905_v62 = vld [vmem:[%s12056_s17 + $0xe0] ss:$8 sps:$4 sm:$0xff]  }
 0xba8   :  { %5394 = vmatprep.subr.bf16.mxu1 %v8841_v32  ;;  %v8910_v32 = vld [vmem:[%s12056_s17 + $0xf4] ss:$8 sps:$4 sm:$0xff]  }
 0xbab   :  { %5395 = vmatpush1.bf16.msra.mxu1 %v8839_v41  ;;  %v8908_v41 = vld [vmem:[%s12056_s17 + $0xf0] ss:$8 sps:$4 sm:$0xff]  }
 0xbac   :  { %5396 = vmatprep.subr.bf16.mxu1 %v8844_v49 }
 0xbaf   :  { %5397 = vmatpush1.bf16.msra.mxu1 %v8842_v55  ;;  %v8913_v55 = vld [vmem:[%s12056_s17 + $0x204] ss:$8 sps:$4 sm:$0xff]  }
 0xbb0   :  { %5398 = vmatprep.subr.bf16.mxu1 %v8847_v4 }
 0xbb3   :  { %5399 = vmatpush1.bf16.msra.mxu1 %v8845_v56 }
 0xbb4   :  { %5400 = vmatprep.subr.bf16.mxu1 %v8850_v7 }
 0xbb7   :  { %5401 = vmatpush1.bf16.msra.mxu1 %v8848_v35  ;;  %v8911_v35 = vld [vmem:[%s12056_s17 + $0x200] ss:$8 sps:$4 sm:$0xff]  }
 0xbb8   :  { %5402 = vmatprep.subr.bf16.mxu1 %v8853_v51 }
 0xbbb   :  { %5403 = vmatpush1.bf16.msra.mxu1 %v8851_v50 }
 0xbbc   :  { %5404 = vmatprep.subr.bf16.mxu1 %v8856_v29  ;;  %v8914_v29 = vld [vmem:[%s12056_s17 + $0x210] ss:$8 sps:$4 sm:$0xff]  }
 0xbbf   :  { %5405 = vmatpush1.bf16.msra.mxu1 %v8854_v37  ;;  %v8916_v37 = vld [vmem:[%s12056_s17 + $0x214] ss:$8 sps:$4 sm:$0xff]  }
 0xbc0   :  { %5406 = vmatprep.subr.bf16.mxu1 %v8859_v46  ;;  %v8919_v46 = vld [vmem:[%s12056_s17 + $0x224] ss:$8 sps:$4 sm:$0xff]  }
 0xbc3   :  { %5407 = vmatpush1.bf16.msra.mxu1 %v8857_v38  ;;  %v6230_v38 = vld [vmem:[%s12060_s20 + $0x80] sm:$0xff] }
 0xbc4   :  { %5408 = vmatprep.subr.bf16.mxu1 %v8862_v43  ;;  %v6214_v43 = vld [vmem:[%s12060_s20] sm:$0xff] }
 0xbc7   :  { %5409 = vmatpush1.bf16.msra.mxu1 %v8860_v48  ;;  %v6231_v48 = vld [vmem:[%s12060_s20 + $0x88] sm:$0xff] }
 0xbc8   :  { %5579 = vmatprep.subr.bf16.mxu1 %v8865_v44  ;;  %v11636_v44 = vpack.c.bf16 %v6231_v48, %v6230_v38  ;;  %v8959_v48 = vld [vmem:[%s12056_s17 + $0x300] ss:$8 sps:$4 sm:$0xff]  }
 0xbca   :  { %8042 = vmatprep.subr.bf16.mxu0 %v11636_v44 }
 0xc55   :  { %v11505_v14 = vpop.f32.mrb[80].mxu1  ;;  %v11507_v47 = vpop.f32.mrb[80].mxu0 }
 0xc56   :  { %v5098_v12 = vpop.f32.mrb[81].mxu1  ;;  %v11509_v30 = vpop.f32.mrb[81].mxu0  ;;  %v5103_v50 = vpack.c.bf16 %v11505_v14, %v11505_v14  ;;  %v6215_v14 = vld [vmem:[%s12060_s20 + $0x8] sm:$0xff]  ;;  %v5666_v38 = vpack.c.bf16 %v11507_v47, %v11507_v47 }
 0xc57   :  { %v5100_v21 = vpop.f32.mrb[82].mxu1  ;;  %v5663_v8 = vpop.f32.mrb[82].mxu0  ;;  %v5104_v15 = vpack.c.bf16 %v5098_v12, %v5098_v12  ;;  %v5667_v51 = vpack.c.bf16 %v11509_v30, %v11509_v30  ;;  %v6232_v12 = vld [vmem:[%s12060_s20 + $0x90] sm:$0xff]  ;;  %v8967_v47 = vld [vmem:[%s12056_s17 + $0x324] ss:$8 sps:$4 sm:$0xff]  }
 0xc58   :  { %v5101_v16 = vpop.f32.mrb[83].mxu1  ;;  %v5664_v27 = vpop.f32.mrb[83].mxu0  ;;  %v6233_v21 = vld [vmem:[%s12060_s20 + $0x98] sm:$0xff] }
 0xc59   :  { %v11647_v16 = vpack.c.bf16 %v6215_v14, %v6214_v43  ;;  %v11649_v30 = vpack.c.bf16 %v6233_v21, %v6232_v12  ;;  %v6217_v8 = vld [vmem:[%s12060_s20 + $0x18] sm:$0xff]  ;;  %v6235_v27 = vld [vmem:[%s12060_s20 + $0xa8] sm:$0xff] }
 0xc5a   :  { %v8964_v14 = vld [vmem:[%s12056_s17 + $0x314] ss:$8 sps:$4 sm:$0xff]   ;;  %v8962_v12 = vld [vmem:[%s12056_s17 + $0x310] ss:$8 sps:$4 sm:$0xff]  }
 0xc5b   :  { %8044 = vmatpush3.bf16.msra.mxu0 %v11647_v16  ;;  %v8970_v21 = vld [vmem:[%s12056_s17 + $0x334] ss:$8 sps:$4 sm:$0xff]  }
 0xc5c   :  { %8046 = vmatprep.subr.bf16.mxu0 %v11649_v30 }
 0xc5d   :  { %v5176_v0 = vpop.f32.mrb[84].mxu1  ;;  %v11604_v49 = vpop.f32.mrb[84].mxu0 }
 0xc5e   :  { %v5178_v54 = vpop.f32.mrb[85].mxu1  ;;  %v5183_v13 = vpack.c.bf16 %v5176_v0, %v5176_v0  ;;  %v11609_v4 = vpop.f32.mrb[85].mxu0  ;;  %v6216_v0 = vld [vmem:[%s12060_s20 + $0x10] sm:$0xff] }
 0xc5f   :  { %v5184_v6 = vpack.c.bf16 %v5178_v54, %v5178_v54  ;;  %v5180_v9 = vpop.f32.mrb[86].mxu1  ;;  %v5947_v56 = vpop.f32.mrb[86].mxu0  ;;  %v6234_v54 = vld [vmem:[%s12060_s20 + $0xa0] sm:$0xff]  ;;  %v5951_v43 = vpack.c.bf16 %v11609_v4, %v11609_v4 }
 0xc60   :  { %v5181_v31 = vpop.f32.mrb[87].mxu1  ;;  %v5948_v7 = vpop.f32.mrb[87].mxu0  ;;  %v11668_v9 = vpack.c.bf16 %v6217_v8, %v6216_v0  ;;  %v8947_v56 = vld [vmem:[%s12056_s17 + $0x2c0] ss:$8 sps:$4 sm:$0xff]   ;;  %v8968_v0 = vld [vmem:[%s12056_s17 + $0x330] ss:$8 sps:$4 sm:$0xff]  }
 0xc61   :  { %5410 = vmatprep.mubr.bf16.mxu1 %v5184_v6  ;;  %v8917_v6 = vld [vmem:[%s12056_s17 + $0x220] ss:$8 sps:$4 sm:$0xff]   ;;  %v8952_v7 = vld [vmem:[%s12056_s17 + $0x2d4] ss:$8 sps:$4 sm:$0xff]   ;;  %v8973_v8 = vld [vmem:[%s12056_s17 + $0x344] ss:$8 sps:$4 sm:$0xff]  }
 0xc62   :  { %5411 = vmatmul.mubr.bf16.vlgmr.msra.gmra.mrb[88].mxu1 %v5183_v13  ;;  %v11674_v13 = vpack.c.bf16 %v6235_v27, %v6234_v54  ;;  %v6218_v31 = vld [vmem:[%s12060_s20 + $0x20] sm:$0xff]  ;;  %8048 = vmatpush3.bf16.msra.mxu0 %v11668_v9  ;;  %v8976_v27 = vld [vmem:[%s12056_s17 + $0x354] ss:$8 sps:$4 sm:$0xff]  }
 0xc63   :  { %5580 = vmatpush1.bf16.msra.mxu1 %v8863_v20  ;;  %5611 = vmatprep.mubr.bf16.mxu1 %v5104_v15  ;;  %v8922_v20 = vld [vmem:[%s12056_s17 + $0x234] ss:$8 sps:$4 sm:$0xff]   ;;  %v8965_v4 = vld [vmem:[%s12056_s17 + $0x320] ss:$8 sps:$4 sm:$0xff]  }
 0xc64   :  { %5581 = vmatprep.subr.bf16.mxu1 %v8868_v59  ;;  %v6219_v59 = vld [vmem:[%s12060_s20 + $0x28] sm:$0xff]  ;;  %v6236_v15 = vld [vmem:[%s12060_s20 + $0xb0] sm:$0xff]  ;;  %8050 = vmatprep.subr.bf16.mxu0 %v11674_v13 }
 0xc65   :  { %v8971_v54 = vld [vmem:[%s12056_s17 + $0x340] ss:$8 sps:$4 sm:$0xff]  }
 0xc67   :  { %5582 = vmatpush1.bf16.msra.mxu1 %v8866_v34  ;;  %v6237_v34 = vld [vmem:[%s12060_s20 + $0xb8] sm:$0xff] }
 0xc68   :  { %5583 = vmatprep.subr.bf16.mxu1 %v8871_v3  ;;  %v8920_v3 = vld [vmem:[%s12056_s17 + $0x230] ss:$8 sps:$4 sm:$0xff]  }
 0xc6b   :  { %5584 = vmatpush1.bf16.msra.mxu1 %v8869_v57  ;;  %v11692_v57 = vpack.c.bf16 %v6219_v59, %v6218_v31  ;;  %v8977_v31 = vld [vmem:[%s12056_s17 + $0x360] ss:$8 sps:$4 sm:$0xff]   ;;  %v8982_v59 = vld [vmem:[%s12056_s17 + $0x374] ss:$8 sps:$4 sm:$0xff]  }
 0xc6c   :  { %5585 = vmatprep.subr.bf16.mxu1 %v8874_v39  ;;  %v8925_v39 = vld [vmem:[%s12056_s17 + $0x244] ss:$8 sps:$4 sm:$0xff]  }
 0xc6d   :  { %8052 = vmatpush3.bf16.msra.mxu0 %v11692_v57 }
 0xc6f   :  { %5586 = vmatpush1.bf16.msra.mxu1 %v8872_v23  ;;  %v11698_v23 = vpack.c.bf16 %v6237_v34, %v6236_v15  ;;  %v8980_v15 = vld [vmem:[%s12056_s17 + $0x370] ss:$8 sps:$4 sm:$0xff]   ;;  %v8985_v34 = vld [vmem:[%s12056_s17 + $0x384] ss:$8 sps:$4 sm:$0xff]  }
 0xc70   :  { %5587 = vmatprep.subr.bf16.mxu1 %v8877_v10  ;;  %v6220_v10 = vld [vmem:[%s12060_s20 + $0x30] sm:$0xff] }
 0xc71   :  { %8054 = vmatprep.subr.bf16.mxu0 %v11698_v23 }
 0xc73   :  { %5588 = vmatpush1.bf16.msra.mxu1 %v8875_v40  ;;  %v6221_v40 = vld [vmem:[%s12060_s20 + $0x38] sm:$0xff] }
 0xc74   :  { %5589 = vmatprep.subr.bf16.mxu1 %v8880_v18  ;;  %v6238_v18 = vld [vmem:[%s12060_s20 + $0xc0] sm:$0xff] }
 0xc77   :  { %5590 = vmatpush1.bf16.msra.mxu1 %v8878_v63  ;;  %v6239_v63 = vld [vmem:[%s12060_s20 + $0xc8] sm:$0xff] }
 0xc78   :  { %5591 = vmatprep.subr.bf16.mxu1 %v8883_v22  ;;  %v8923_v22 = vld [vmem:[%s12056_s17 + $0x240] ss:$8 sps:$4 sm:$0xff]  }
 0xc7b   :  { %5592 = vmatpush1.bf16.msra.mxu1 %v8881_v60  ;;  %v11716_v60 = vpack.c.bf16 %v6221_v40, %v6220_v10  ;;  %v8986_v10 = vld [vmem:[%s12056_s17 + $0x390] ss:$8 sps:$4 sm:$0xff]   ;;  %v8991_v40 = vld [vmem:[%s12056_s17 + $0x3a4] ss:$8 sps:$4 sm:$0xff]  }
 0xc7c   :  { %5593 = vmatprep.subr.bf16.mxu1 %v8886_v58  ;;  %v8928_v58 = vld [vmem:[%s12056_s17 + $0x254] ss:$8 sps:$4 sm:$0xff]  }
 0xc7d   :  { %8056 = vmatpush3.bf16.msra.mxu0 %v11716_v60 }
 0xc7f   :  { %5594 = vmatpush1.bf16.msra.mxu1 %v8884_v2  ;;  %v11722_v2 = vpack.c.bf16 %v6239_v63, %v6238_v18  ;;  %v8989_v18 = vld [vmem:[%s12056_s17 + $0x3a0] ss:$8 sps:$4 sm:$0xff]   ;;  %v8994_v63 = vld [vmem:[%s12056_s17 + $0x3b4] ss:$8 sps:$4 sm:$0xff]  }
 0xc80   :  { %5595 = vmatprep.subr.bf16.mxu1 %v8889_v61  ;;  %v6222_v61 = vld [vmem:[%s12060_s20 + $0x40] sm:$0xff] }
 0xc81   :  { %8058 = vmatprep.subr.bf16.mxu0 %v11722_v2 }
 0xc83   :  { %5596 = vmatpush1.bf16.msra.mxu1 %v8887_v1  ;;  %v6223_v1 = vld [vmem:[%s12060_s20 + $0x48] sm:$0xff] }
 0xc84   :  { %5597 = vmatprep.subr.bf16.mxu1 %v8892_v25  ;;  %v8926_v25 = vld [vmem:[%s12056_s17 + $0x250] ss:$8 sps:$4 sm:$0xff]  }
 0xc87   :  { %5598 = vmatpush1.bf16.msra.mxu1 %v8890_v5  ;;  %v11734_v5 = vpack.c.bf16 %v6223_v1, %v6222_v61  ;;  %v8995_v61 = vld [vmem:[%s12056_s17 + $0x3c0] ss:$8 sps:$4 sm:$0xff]   ;;  %v9000_v1 = vld [vmem:[%s12056_s17 + $0x3d4] ss:$8 sps:$4 sm:$0xff]  }
 0xc88   :  { %5599 = vmatprep.subr.bf16.mxu1 %v8895_v17  ;;  %v8931_v17 = vld [vmem:[%s12056_s17 + $0x264] ss:$8 sps:$4 sm:$0xff]  }
 0xc89   :  { %8060 = vmatpush3.bf16.msra.mxu0 %v11734_v5 }
 0xc8b   :  { %5600 = vmatpush1.bf16.msra.mxu1 %v8893_v26  ;;  %v8929_v26 = vld [vmem:[%s12056_s17 + $0x260] ss:$8 sps:$4 sm:$0xff]  }
 0xc8c   :  { %5601 = vmatprep.subr.bf16.mxu1 %v8898_v36  ;;  %v8934_v36 = vld [vmem:[%s12056_s17 + $0x274] ss:$8 sps:$4 sm:$0xff]  }
 0xc8f   :  { %5602 = vmatpush1.bf16.msra.mxu1 %v8896_v52  ;;  %v8932_v52 = vld [vmem:[%s12056_s17 + $0x270] ss:$8 sps:$4 sm:$0xff]  }
 0xc90   :  { %5603 = vmatprep.subr.bf16.mxu1 %v8901_v42  ;;  %v8937_v42 = vld [vmem:[%s12056_s17 + $0x284] ss:$8 sps:$4 sm:$0xff]  }
 0xc93   :  { %5604 = vmatpush1.bf16.msra.mxu1 %v8899_v33  ;;  %v8935_v33 = vld [vmem:[%s12056_s17 + $0x280] ss:$8 sps:$4 sm:$0xff]  }
 0xc94   :  { %5605 = vmatprep.subr.bf16.mxu1 %v8904_v28  ;;  %v8940_v28 = vld [vmem:[%s12056_s17 + $0x294] ss:$8 sps:$4 sm:$0xff]  }
 0xc97   :  { %5606 = vmatpush1.bf16.msra.mxu1 %v8902_v24  ;;  %v8938_v24 = vld [vmem:[%s12056_s17 + $0x290] ss:$8 sps:$4 sm:$0xff]  }
 0xc98   :  { %5607 = vmatprep.subr.bf16.mxu1 %v8907_v53  ;;  %v8943_v53 = vld [vmem:[%s12056_s17 + $0x2a4] ss:$8 sps:$4 sm:$0xff]  }
 0xc9b   :  { %5608 = vmatpush1.bf16.msra.mxu1 %v8905_v62  ;;  %v8941_v62 = vld [vmem:[%s12056_s17 + $0x2a0] ss:$8 sps:$4 sm:$0xff]  }
 0xc9c   :  { %5609 = vmatprep.subr.bf16.mxu1 %v8910_v32  ;;  %v8946_v32 = vld [vmem:[%s12056_s17 + $0x2b4] ss:$8 sps:$4 sm:$0xff]  }
 0xc9f   :  { %5610 = vmatpush1.bf16.msra.mxu1 %v8908_v41  ;;  %v8944_v41 = vld [vmem:[%s12056_s17 + $0x2b0] ss:$8 sps:$4 sm:$0xff]  }
 0xca0   :  { %5861 = vmatprep.subr.bf16.mxu1 %v8913_v55  ;;  %v8949_v55 = vld [vmem:[%s12056_s17 + $0x2c4] ss:$8 sps:$4 sm:$0xff]  }
 0xca2   :  { %5612 = vmatmul.mubr.bf16.vlgmr.msra.gmra.mrb[88].mxu1 %v5103_v50  ;;  %v8953_v50 = vld [vmem:[%s12056_s17 + $0x2e0] ss:$8 sps:$4 sm:$0xff]  }
 0xca3   :  { %5862 = vmatpush1.bf16.msra.mxu1 %v8911_v35  ;;  %5893 = vmatprep.mubr.bf16.mxu1 %v5667_v51  ;;  %v8950_v35 = vld [vmem:[%s12056_s17 + $0x2d0] ss:$8 sps:$4 sm:$0xff]   ;;  %v8955_v51 = vld [vmem:[%s12056_s17 + $0x2e4] ss:$8 sps:$4 sm:$0xff]  }
 0xca4   :  { %5863 = vmatprep.subr.bf16.mxu1 %v8916_v37  ;;  %v8958_v37 = vld [vmem:[%s12056_s17 + $0x2f4] ss:$8 sps:$4 sm:$0xff]  }
 0xca7   :  { %5864 = vmatpush1.bf16.msra.mxu1 %v8914_v29  ;;  %v8956_v29 = vld [vmem:[%s12056_s17 + $0x2f0] ss:$8 sps:$4 sm:$0xff]  }
 0xca8   :  { %5865 = vmatprep.subr.bf16.mxu1 %v8919_v46  ;;  %v8961_v46 = vld [vmem:[%s12056_s17 + $0x304] ss:$8 sps:$4 sm:$0xff]  }
 0xcab   :  { %5866 = vmatpush1.bf16.msra.mxu1 %v8917_v6  ;;  %v8974_v6 = vld [vmem:[%s12056_s17 + $0x350] ss:$8 sps:$4 sm:$0xff]  }
 0xcac   :  { %5867 = vmatprep.subr.bf16.mxu1 %v8922_v20  ;;  %v8979_v20 = vld [vmem:[%s12056_s17 + $0x364] ss:$8 sps:$4 sm:$0xff]  }
 0xcaf   :  { %5868 = vmatpush1.bf16.msra.mxu1 %v8920_v3  ;;  %v8983_v3 = vld [vmem:[%s12056_s17 + $0x380] ss:$8 sps:$4 sm:$0xff]  }
 0xcb0   :  { %5869 = vmatprep.subr.bf16.mxu1 %v8925_v39  ;;  %v8988_v39 = vld [vmem:[%s12056_s17 + $0x394] ss:$8 sps:$4 sm:$0xff]  }
 0xcb3   :  { %5870 = vmatpush1.bf16.msra.mxu1 %v8923_v22  ;;  %v8992_v22 = vld [vmem:[%s12056_s17 + $0x3b0] ss:$8 sps:$4 sm:$0xff]  }
 0xcb4   :  { %5871 = vmatprep.subr.bf16.mxu1 %v8928_v58  ;;  %v8997_v58 = vld [vmem:[%s12056_s17 + $0x3c4] ss:$8 sps:$4 sm:$0xff]  }
 0xcb7   :  { %5872 = vmatpush1.bf16.msra.mxu1 %v8926_v25  ;;  %v8998_v25 = vld [vmem:[%s12056_s17 + $0x3d0] ss:$8 sps:$4 sm:$0xff]  }
 0xcb8   :  { %5873 = vmatprep.subr.bf16.mxu1 %v8931_v17  ;;  %v9003_v17 = vld [vmem:[%s12056_s17 + $0x3e4] ss:$8 sps:$4 sm:$0xff]  }
 0xcbb   :  { %5874 = vmatpush1.bf16.msra.mxu1 %v8929_v26  ;;  %v9001_v26 = vld [vmem:[%s12056_s17 + $0x3e0] ss:$8 sps:$4 sm:$0xff]  }
 0xcbc   :  { %5875 = vmatprep.subr.bf16.mxu1 %v8934_v36  ;;  %v9006_v36 = vld [vmem:[%s12056_s17 + $0x3f4] ss:$8 sps:$4 sm:$0xff]  }
 0xcbf   :  { %5876 = vmatpush1.bf16.msra.mxu1 %v8932_v52  ;;  %v9004_v52 = vld [vmem:[%s12056_s17 + $0x3f0] ss:$8 sps:$4 sm:$0xff]  }
 0xcc0   :  { %5877 = vmatprep.subr.bf16.mxu1 %v8937_v42  ;;  %v5950_v42 = vpack.c.bf16 %v11604_v49, %v11604_v49  ;;  %v6242_v49 = vld [vmem:[%s12060_s20 + $0xe0] sm:$0xff] }
 0xcc3   :  { %5878 = vmatpush1.bf16.msra.mxu1 %v8935_v33  ;;  %v6240_v33 = vld [vmem:[%s12060_s20 + $0xd0] sm:$0xff] }
 0xcc4   :  { %5879 = vmatprep.subr.bf16.mxu1 %v8940_v28  ;;  %v6241_v28 = vld [vmem:[%s12060_s20 + $0xd8] sm:$0xff] }
 0xcc7   :  { %5880 = vmatpush1.bf16.msra.mxu1 %v8938_v24  ;;  %v8061_v24 = vpack.c.bf16 %v6241_v28, %v6240_v33 }
 0xcc8   :  { %5881 = vmatprep.subr.bf16.mxu1 %v8943_v53  ;;  %v6224_v53 = vld [vmem:[%s12060_s20 + $0x50] sm:$0xff] }
 0xcc9   :  { %8062 = vmatprep.subr.bf16.mxu0 %v8061_v24 }
 0xccb   :  { %5882 = vmatpush1.bf16.msra.mxu1 %v8941_v62  ;;  %v6225_v62 = vld [vmem:[%s12060_s20 + $0x58] sm:$0xff] }
 0xccc   :  { %5883 = vmatprep.subr.bf16.mxu1 %v8946_v32  ;;  %v8063_v32 = vpack.c.bf16 %v6225_v62, %v6224_v53  ;;  %v6402_v53 = vld [vmem:[%s12061_s21 + $0x50] sm:$0xff] }
 0xcce   :  { %8064 = vmatpush3.bf16.msra.mxu0 %v8063_v32 }
 0xccf   :  { %5884 = vmatpush1.bf16.msra.mxu1 %v8944_v41  ;;  %v6243_v41 = vld [vmem:[%s12060_s20 + $0xe8] sm:$0xff] }
 0xcd0   :  { %5885 = vmatprep.subr.bf16.mxu1 %v8949_v55  ;;  %v8065_v55 = vpack.c.bf16 %v6243_v41, %v6242_v49  ;;  %v6407_v49 = vld [vmem:[%s12061_s21 + $0x78] sm:$0xff] }
 0xcd2   :  { %8066 = vmatprep.subr.bf16.mxu0 %v8065_v55 }
 0xcd3   :  { %5886 = vmatpush1.bf16.msra.mxu1 %v8947_v56  ;;  %v6226_v56 = vld [vmem:[%s12060_s20 + $0x60] sm:$0xff] }
 0xcd4   :  { %5887 = vmatprep.subr.bf16.mxu1 %v8952_v7  ;;  %v6227_v7 = vld [vmem:[%s12060_s20 + $0x68] sm:$0xff] }
 0xcd7   :  { %5888 = vmatpush1.bf16.msra.mxu1 %v8950_v35  ;;  %v8067_v35 = vpack.c.bf16 %v6227_v7, %v6226_v56  ;;  %v6406_v56 = vld [vmem:[%s12061_s21 + $0x70] sm:$0xff] }
 0xcd8   :  { %5889 = vmatprep.subr.bf16.mxu1 %v8955_v51  ;;  %v6244_v51 = vld [vmem:[%s12060_s20 + $0xf0] sm:$0xff] }
 0xcd9   :  { %8068 = vmatpush3.bf16.msra.mxu0 %v8067_v35 }
 0xcdb   :  { %5890 = vmatpush1.bf16.msra.mxu1 %v8953_v50  ;;  %v6245_v50 = vld [vmem:[%s12060_s20 + $0xf8] sm:$0xff] }
 0xcdc   :  { %5891 = vmatprep.subr.bf16.mxu1 %v8958_v37  ;;  %v6228_v37 = vld [vmem:[%s12060_s20 + $0x70] sm:$0xff] }
 0xcdf   :  { %5892 = vmatpush1.bf16.msra.mxu1 %v8956_v29  ;;  %v8069_v29 = vpack.c.bf16 %v6245_v50, %v6244_v51 }
 0xce0   :  { %6145 = vmatprep.subr.bf16.mxu1 %v8961_v46  ;;  %v6229_v46 = vld [vmem:[%s12060_s20 + $0x78] sm:$0xff] }
 0xce1   :  { %8070 = vmatprep.subr.bf16.mxu0 %v8069_v29 }
 0xce2   :  { %5894 = vmatmul.mubr.bf16.vlgmr.msra.gmra.mrb[88].mxu1 %v5666_v38  ;;  %v8071_v38 = vpack.c.bf16 %v6229_v46, %v6228_v37 }
 0xce3   :  { %6146 = vmatpush1.bf16.msra.mxu1 %v8959_v48  ;;  %6177 = vmatprep.mubr.bf16.mxu1 %v5951_v43 }
 0xce4   :  { %6147 = vmatprep.subr.bf16.mxu1 %v8964_v14  ;;  %8072 = vmatpush3.bf16.msra.mxu0 %v8071_v38 }
 0xce5   :  { %8074 = vmatprep.subr.bf16.mxu0 %v11636_v44 }
 0xce7   :  { %6148 = vmatpush1.bf16.msra.mxu1 %v8962_v12 }
 0xce8   :  { %6149 = vmatprep.subr.bf16.mxu1 %v8967_v47 }
 0xceb   :  { %6150 = vmatpush1.bf16.msra.mxu1 %v8965_v4 }
 0xcec   :  { %6151 = vmatprep.subr.bf16.mxu1 %v8970_v21 }
 0xcef   :  { %6152 = vmatpush1.bf16.msra.mxu1 %v8968_v0 }
 0xcf0   :  { %6153 = vmatprep.subr.bf16.mxu1 %v8973_v8 }
 0xcf3   :  { %6154 = vmatpush1.bf16.msra.mxu1 %v8971_v54 }
 0xcf4   :  { %6155 = vmatprep.subr.bf16.mxu1 %v8976_v27 }
 0xcf7   :  { %6156 = vmatpush1.bf16.msra.mxu1 %v8974_v6 }
 0xcf8   :  { %6157 = vmatprep.subr.bf16.mxu1 %v8979_v20 }
 0xcfb   :  { %6158 = vmatpush1.bf16.msra.mxu1 %v8977_v31 }
 0xcfc   :  { %6159 = vmatprep.subr.bf16.mxu1 %v8982_v59 }
 0xcff   :  { %6160 = vmatpush1.bf16.msra.mxu1 %v8980_v15 }
 0xd00   :  { %6161 = vmatprep.subr.bf16.mxu1 %v8985_v34 }
 0xd03   :  { %6162 = vmatpush1.bf16.msra.mxu1 %v8983_v3 }
 0xd04   :  { %6163 = vmatprep.subr.bf16.mxu1 %v8988_v39 }
 0xd07   :  { %6164 = vmatpush1.bf16.msra.mxu1 %v8986_v10 }
 0xd08   :  { %6165 = vmatprep.subr.bf16.mxu1 %v8991_v40 }
 0xd0b   :  { %6166 = vmatpush1.bf16.msra.mxu1 %v8989_v18 }
 0xd0c   :  { %6167 = vmatprep.subr.bf16.mxu1 %v8994_v63 }
 0xd0f   :  { %6168 = vmatpush1.bf16.msra.mxu1 %v8992_v22 }
 0xd10   :  { %6169 = vmatprep.subr.bf16.mxu1 %v8997_v58 }
 0xd13   :  { %6170 = vmatpush1.bf16.msra.mxu1 %v8995_v61  ;;  %v6399_v61 = vld [vmem:[%s12061_s21 + $0x38] sm:$0xff] }
 0xd14   :  { %6171 = vmatprep.subr.bf16.mxu1 %v9000_v1 }
 0xd17   :  { %6172 = vmatpush1.bf16.msra.mxu1 %v8998_v25 }
 0xd18   :  { %6173 = vmatprep.subr.bf16.mxu1 %v9003_v17 }
 0xd1b   :  { %6174 = vmatpush1.bf16.msra.mxu1 %v9001_v26  ;;  %v6396_v26 = vld [vmem:[%s12061_s21 + $0x20] sm:$0xff] }
 0xd1c   :  { %6175 = vmatprep.subr.bf16.mxu1 %v9006_v36  ;;  %v6398_v36 = vld [vmem:[%s12061_s21 + $0x30] sm:$0xff] }
 0xd1d   :  { %v8111_v33 = vpack.c.bf16 %v6398_v36, %v6396_v26 }
 0xd1f   :  { %6176 = vmatpush1.bf16.msra.mxu1 %v9004_v52  ;;  %v6401_v52 = vld [vmem:[%s12061_s21 + $0x48] sm:$0xff] }
 0xd22   :  { %6178 = vmatmul.mubr.bf16.vlgmr.msra.gmra.mrb[88].mxu1 %v5950_v42  ;;  %v6403_v42 = vld [vmem:[%s12061_s21 + $0x58] sm:$0xff] }
 0xd23   :  { %v8113_v28 = vpack.c.bf16 %v6403_v42, %v6401_v52 }
 0xdf5   :  { %v11937_v48 = vpop.f32.mrb[88].mxu1 }
 0xdf6   :  { %v6188_v43 = vrot.slane %v11937_v48, 4  ;;  %v11940_v14 = vpop.f32.mrb[89].mxu1  ;;  %v6200_v63 = vmul.f32 %v11937_v48, %v11937_v48 }
 0xdf7   :  { %v6194_v12 = vrot.slane %v11940_v14, 4  ;;  %v6201_v47 = vmul.f32 %v11940_v14, %v11940_v14  ;;  %v6183_v4 = vpop.f32.mrb[90].mxu1 }
 0xdf8   :  { %v6189_v21 = vadd.f32 %v6188_v43, %v11937_v48  ;;  %v6184_v0 = vpop.f32.mrb[91].mxu1  ;;  %v6202_v22 = vrot.slane %v6200_v63, 4 }
 0xdf9   :  { %v6195_v8 = vadd.f32 %v6194_v12, %v11940_v14  ;;  %v6208_v54 = vrot.slane %v6201_v47, 4 }
 0xdfa   :  { %v6190_v27 = vrot.slane %v6189_v21, 2  ;;  %v6203_v58 = vadd.f32 %v6202_v22, %v6200_v63 }
 0xdfb   :  { %v6196_v44 = vrot.slane %v6195_v8, 2  ;;  %v6209_v6 = vadd.f32 %v6208_v54, %v6201_v47 }
 0xdfc   :  { %v6191_v20 = vadd.f32 %v6190_v27, %v6189_v21 }
 0xdfd   :  { %v6197_v31 = vadd.f32 %v6196_v44, %v6195_v8  ;;  %v6210_v59 = vrot.slane %v6209_v6, 2 }
 0xdfe   :  { %v6192_v15 = vrot.slane %v6191_v20, 1 }
 0xdff   :  { %v6198_v34 = vrot.slane %v6197_v31, 1  ;;  %v6211_v3 = vadd.f32 %v6210_v59, %v6209_v6 }
 0xe00   :  { %v6193_v40 = vadd.f32 %v6192_v15, %v6191_v20  ;;  %v6566_v20 = vld [vmem:[%s12062_s18] sm:$0x3] }
 0xe01   :  { %v6199_v39 = vadd.f32 %v6198_v34, %v6197_v31  ;;  %v6212_v10 = vrot.slane %v6211_v3, 1  ;;  %v6571_v31 = vrot.slane %v6566_v20, %v9875_v45  ;;  %v6575_v59 = vrot.slane %v6566_v20, %v9880_v11 }
 0xe03   :  { %6310 = vmatprep.mubr.f32.mxu0 %v6199_v39  ;;  %v6213_v18 = vadd.f32 %v6212_v10, %v6211_v3 }
 0xe04   :  { %6311 = vmatmul.mubr.f32.vlgmr.msra.gmra.mrb[78].mxu0 %v6193_v40 }
 0xe05   :  { %8076 = vmatpush3.bf16.msra.mxu0 %v11647_v16  ;;  %6381 = vmatprep.mubr.f32.mxu0 %v6213_v18  ;;  %v6204_v16 = vrot.slane %v6203_v58, 2 }
 0xe06   :  { %8078 = vmatprep.subr.bf16.mxu0 %v11649_v30 }
 0xe07   :  { %v6205_v30 = vadd.f32 %v6204_v16, %v6203_v58 }
 0xe09   :  { %8080 = vmatpush3.bf16.msra.mxu0 %v11668_v9  ;;  %v6393_v9 = vld [vmem:[%s12061_s21 + $0x8] sm:$0xff] }
 0xe0a   :  { %8082 = vmatprep.subr.bf16.mxu0 %v11674_v13  ;;  %v6395_v13 = vld [vmem:[%s12061_s21 + $0x18] sm:$0xff] }
 0xe0d   :  { %8084 = vmatpush3.bf16.msra.mxu0 %v11692_v57  ;;  %v6206_v57 = vrot.slane %v6205_v30, 1 }
 0xe0e   :  { %8086 = vmatprep.subr.bf16.mxu0 %v11698_v23  ;;  %v8105_v23 = vpack.c.bf16 %v6395_v13, %v6393_v9  ;;  %v6611_v9 = vld [vmem:[%s12064_s22 + $0x8] sm:$0xff]  ;;  %v6610_v13 = vld [vmem:[%s12064_s22] sm:$0xff] }
 0xe0f   :  { %v6207_v25 = vadd.f32 %v6206_v57, %v6205_v30 }
 0xe11   :  { %8088 = vmatpush3.bf16.msra.mxu0 %v11716_v60  ;;  %v6392_v60 = vld [vmem:[%s12061_s21] sm:$0xff] }
 0xe12   :  { %8090 = vmatprep.subr.bf16.mxu0 %v11722_v2  ;;  %v6394_v2 = vld [vmem:[%s12061_s21 + $0x10] sm:$0xff] }
 0xe13   :  { %v8107_v1 = vpack.c.bf16 %v6394_v2, %v6392_v60  ;;  %v6614_v60 = vld [vmem:[%s12065_s23] sm:$0x3]  ;;  %v30_v2 = vstv %s12066_s24 }
 0xe14   :  { %31 = vst [vmem:[#allocation2] sm:$0x1] %v30_v2 }
 0xe15   :  { %8092 = vmatpush3.bf16.msra.mxu0 %v11734_v5  ;;  %v6397_v5 = vld [vmem:[%s12061_s21 + $0x28] sm:$0xff] }
 0xe16   :  { %8094 = vmatprep.subr.bf16.mxu0 %v8061_v24  ;;  %v8109_v17 = vpack.c.bf16 %v6399_v61, %v6397_v5  ;;  %v6400_v24 = vld [vmem:[%s12061_s21 + $0x40] sm:$0xff] }
 0xe17   :  { %v8115_v62 = vpack.c.bf16 %v6402_v53, %v6400_v24 }
 0xe19   :  { %8096 = vmatpush3.bf16.msra.mxu0 %v8063_v32  ;;  %v6405_v32 = vld [vmem:[%s12061_s21 + $0x68] sm:$0xff] }
 0xe1a   :  { %8098 = vmatprep.subr.bf16.mxu0 %v8065_v55  ;;  %v8117_v41 = vpack.c.bf16 %v6407_v49, %v6405_v32  ;;  %v6404_v55 = vld [vmem:[%s12061_s21 + $0x60] sm:$0xff] }
 0xe1b   :  { %v8119_v7 = vpack.c.bf16 %v6406_v56, %v6404_v55  ;;  %v7678_v26 = vld [vmem:[#allocation2] ss:$0 sm:$0xff] }
 0xe1d   :  { %8100 = vmatpush3.bf16.msra.mxu0 %v8067_v35 }
 0xe1e   :  { %8102 = vmatprep.subr.bf16.mxu0 %v8069_v29 }
 0xe21   :  { %8104 = vmatpush3.bf16.msra.mxu0 %v8071_v38 }
 0xe22   :  { %8106 = vmatprep.subr.bf16.mxu0 %v8105_v23 }
 0xe24   :  { %6382 = vmatmul.mubr.f32.vlgmr.msra.gmra.mrb[88].mxu0 %v6207_v25 }
 0xe25   :  { %8108 = vmatpush1.bf16.msra.mxu0 %v8107_v1  ;;  %6475 = vmatprep.mubr.f32.mxu0 %v9014_v19 }
 0xe26   :  { %8110 = vmatprep.subr.bf16.mxu0 %v8109_v17 }
 0xe29   :  { %8112 = vmatpush1.bf16.msra.mxu0 %v8111_v33 }
 0xe2a   :  { %8114 = vmatprep.subr.bf16.mxu0 %v8113_v28 }
 0xe2d   :  { %8116 = vmatpush1.bf16.msra.mxu0 %v8115_v62 }
 0xe2e   :  { %8118 = vmatprep.subr.bf16.mxu0 %v8117_v41 }
 0xe31   :  { %8120 = vmatpush1.bf16.msra.mxu0 %v8119_v7 }
 0xe32   :  { %8122 = vmatprep.subr.bf16.mxu0 %v8105_v23 }
 0xed7   :  { %v7851_v35 = vpop.f32.mrb[78].mxu0 }
 0xed8   :  { %v7852_v51 = vpop.f32.mrb[79].mxu0 }
 0xed9   :  { %v7853_v50 = vadd.f32 %v7852_v51, %v7851_v35 }
 0xedb   :  { %v6316_v37 = vmul.f32 0.03125, %v7853_v50 }
 0xedd   :  { %7675 = vmatmul.mubr.msk.f32.vlgmr.msra.gmra.mrb[90].mxu0 %vm575_vm0, %v6316_v37  ;;  %v6388_v43 = vmul.f32 %v6316_v37, %v6316_v37 }
 0xede   :  { %8124 = vmatpush1.bf16.msra.mxu0 %v8107_v1  ;;  %6549 = vmatprep.mubr.f32.mxu0 %v9014_v19 }
 0xedf   :  { %8126 = vmatprep.subr.bf16.mxu0 %v8109_v17 }
 0xee2   :  { %8128 = vmatpush1.bf16.msra.mxu0 %v8111_v33 }
 0xee3   :  { %8130 = vmatprep.subr.bf16.mxu0 %v8113_v28 }
 0xee6   :  { %8132 = vmatpush1.bf16.msra.mxu0 %v8115_v62 }
 0xee7   :  { %8134 = vmatprep.subr.bf16.mxu0 %v8117_v41 }
 0xeea   :  { %8136 = vmatpush1.bf16.msra.mxu0 %v8119_v7 }
 0xef7   :  { %v7886_v29 = vpop.f32.mrb[88].mxu0 }
 0xef8   :  { %v7887_v46 = vpop.f32.mrb[89].mxu0 }
 0xef9   :  { %v7888_v38 = vadd.f32 %v7887_v46, %v7886_v29 }
 0xefb   :  { %v6387_v12 = vmul.f32 0.03125, %v7888_v38 }
 0xefd   :  { %v6389_v47 = vsub.f32 %v6387_v12, %v6388_v43 }
 0xeff   :  { %v6390_v4 = vadd.f32 1e-05, %v6389_v47 }
 0xf01   :  { %9011 = vrsqrt.f32 %v6390_v4 }
 0xf0b   :  { %v9012_v21 = vpop.eup %9011 }
 0xf0c   :  { %7676 = vmatmul.mubr.msk.f32.vlgmr.msra.gmra.mrb[92].mxu0 %vm575_vm0, %v9012_v21 }
 0xf0d   :  { %6683 = vmatprep.mubr.f32.mxu0 %v9014_v19  ;;  %v6590_v19 = vld [vmem:[%s12063_s19] sm:$0x3] }
 0xf0e   :  { %v6599_v40 = vrot.slane %v6590_v19, %v9880_v11 }
 0xfb0   :  { %v6477_v0 = vpop.f32.mrb[90].mxu0 }
 0xfb1   :  { %v6559_v8 = vrot.slane %v6477_v0, %v9875_v45  ;;  %v6479_v54 = vpop.f32.mrb[91].mxu0 }
 0xfb2   :  { %v6563_v27 = vrot.slane %v6479_v54, %v9875_v45 }
 0xfb3   :  { %v6564_v44 = vsub.f32 %v11937_v48, %v6559_v8 }
 0xfb4   :  { %v6565_v6 = vsub.f32 %v11940_v14, %v6563_v27  ;;  %v6595_v14 = vrot.slane %v6590_v19, %v9875_v45 }
 0xfdf   :  { %v6551_v15 = vpop.f32.mrb[92].mxu0 }
 0xfe0   :  { %v6578_v34 = vmul.f32 %v6571_v31, %v6551_v15  ;;  %v6553_v3 = vpop.f32.mrb[93].mxu0 }
 0xfe1   :  { %v6579_v39 = vmul.f32 %v6575_v59, %v6553_v3 }
 0xfe2   :  { %v6583_v48 = vrot.slane %v6578_v34, %v9875_v45 }
 0xfe3   :  { %v6587_v10 = vrot.slane %v6579_v39, %v9875_v45 }
 0xfe4   :  { %v6588_v18 = vmul.f32 %v6583_v48, %v6564_v44 }
 0xfe5   :  { %v6589_v63 = vmul.f32 %v6587_v10, %v6565_v6 }
 0xfe6   :  { %v6602_v22 = vadd.f32 %v6595_v14, %v6588_v18 }
 0xfe7   :  { %v6603_v58 = vadd.f32 %v6599_v40, %v6589_v63 }
 0xfe8   :  { %v6606_v16 = vmul.f32 0.2, %v6602_v22  ;;  %vm6604_vm0 = vcmp.gt.f32.partialorder %v6602_v22, 0.0 }
 0xfe9   :  { %vm6605_vm1 = vcmp.gt.f32.partialorder %v6603_v58, 0.0  ;;  %v6607_v30 = vmul.f32 0.2, %v6603_v58 }
 0xfea   :  { %v6608_v57 = vsel %vm6604_vm0, %v6602_v22, %v6606_v16 }
 0xfeb   :  { %v6609_v45 = vsel %vm6605_vm1, %v6603_v58, %v6607_v30  ;;  %v6612_v11 = vmul.f32 %v6610_v13, %v6608_v57 }
 0xfec   :  { %v6613_v23 = vmul.f32 %v6611_v9, %v6609_v45 }
 0xfee   :  { %6619 = vmatprep.subr.mxu0 %v6613_v23 }
 0xfef   :  { %6620 = vmatpush1.msra.mxu0 %v6612_v11 }
 0xff0   :  { %7677 = vmatmul.mubr.msk.f32.vlgmr.msra.gmra.mrb[94].mxu0 %vm6615_vm2, %v6614_v60 }
0x10c3   :  { %v6685_v5 = vpop.f32.mrb[94].mxu0 }
0x10c4   :  { %v6691_v61 = vsel %vm6690_vm3, %v6685_v5, 0.0  ;;  %v6687_v1 = vpop.f32.mrb[95].mxu0 }
0x10c5   :  { %v6692_v25 = vsel %vm6690_vm3, %v6687_v1, 0.0 }
0x10c6   :  { %v6693_v17 = vadd.f32 %v6692_v25, %v6691_v61 }
0x10c8   :  { %6694 = vadd.xlane.f32.xlu0 %v6693_v17 }
0x1155   :  { %v6695_v36 = vpop.xlane.xlu0 %6694 }
0x1156   :  { %v6703_v52 = vadd.f32 %v7678_v26, %v6695_v36 }
0x1158   :  { %6705 = vst.msk [vmem:[%s12067_s25] sm:$0x3] %vm6704_vm4, %v6703_v52 }

</bundles_post_ra>
